<compile_context>
chip_gen: v7x
topology: tpu7x:2x2x1
jax: 0.10.0
libtpu: 0.0.40
codegen_flags: <defaults>
</compile_context>

<pallas_src>
import functools

import jax
import jax.numpy as jnp
from jax import lax
from jax.experimental import pallas as pl
from jax.experimental.pallas import tpu as pltpu

EPS = 1e-5


def _elu(x):
    return jnp.where(x > 0, x, jnp.exp(jnp.minimum(x, 0.0)) - 1.0)


def _round_up(x, m):
    return (x + m - 1) // m * m


def _pick_chunk(sw, max_lanes=1024):
    """Largest multiple-of-128 divisor of sw that is <= max_lanes (sw % 128 == 0)."""
    if sw <= max_lanes:
        return sw
    for d in range(max_lanes // 128, 0, -1):
        if sw % (128 * d) == 0:
            return 128 * d
    return 128


# ---------------------------------------------------------------------------
# Kernel 1: ConvTranspose3d(k=s=(1,2,2)) as one MXU matmul per spatial tile,
# plus a resident per-(n, row) sum/sumsq accumulator for the InstanceNorm3d
# statistics (carried across the "arbitrary" S-tile axis).
# Rows r = co*4 + i*2 + j (the 2x2 upsample taps), spatial S = D*H*W on lanes.
# ---------------------------------------------------------------------------
def _upconv_kernel(x_ref, w_ref, b_ref, m_ref, y_ref, st_ref):
    # x_ref: (1, Cin, TS)   w_ref: (half4, Cin)   b_ref: (half4, 1)
    # m_ref: (1, TS) valid-column mask
    # y_ref: (1, half4, TS)   st_ref: (1, half4, 2)  [col0 = sum, col1 = sumsq]
    @pl.when(pl.program_id(1) == 0)
    def _():
        st_ref[...] = jnp.zeros_like(st_ref)

    y = jnp.dot(w_ref[...], x_ref[0],
                preferred_element_type=jnp.float32) + b_ref[...]
    y_ref[0] = y
    ym = y * m_ref[...]
    part = jnp.concatenate(
        [jnp.sum(ym, axis=1, keepdims=True),
         jnp.sum(ym * y, axis=1, keepdims=True)], axis=1)      # (half4, 2)
    st_ref[0] = st_ref[0] + part


def upconv_matmul_stats(x, up_w, up_b, max_tile=512):
    """x: (N, Cin, D, H, W) -> y (N, half*4, S_pad), stats (N, half*4, 2)."""
    N, Cin, D, H, W = x.shape
    half = up_w.shape[1]
    half4 = 4 * half
    S = D * H * W
    TS = min(max_tile, _round_up(S, 128))
    S_pad = _round_up(S, TS)

    x_flat = x.reshape(N, Cin, S)
    x_flat = jnp.pad(x_flat, ((0, 0), (0, 0), (0, S_pad - S)))
    mask = (jnp.arange(S_pad) < S).astype(jnp.float32).reshape(1, S_pad)
    w2d = up_w.reshape(Cin, half4).T                           # (half4, Cin)
    b2d = jnp.repeat(up_b, 4).reshape(half4, 1)

    y, st = pl.pallas_call(
        _upconv_kernel,
        out_shape=(jax.ShapeDtypeStruct((N, half4, S_pad), jnp.float32),
                   jax.ShapeDtypeStruct((N, half4, 2), jnp.float32)),
        grid_spec=pltpu.PrefetchScalarGridSpec(
            num_scalar_prefetch=0,
            grid=(N, S_pad // TS),
            in_specs=[
                pl.BlockSpec((1, Cin, TS), lambda n, s: (n, 0, s)),
                pl.BlockSpec((half4, Cin), lambda n, s: (0, 0)),
                pl.BlockSpec((half4, 1), lambda n, s: (0, 0)),
                pl.BlockSpec((1, TS), lambda n, s: (0, s)),
            ],
            out_specs=(pl.BlockSpec((1, half4, TS), lambda n, s: (n, 0, s)),
                       pl.BlockSpec((1, half4, 2), lambda n, s: (n, 0, 0))),
        ),
        compiler_params=pltpu.CompilerParams(
            dimension_semantics=("parallel", "arbitrary")),
    )(x_flat, w2d, b2d, mask)
    return y, st


# ---------------------------------------------------------------------------
# Kernel 2: Conv3d kernel=5, padding=2, stride=1 + masked partial BN stats.
# Grid (N, D), both "parallel".  Only a 5-plane D halo is resident (five
# (1,1,C,Wf) views of the same padded array).  (kh,kw,cin) are folded into the
# contraction (K = 25*C bf16), the lane axis is processed in SWC-wide chunks,
# and the output is written full-pitch (no in-kernel column compaction).
# ---------------------------------------------------------------------------
def _conv5_kernel(x0, x1, x2, x3, x4, w_ref, b_ref, m_ref, o_ref, st_ref,
                  *, Wp, SWC):
    # x*: (1, 1, C, Wf) bf16 planes d..d+4   w_ref: (5, Cout, 25*C) bf16
    # b_ref: (Cout, 1)  m_ref: (1, SW) valid mask
    # o_ref: (1, 1, Cout, SW) full-pitch   st_ref: (1, 1, Cout, 2) sum/sumsq
    planes = (x0, x1, x2, x3, x4)
    cout = o_ref.shape[2]
    SW = o_ref.shape[3]
    bias = b_ref[...]                                          # (Cout, 1)
    ssum = jnp.zeros((cout, 1), jnp.float32)
    ssq = jnp.zeros((cout, 1), jnp.float32)
    for c0 in range(0, SW, SWC):                               # static chunks
        acc = jnp.zeros((cout, SWC), jnp.float32)
        for kd in range(5):
            taps = [planes[kd][0, 0, :,
                               c0 + kh * Wp + kw: c0 + kh * Wp + kw + SWC]
                    for kh in range(5) for kw in range(5)]
            patch = jnp.concatenate(taps, axis=0)              # (25*C, SWC) bf16
            acc = acc + jnp.dot(w_ref[kd], patch,
                                preferred_element_type=jnp.float32)
        res = acc + bias                                       # (Cout, SWC) f32
        o_ref[0, 0, :, c0:c0 + SWC] = res
        rm = res * m_ref[:, c0:c0 + SWC]
        ssum = ssum + jnp.sum(rm, axis=1, keepdims=True)
        ssq = ssq + jnp.sum(rm * res, axis=1, keepdims=True)
    st_ref[0, 0] = jnp.concatenate([ssum, ssq], axis=1)


def conv3d_5x5x5(xin, cw, cb, mask, *, H2, W2):
    """xin: (N, D+4, C, Wf) bf16 zero-padded row-flattened planes.
    Returns (conv_full (N, D, Cout, SW) f32, partial_stats (N, D, Cout, 2))."""
    N, Dp4, C, Wf = xin.shape
    D = Dp4 - 4
    Cout = cw.shape[0]
    Wp = W2 + 4
    SW = mask.shape[1]
    SWC = _pick_chunk(SW, 1024)
    # weights -> (kd, Cout, (kh*5+kw)*C + cin), bf16 for the MXU
    w_fold = jnp.transpose(cw, (2, 0, 3, 4, 1)).reshape(5, Cout, 25 * C)
    w_fold = w_fold.astype(jnp.bfloat16)
    bias = cb.reshape(Cout, 1)

    kern = functools.partial(_conv5_kernel, Wp=Wp, SWC=SWC)
    plane_specs = [
        pl.BlockSpec((1, 1, C, Wf), (lambda n, d, kd=kd: (n, d + kd, 0, 0)))
        for kd in range(5)
    ]
    return pl.pallas_call(
        kern,
        out_shape=(jax.ShapeDtypeStruct((N, D, Cout, SW), jnp.float32),
                   jax.ShapeDtypeStruct((N, D, Cout, 2), jnp.float32)),
        grid_spec=pltpu.PrefetchScalarGridSpec(
            num_scalar_prefetch=0,
            grid=(N, D),
            in_specs=plane_specs + [
                pl.BlockSpec((5, Cout, 25 * C), lambda n, d: (0, 0, 0)),
                pl.BlockSpec((Cout, 1), lambda n, d: (0, 0)),
                pl.BlockSpec((1, SW), lambda n, d: (0, 0)),
            ],
            out_specs=(pl.BlockSpec((1, 1, Cout, SW), lambda n, d: (n, d, 0, 0)),
                       pl.BlockSpec((1, 1, Cout, 2), lambda n, d: (n, d, 0, 0))),
        ),
        compiler_params=pltpu.CompilerParams(
            dimension_semantics=("parallel", "parallel")),
    )(xin, xin, xin, xin, xin, w_fold, bias, mask)


# ---------------------------------------------------------------------------
# Kernel 3: ContBatchNorm3d apply + ELU, tiled (N, D), lane-dense full-pitch
# blocks.  The last LUConv variant fuses the residual add + final ELU.
# Per-channel scale/offset come from the conv kernel's masked partial stats.
# ---------------------------------------------------------------------------
def _bn_apply_elu_kernel(x_ref, sc_ref, of_ref, o_ref):
    o_ref[0, 0] = _elu(x_ref[0, 0] * sc_ref[...] + of_ref[...])


def _bn_apply_elu_res_kernel(x_ref, r_ref, sc_ref, of_ref, o_ref):
    h = _elu(x_ref[0, 0] * sc_ref[...] + of_ref[...])
    o_ref[0, 0] = _elu(h + r_ref[0, 0])


def bn_apply_elu(conv_full, scale, offset, residual=None):
    N, D, C, SW = conv_full.shape
    blk = pl.BlockSpec((1, 1, C, SW), lambda n, d: (n, d, 0, 0))
    chn = pl.BlockSpec((C, 1), lambda n, d: (0, 0))
    cp = pltpu.CompilerParams(dimension_semantics=("parallel", "parallel"))
    out_shape = jax.ShapeDtypeStruct((N, D, C, SW), jnp.float32)
    if residual is None:
        return pl.pallas_call(
            _bn_apply_elu_kernel,
            out_shape=out_shape,
            grid_spec=pltpu.PrefetchScalarGridSpec(
                num_scalar_prefetch=0, grid=(N, D),
                in_specs=[blk, chn, chn], out_specs=blk),
            compiler_params=cp,
        )(conv_full, scale, offset)
    return pl.pallas_call(
        _bn_apply_elu_res_kernel,
        out_shape=out_shape,
        grid_spec=pltpu.PrefetchScalarGridSpec(
            num_scalar_prefetch=0, grid=(N, D),
            in_specs=[blk, blk, chn, chn], out_specs=blk),
        compiler_params=cp,
    )(conv_full, residual, scale, offset)


# --------------------------- XLA layout glue --------------------------------
def _prep_conv_input(h, Wf):
    """(N, D, C, H2, W2) f32 -> (N, D+4, C, Wf) bf16, zero-padded D/H/W by 2."""
    N, D, C, H2, W2 = h.shape
    hp = jnp.pad(h, ((0, 0), (2, 2), (0, 0), (2, 2), (2, 2)))
    flat = hp.reshape(N, D + 4, C, (H2 + 4) * (W2 + 4))
    flat = jnp.pad(flat, ((0, 0), (0, 0), (0, 0), (0, Wf - (H2 + 4) * (W2 + 4))))
    return flat.astype(jnp.bfloat16)


def _to_fullpitch(h, SW, Wp):
    """(N, D, C, H2, W2) -> (N, D, C, SW) with Wp row pitch, zero dead cols."""
    N, D, C, H2, W2 = h.shape
    hp = jnp.pad(h, ((0, 0), (0, 0), (0, 0), (0, 0), (0, Wp - W2)))
    flat = hp.reshape(N, D, C, H2 * Wp)
    return jnp.pad(flat, ((0, 0), (0, 0), (0, 0), (0, SW - H2 * Wp)))


def _from_fullpitch(y, H2, W2, Wp):
    """(N, D, C, SW) full-pitch -> (N, D, C, H2, W2) valid region."""
    N, D, C, _ = y.shape
    return y[..., :H2 * Wp].reshape(N, D, C, H2, Wp)[..., :W2]


# ------------------------------ forward -------------------------------------
def up_transition_forward(params, x, skipx):
    """x:(N,Cin,D,H,W), skipx:(N,half,D,2H,2W) in NCDHW; returns NCDHW."""
    N, Cin, D, H, W = x.shape
    half = params["up_w"].shape[1]
    H2, W2 = 2 * H, 2 * W
    S = D * H * W

    # --- ConvTranspose3d(1,2,2) matmul + global InstanceNorm stats (Pallas) ---
    y, st = upconv_matmul_stats(x, params["up_w"], params["up_b"])
    cnt_in = 4.0 * S                                       # taps x spatial per (n, co)
    st_co = st.reshape(N, half, 4, 2).sum(axis=2)          # (N, half, 2)
    mean = st_co[..., 0] / cnt_in
    var = st_co[..., 1] / cnt_in - jnp.square(mean)
    inv = lax.rsqrt(var + EPS)

    # normalize + ELU + pixel shuffle + skip concat: one fused XLA data pass.
    bshape = (N, half, 1, 1, 1, 1, 1)
    y6 = y[:, :, :S].reshape(N, half, 2, 2, D, H, W)
    up = _elu((y6 - mean.reshape(bshape)) * inv.reshape(bshape))
    up = jnp.transpose(up, (0, 4, 1, 5, 2, 6, 3)).reshape(N, D, half, H2, W2)
    skip_t = jnp.transpose(skipx, (0, 2, 1, 3, 4))         # (N, D, half, H2, W2)
    xcat = jnp.concatenate([up, skip_t], axis=2)           # (N, D, C, H2, W2)
    C = xcat.shape[2]

    # Conv layout constants (full-pitch rows of width Wp, lane-padded to 128).
    Wp = W2 + 4
    SW = _round_up(H2 * Wp, 128)
    Wf = _round_up(4 * Wp + 4 + SW, 128)
    cols = jnp.arange(SW)
    conv_mask = ((cols < H2 * Wp) & ((cols % Wp) < W2)).astype(jnp.float32)
    conv_mask = conv_mask.reshape(1, SW)
    xcat_fp = _to_fullpitch(xcat, SW, Wp)                  # f32 residual

    # --- nConvs x [Conv3d(k5,p2) -> ContBatchNorm3d -> ELU]; last one fuses
    #     the residual add + final ELU ---
    h = xcat
    n_ops = len(params["ops"])
    cnt_bn = float(N * D * H2 * W2)
    for idx, (cw, cb, g, b) in enumerate(params["ops"]):
        xin = _prep_conv_input(h, Wf)                      # bf16 (N, D+4, C, Wf)
        conv_full, pstats = conv3d_5x5x5(xin, cw, cb, conv_mask, H2=H2, W2=W2)
        sums = pstats.sum(axis=(0, 1))                     # (C, 2)
        mu = sums[:, 0] / cnt_bn
        vv = sums[:, 1] / cnt_bn - jnp.square(mu)
        sc = g * lax.rsqrt(vv + EPS)
        of = b - mu * sc
        res = xcat_fp if idx == n_ops - 1 else None
        y_full = bn_apply_elu(conv_full, sc.reshape(C, 1), of.reshape(C, 1),
                              residual=res)                # (N, D, C, SW)
        h = _from_fullpitch(y_full, H2, W2, Wp)            # (N, D, C, H2, W2)

    return jnp.transpose(h, (0, 2, 1, 3, 4))               # back to NCDHW


# ------------------------- pure-JAX reference --------------------------------
def reference_forward(params, x, skipx):
    N, Cin, D, H, W = x.shape
    half = params["up_w"].shape[1]
    t = jnp.einsum('ncdhw,coij->nodhwij', x, params["up_w"][:, :, 0],
                   precision=lax.Precision.HIGHEST)
    t = t + params["up_b"][None, :, None, None, None, None, None]
    up = jnp.transpose(t, (0, 1, 2, 3, 5, 4, 6)).reshape(N, half, D, 2 * H, 2 * W)
    mean = up.mean(axis=(2, 3, 4), keepdims=True)
    var = ((up - mean) ** 2).mean(axis=(2, 3, 4), keepdims=True)
    out = _elu((up - mean) * lax.rsqrt(var + EPS))
    xcat = jnp.concatenate([out, skipx], axis=1)
    h = xcat
    for (cw, cb, g, b) in params["ops"]:
        conv = lax.conv_general_dilated(
            h, cw, (1, 1, 1), [(2, 2), (2, 2), (2, 2)],
            dimension_numbers=('NCDHW', 'OIDHW', 'NCDHW'),
            precision=lax.Precision.HIGHEST)
        conv = conv + cb[None, :, None, None, None]
        m = conv.mean(axis=(0, 2, 3, 4), keepdims=True)
        v = ((conv - m) ** 2).mean(axis=(0, 2, 3, 4), keepdims=True)
        hh = (conv - m) * lax.rsqrt(v + EPS)
        hh = hh * g[None, :, None, None, None] + b[None, :, None, None, None]
        h = _elu(hh)
    return _elu(h + xcat)


# ------------------------------ params ---------------------------------------
def init_params(key, in_chans, out_chans, n_convs):
    half = out_chans // 2
    ks = jax.random.split(key, 2 + 4 * n_convs)
    params = {
        "up_w": 0.2 * jax.random.normal(ks[0], (in_chans, half, 1, 2, 2), jnp.float32),
        "up_b": 0.1 * jax.random.normal(ks[1], (half,), jnp.float32),
        "ops": [],
    }
    for i in range(n_convs):
        base = 2 + 4 * i
        cw = 0.05 * jax.random.normal(ks[base + 0], (out_chans, out_chans, 5, 5, 5), jnp.float32)
        cb = 0.1 * jax.random.normal(ks[base + 1], (out_chans,), jnp.float32)
        g = 1.0 + 0.1 * jax.random.normal(ks[base + 2], (out_chans,), jnp.float32)
        b = 0.1 * jax.random.normal(ks[base + 3], (out_chans,), jnp.float32)
        params["ops"].append((cw, cb, g, b))
    return params


if __name__ == "__main__":
    in_chans, out_chans, n_convs = 4, 8, 2
    N, D, H, W = 2, 4, 8, 8

    key = jax.random.PRNGKey(0)
    k_x, k_skip, k_p = jax.random.split(key, 3)
    params = init_params(k_p, in_chans, out_chans, n_convs)
    x = jax.random.normal(k_x, (N, in_chans, D, H, W), jnp.float32)
    skipx = jax.random.normal(k_skip, (N, out_chans // 2, D, 2 * H, 2 * W), jnp.float32)

    fwd = jax.jit(up_transition_forward)
    out = jax.block_until_ready(fwd(params, x, skipx))

    assert out.shape == (N, out_chans, D, 2 * H, 2 * W), out.shape
    ref = reference_forward(params, x, skipx)
    max_err = float(jnp.max(jnp.abs(out - ref)))
    assert bool(jnp.all(jnp.isfinite(out)))
    # Kernel matmuls use bf16 MXU inputs / default precision over two conv
    # layers + the transposed conv; the reference runs in HIGHEST f32, so
    # allow a correspondingly looser (but still tight) bound.
    assert max_err < 6e-2, f"mismatch vs reference: {max_err}"
    print("KERNEL_OK")
</pallas_src>

<mosaic_0001>
module attributes {stable_mosaic.version = 11 : i64} {
  func.func @_upconv_kernel(%arg0: i32, %arg1: i32, %arg2: memref<1x4x256xf32, #tpu.memory_space<vmem>>, %arg3: memref<16x4xf32, #tpu.memory_space<vmem>>, %arg4: memref<16x1xf32, #tpu.memory_space<vmem>>, %arg5: memref<1x256xf32, #tpu.memory_space<vmem>>, %arg6: memref<1x16x256xf32, #tpu.memory_space<vmem>>, %arg7: memref<1x16x2xf32, #tpu.memory_space<vmem>>) attributes {dimension_semantics = [#tpu.dimension_semantics<parallel>, #tpu.dimension_semantics<arbitrary>], iteration_bounds = array<i64: 2, 1>, scalar_prefetch = 0 : i64, scratch_operands = 0 : i64, tpu.core_type = #tpu.core_type<tc>, window_params = [{transform_indices = @transform_0, window_bounds = array<i64: 1, 4, 256>}, {pipeline_mode = #tpu.pipeline_mode<synchronous>, transform_indices = @transform_1, window_bounds = array<i64: 16, 4>}, {pipeline_mode = #tpu.pipeline_mode<synchronous>, transform_indices = @transform_2, window_bounds = array<i64: 16, 1>}, {transform_indices = @transform_3, window_bounds = array<i64: 1, 256>}, {transform_indices = @transform_4, window_bounds = array<i64: 1, 16, 256>}, {transform_indices = @transform_5, window_bounds = array<i64: 1, 16, 2>}]} {
    %c0_i32 = arith.constant 0 : i32
    %0 = arith.cmpi eq, %arg1, %c0_i32 : i32
    %1 = arith.extui %0 : i1 to i32
    %c0_i32_0 = arith.constant 0 : i32
    %2 = arith.cmpi ne, %1, %c0_i32_0 : i32
    scf.if %2 {
      %cst_20 = arith.constant 0.000000e+00 : f32
      %28 = vector.broadcast %cst_20 : f32 to vector<1x16x2xf32>
      %c0_21 = arith.constant 0 : index
      %c0_22 = arith.constant 0 : index
      %c0_23 = arith.constant 0 : index
      %29 = vector.load %arg7[%c0_21, %c0_22, %c0_23] : memref<1x16x2xf32, #tpu.memory_space<vmem>>, vector<1x16x2xf32>
      tpu.vector_store %arg7[%c0_21, %c0_22, %c0_23], %28 {strides = array<i32>} : memref<1x16x2xf32, #tpu.memory_space<vmem>>, vector<1x16x2xf32>,
    } else {
    }
    %c0 = arith.constant 0 : index
    %c0_1 = arith.constant 0 : index
    %3 = vector.load %arg3[%c0, %c0_1] : memref<16x4xf32, #tpu.memory_space<vmem>>, vector<16x4xf32>
    %c0_2 = arith.constant 0 : index
    %c0_3 = arith.constant 0 : index
    %c0_4 = arith.constant 0 : index
    %4 = vector.load %arg2[%c0_2, %c0_3, %c0_4] : memref<1x4x256xf32, #tpu.memory_space<vmem>>, vector<1x4x256xf32>
    %5 = vector.shape_cast %4 : vector<1x4x256xf32> to vector<4x256xf32>
    %cst = arith.constant dense<0.000000e+00> : vector<16x256xf32>
    %6 = tpu.matmul %3, %5, %cst {dimension_numbers = #tpu.dot_dimension_numbers<[1], [0], [0], [1], [0, 0, 1, 1], [], []>} : vector<16x4xf32>, vector<4x256xf32>, vector<16x256xf32> -> vector<16x256xf32>
    %c0_5 = arith.constant 0 : index
    %c0_6 = arith.constant 0 : index
    %7 = vector.load %arg4[%c0_5, %c0_6] : memref<16x1xf32, #tpu.memory_space<vmem>>, vector<16x1xf32>
    %8 = vector.broadcast %7 : vector<16x1xf32> to vector<16x256xf32>
    %9 = arith.addf %6, %8 : vector<16x256xf32>
    %c0_7 = arith.constant 0 : index
    %c0_8 = arith.constant 0 : index
    %c0_9 = arith.constant 0 : index
    %10 = vector.load %arg6[%c0_7, %c0_8, %c0_9] : memref<1x16x256xf32, #tpu.memory_space<vmem>>, vector<1x16x256xf32>
    %11 = vector.shape_cast %10 : vector<1x16x256xf32> to vector<16x256xf32>
    %12 = vector.shape_cast %9 : vector<16x256xf32> to vector<1x16x256xf32>
    tpu.vector_store %arg6[%c0_7, %c0_8, %c0_9], %12 {strides = array<i32>} : memref<1x16x256xf32, #tpu.memory_space<vmem>>, vector<1x16x256xf32>,
    %c0_10 = arith.constant 0 : index
    %c0_11 = arith.constant 0 : index
    %13 = vector.load %arg5[%c0_10, %c0_11] : memref<1x256xf32, #tpu.memory_space<vmem>>, vector<1x256xf32>
    %14 = vector.broadcast %13 : vector<1x256xf32> to vector<16x256xf32>
    %15 = arith.mulf %9, %14 : vector<16x256xf32>
    %cst_12 = arith.constant dense<0.000000e+00> : vector<16xf32>
    %16 = vector.multi_reduction <add>, %15, %cst_12 [1] : vector<16x256xf32> to vector<16xf32>
    %17 = vector.shape_cast %16 : vector<16xf32> to vector<16x1xf32>
    %18 = arith.mulf %15, %9 : vector<16x256xf32>
    %cst_13 = arith.constant dense<0.000000e+00> : vector<16xf32>
    %19 = vector.multi_reduction <add>, %18, %cst_13 [1] : vector<16x256xf32> to vector<16xf32>
    %20 = vector.shape_cast %19 : vector<16xf32> to vector<16x1xf32>
    %21 = tpu.concatenate %17, %20 in 1 : vector<16x1xf32>, vector<16x1xf32> -> vector<16x2xf32>
    %c0_14 = arith.constant 0 : index
    %c0_15 = arith.constant 0 : index
    %c0_16 = arith.constant 0 : index
    %22 = vector.load %arg7[%c0_14, %c0_15, %c0_16] : memref<1x16x2xf32, #tpu.memory_space<vmem>>, vector<1x16x2xf32>
    %23 = vector.shape_cast %22 : vector<1x16x2xf32> to vector<16x2xf32>
    %24 = arith.addf %23, %21 : vector<16x2xf32>
    %c0_17 = arith.constant 0 : index
    %c0_18 = arith.constant 0 : index
    %c0_19 = arith.constant 0 : index
    %25 = vector.load %arg7[%c0_17, %c0_18, %c0_19] : memref<1x16x2xf32, #tpu.memory_space<vmem>>, vector<1x16x2xf32>
    %26 = vector.shape_cast %25 : vector<1x16x2xf32> to vector<16x2xf32>
    %27 = vector.shape_cast %24 : vector<16x2xf32> to vector<1x16x2xf32>
    tpu.vector_store %arg7[%c0_17, %c0_18, %c0_19], %27 {strides = array<i32>} : memref<1x16x2xf32, #tpu.memory_space<vmem>>, vector<1x16x2xf32>,
    return
  }
  func.func @transform_0(%arg0: i32, %arg1: i32) -> (i32, i32, i32) {
    %c0_i32 = arith.constant 0 : i32
    %c0_i32_0 = arith.constant 0 : i32
    return %arg0, %c0_i32, %arg1 : i32, i32, i32
  }
  func.func @transform_1(%arg0: i32, %arg1: i32) -> (i32, i32) {
    %c0_i32 = arith.constant 0 : i32
    %c0_i32_0 = arith.constant 0 : i32
    %c0_i32_1 = arith.constant 0 : i32
    return %c0_i32, %c0_i32_0 : i32, i32
  }
  func.func @transform_2(%arg0: i32, %arg1: i32) -> (i32, i32) {
    %c0_i32 = arith.constant 0 : i32
    %c0_i32_0 = arith.constant 0 : i32
    %c0_i32_1 = arith.constant 0 : i32
    return %c0_i32, %c0_i32_0 : i32, i32
  }
  func.func @transform_3(%arg0: i32, %arg1: i32) -> (i32, i32) {
    %c0_i32 = arith.constant 0 : i32
    %c0_i32_0 = arith.constant 0 : i32
    return %c0_i32, %arg1 : i32, i32
  }
  func.func @transform_4(%arg0: i32, %arg1: i32) -> (i32, i32, i32) {
    %c0_i32 = arith.constant 0 : i32
    %c0_i32_0 = arith.constant 0 : i32
    return %arg0, %c0_i32, %arg1 : i32, i32, i32
  }
  func.func @transform_5(%arg0: i32, %arg1: i32) -> (i32, i32, i32) {
    %c0_i32 = arith.constant 0 : i32
    %c0_i32_0 = arith.constant 0 : i32
    %c0_i32_1 = arith.constant 0 : i32
    return %arg0, %c0_i32, %c0_i32_0 : i32, i32, i32
  }
}

module attributes {stable_mosaic.version = 11 : i64} {
  func.func @_conv5_kernel(%arg0: i32, %arg1: i32, %arg2: memref<1x1x8x512xbf16, #tpu.memory_space<vmem>>, %arg3: memref<1x1x8x512xbf16, #tpu.memory_space<vmem>>, %arg4: memref<1x1x8x512xbf16, #tpu.memory_space<vmem>>, %arg5: memref<1x1x8x512xbf16, #tpu.memory_space<vmem>>, %arg6: memref<1x1x8x512xbf16, #tpu.memory_space<vmem>>, %arg7: memref<5x8x200xbf16, #tpu.memory_space<vmem>>, %arg8: memref<8x1xf32, #tpu.memory_space<vmem>>, %arg9: memref<1x384xf32, #tpu.memory_space<vmem>>, %arg10: memref<1x1x8x384xf32, #tpu.memory_space<vmem>>, %arg11: memref<1x1x8x2xf32, #tpu.memory_space<vmem>>) attributes {dimension_semantics = [#tpu.dimension_semantics<parallel>, #tpu.dimension_semantics<parallel>], iteration_bounds = array<i64: 2, 4>, scalar_prefetch = 0 : i64, scratch_operands = 0 : i64, tpu.core_type = #tpu.core_type<tc>, window_params = [{transform_indices = @transform_0, window_bounds = array<i64: 1, 1, 8, 512>}, {transform_indices = @transform_1, window_bounds = array<i64: 1, 1, 8, 512>}, {transform_indices = @transform_2, window_bounds = array<i64: 1, 1, 8, 512>}, {transform_indices = @transform_3, window_bounds = array<i64: 1, 1, 8, 512>}, {transform_indices = @transform_4, window_bounds = array<i64: 1, 1, 8, 512>}, {pipeline_mode = #tpu.pipeline_mode<synchronous>, transform_indices = @transform_5, window_bounds = array<i64: 5, 8, 200>}, {pipeline_mode = #tpu.pipeline_mode<synchronous>, transform_indices = @transform_6, window_bounds = array<i64: 8, 1>}, {pipeline_mode = #tpu.pipeline_mode<synchronous>, transform_indices = @transform_7, window_bounds = array<i64: 1, 384>}, {transform_indices = @transform_8, window_bounds = array<i64: 1, 1, 8, 384>}, {transform_indices = @transform_9, window_bounds = array<i64: 1, 1, 8, 2>}]} {
    %c0 = arith.constant 0 : index
    %c0_0 = arith.constant 0 : index
    %0 = vector.load %arg8[%c0, %c0_0] : memref<8x1xf32, #tpu.memory_space<vmem>>, vector<8x1xf32>
    %cst = arith.constant 0.000000e+00 : f32
    %1 = vector.broadcast %cst : f32 to vector<8x1xf32>
    %cst_1 = arith.constant 0.000000e+00 : f32
    %2 = vector.broadcast %cst_1 : f32 to vector<8x1xf32>
    %cst_2 = arith.constant 0.000000e+00 : f32
    %3 = vector.broadcast %cst_2 : f32 to vector<8x384xf32>
    %c0_3 = arith.constant 0 : index
    %c0_4 = arith.constant 0 : index
    %c0_5 = arith.constant 0 : index
    %c0_6 = arith.constant 0 : index
    %4 = vector.load %arg2[%c0_3, %c0_4, %c0_5, %c0_6] : memref<1x1x8x512xbf16, #tpu.memory_space<vmem>>, vector<1x1x8x384xbf16>
    %5 = vector.shape_cast %4 : vector<1x1x8x384xbf16> to vector<8x384xbf16>
    %c0_7 = arith.constant 0 : index
    %c0_8 = arith.constant 0 : index
    %c0_9 = arith.constant 0 : index
    %c1 = arith.constant 1 : index
    %6 = vector.load %arg2[%c0_7, %c0_8, %c0_9, %c1] : memref<1x1x8x512xbf16, #tpu.memory_space<vmem>>, vector<1x1x8x384xbf16>
    %7 = vector.shape_cast %6 : vector<1x1x8x384xbf16> to vector<8x384xbf16>
    %c0_10 = arith.constant 0 : index
    %c0_11 = arith.constant 0 : index
    %c0_12 = arith.constant 0 : index
    %c2 = arith.constant 2 : index
    %8 = vector.load %arg2[%c0_10, %c0_11, %c0_12, %c2] : memref<1x1x8x512xbf16, #tpu.memory_space<vmem>>, vector<1x1x8x384xbf16>
    %9 = vector.shape_cast %8 : vector<1x1x8x384xbf16> to vector<8x384xbf16>
    %c0_13 = arith.constant 0 : index
    %c0_14 = arith.constant 0 : index
    %c0_15 = arith.constant 0 : index
    %c3 = arith.constant 3 : index
    %10 = vector.load %arg2[%c0_13, %c0_14, %c0_15, %c3] : memref<1x1x8x512xbf16, #tpu.memory_space<vmem>>, vector<1x1x8x384xbf16>
    %11 = vector.shape_cast %10 : vector<1x1x8x384xbf16> to vector<8x384xbf16>
    %c0_16 = arith.constant 0 : index
    %c0_17 = arith.constant 0 : index
    %c0_18 = arith.constant 0 : index
    %c4 = arith.constant 4 : index
    %12 = vector.load %arg2[%c0_16, %c0_17, %c0_18, %c4] : memref<1x1x8x512xbf16, #tpu.memory_space<vmem>>, vector<1x1x8x384xbf16>
    %13 = vector.shape_cast %12 : vector<1x1x8x384xbf16> to vector<8x384xbf16>
    %c0_19 = arith.constant 0 : index
    %c0_20 = arith.constant 0 : index
    %c0_21 = arith.constant 0 : index
    %c20 = arith.constant 20 : index
    %14 = vector.load %arg2[%c0_19, %c0_20, %c0_21, %c20] : memref<1x1x8x512xbf16, #tpu.memory_space<vmem>>, vector<1x1x8x384xbf16>
    %15 = vector.shape_cast %14 : vector<1x1x8x384xbf16> to vector<8x384xbf16>
    %c0_22 = arith.constant 0 : index
    %c0_23 = arith.constant 0 : index
    %c0_24 = arith.constant 0 : index
    %c21 = arith.constant 21 : index
    %16 = vector.load %arg2[%c0_22, %c0_23, %c0_24, %c21] : memref<1x1x8x512xbf16, #tpu.memory_space<vmem>>, vector<1x1x8x384xbf16>
    %17 = vector.shape_cast %16 : vector<1x1x8x384xbf16> to vector<8x384xbf16>
    %c0_25 = arith.constant 0 : index
    %c0_26 = arith.constant 0 : index
    %c0_27 = arith.constant 0 : index
    %c22 = arith.constant 22 : index
    %18 = vector.load %arg2[%c0_25, %c0_26, %c0_27, %c22] : memref<1x1x8x512xbf16, #tpu.memory_space<vmem>>, vector<1x1x8x384xbf16>
    %19 = vector.shape_cast %18 : vector<1x1x8x384xbf16> to vector<8x384xbf16>
    %c0_28 = arith.constant 0 : index
    %c0_29 = arith.constant 0 : index
    %c0_30 = arith.constant 0 : index
    %c23 = arith.constant 23 : index
    %20 = vector.load %arg2[%c0_28, %c0_29, %c0_30, %c23] : memref<1x1x8x512xbf16, #tpu.memory_space<vmem>>, vector<1x1x8x384xbf16>
    %21 = vector.shape_cast %20 : vector<1x1x8x384xbf16> to vector<8x384xbf16>
    %c0_31 = arith.constant 0 : index
    %c0_32 = arith.constant 0 : index
    %c0_33 = arith.constant 0 : index
    %c24 = arith.constant 24 : index
    %22 = vector.load %arg2[%c0_31, %c0_32, %c0_33, %c24] : memref<1x1x8x512xbf16, #tpu.memory_space<vmem>>, vector<1x1x8x384xbf16>
    %23 = vector.shape_cast %22 : vector<1x1x8x384xbf16> to vector<8x384xbf16>
    %c0_34 = arith.constant 0 : index
    %c0_35 = arith.constant 0 : index
    %c0_36 = arith.constant 0 : index
    %c40 = arith.constant 40 : index
    %24 = vector.load %arg2[%c0_34, %c0_35, %c0_36, %c40] : memref<1x1x8x512xbf16, #tpu.memory_space<vmem>>, vector<1x1x8x384xbf16>
    %25 = vector.shape_cast %24 : vector<1x1x8x384xbf16> to vector<8x384xbf16>
    %c0_37 = arith.constant 0 : index
    %c0_38 = arith.constant 0 : index
    %c0_39 = arith.constant 0 : index
    %c41 = arith.constant 41 : index
    %26 = vector.load %arg2[%c0_37, %c0_38, %c0_39, %c41] : memref<1x1x8x512xbf16, #tpu.memory_space<vmem>>, vector<1x1x8x384xbf16>
    %27 = vector.shape_cast %26 : vector<1x1x8x384xbf16> to vector<8x384xbf16>
    %c0_40 = arith.constant 0 : index
    %c0_41 = arith.constant 0 : index
    %c0_42 = arith.constant 0 : index
    %c42 = arith.constant 42 : index
    %28 = vector.load %arg2[%c0_40, %c0_41, %c0_42, %c42] : memref<1x1x8x512xbf16, #tpu.memory_space<vmem>>, vector<1x1x8x384xbf16>
    %29 = vector.shape_cast %28 : vector<1x1x8x384xbf16> to vector<8x384xbf16>
    %c0_43 = arith.constant 0 : index
    %c0_44 = arith.constant 0 : index
    %c0_45 = arith.constant 0 : index
    %c43 = arith.constant 43 : index
    %30 = vector.load %arg2[%c0_43, %c0_44, %c0_45, %c43] : memref<1x1x8x512xbf16, #tpu.memory_space<vmem>>, vector<1x1x8x384xbf16>
    %31 = vector.shape_cast %30 : vector<1x1x8x384xbf16> to vector<8x384xbf16>
    %c0_46 = arith.constant 0 : index
    %c0_47 = arith.constant 0 : index
    %c0_48 = arith.constant 0 : index
    %c44 = arith.constant 44 : index
    %32 = vector.load %arg2[%c0_46, %c0_47, %c0_48, %c44] : memref<1x1x8x512xbf16, #tpu.memory_space<vmem>>, vector<1x1x8x384xbf16>
    %33 = vector.shape_cast %32 : vector<1x1x8x384xbf16> to vector<8x384xbf16>
    %c0_49 = arith.constant 0 : index
    %c0_50 = arith.constant 0 : index
    %c0_51 = arith.constant 0 : index
    %c60 = arith.constant 60 : index
    %34 = vector.load %arg2[%c0_49, %c0_50, %c0_51, %c60] : memref<1x1x8x512xbf16, #tpu.memory_space<vmem>>, vector<1x1x8x384xbf16>
    %35 = vector.shape_cast %34 : vector<1x1x8x384xbf16> to vector<8x384xbf16>
    %c0_52 = arith.constant 0 : index
    %c0_53 = arith.constant 0 : index
    %c0_54 = arith.constant 0 : index
    %c61 = arith.constant 61 : index
    %36 = vector.load %arg2[%c0_52, %c0_53, %c0_54, %c61] : memref<1x1x8x512xbf16, #tpu.memory_space<vmem>>, vector<1x1x8x384xbf16>
    %37 = vector.shape_cast %36 : vector<1x1x8x384xbf16> to vector<8x384xbf16>
    %c0_55 = arith.constant 0 : index
    %c0_56 = arith.constant 0 : index
    %c0_57 = arith.constant 0 : index
    %c62 = arith.constant 62 : index
    %38 = vector.load %arg2[%c0_55, %c0_56, %c0_57, %c62] : memref<1x1x8x512xbf16, #tpu.memory_space<vmem>>, vector<1x1x8x384xbf16>
    %39 = vector.shape_cast %38 : vector<1x1x8x384xbf16> to vector<8x384xbf16>
    %c0_58 = arith.constant 0 : index
    %c0_59 = arith.constant 0 : index
    %c0_60 = arith.constant 0 : index
    %c63 = arith.constant 63 : index
    %40 = vector.load %arg2[%c0_58, %c0_59, %c0_60, %c63] : memref<1x1x8x512xbf16, #tpu.memory_space<vmem>>, vector<1x1x8x384xbf16>
    %41 = vector.shape_cast %40 : vector<1x1x8x384xbf16> to vector<8x384xbf16>
    %c0_61 = arith.constant 0 : index
    %c0_62 = arith.constant 0 : index
    %c0_63 = arith.constant 0 : index
    %c64 = arith.constant 64 : index
    %42 = vector.load %arg2[%c0_61, %c0_62, %c0_63, %c64] : memref<1x1x8x512xbf16, #tpu.memory_space<vmem>>, vector<1x1x8x384xbf16>
    %43 = vector.shape_cast %42 : vector<1x1x8x384xbf16> to vector<8x384xbf16>
    %c0_64 = arith.constant 0 : index
    %c0_65 = arith.constant 0 : index
    %c0_66 = arith.constant 0 : index
    %c80 = arith.constant 80 : index
    %44 = vector.load %arg2[%c0_64, %c0_65, %c0_66, %c80] : memref<1x1x8x512xbf16, #tpu.memory_space<vmem>>, vector<1x1x8x384xbf16>
    %45 = vector.shape_cast %44 : vector<1x1x8x384xbf16> to vector<8x384xbf16>
    %c0_67 = arith.constant 0 : index
    %c0_68 = arith.constant 0 : index
    %c0_69 = arith.constant 0 : index
    %c81 = arith.constant 81 : index
    %46 = vector.load %arg2[%c0_67, %c0_68, %c0_69, %c81] : memref<1x1x8x512xbf16, #tpu.memory_space<vmem>>, vector<1x1x8x384xbf16>
    %47 = vector.shape_cast %46 : vector<1x1x8x384xbf16> to vector<8x384xbf16>
    %c0_70 = arith.constant 0 : index
    %c0_71 = arith.constant 0 : index
    %c0_72 = arith.constant 0 : index
    %c82 = arith.constant 82 : index
    %48 = vector.load %arg2[%c0_70, %c0_71, %c0_72, %c82] : memref<1x1x8x512xbf16, #tpu.memory_space<vmem>>, vector<1x1x8x384xbf16>
    %49 = vector.shape_cast %48 : vector<1x1x8x384xbf16> to vector<8x384xbf16>
    %c0_73 = arith.constant 0 : index
    %c0_74 = arith.constant 0 : index
    %c0_75 = arith.constant 0 : index
    %c83 = arith.constant 83 : index
    %50 = vector.load %arg2[%c0_73, %c0_74, %c0_75, %c83] : memref<1x1x8x512xbf16, #tpu.memory_space<vmem>>, vector<1x1x8x384xbf16>
    %51 = vector.shape_cast %50 : vector<1x1x8x384xbf16> to vector<8x384xbf16>
    %c0_76 = arith.constant 0 : index
    %c0_77 = arith.constant 0 : index
    %c0_78 = arith.constant 0 : index
    %c84 = arith.constant 84 : index
    %52 = vector.load %arg2[%c0_76, %c0_77, %c0_78, %c84] : memref<1x1x8x512xbf16, #tpu.memory_space<vmem>>, vector<1x1x8x384xbf16>
    %53 = vector.shape_cast %52 : vector<1x1x8x384xbf16> to vector<8x384xbf16>
    %54 = tpu.concatenate %5, %7, %9, %11, %13, %15, %17, %19, %21, %23, %25, %27, %29, %31, %33, %35 in 0 : vector<8x384xbf16>, vector<8x384xbf16>, vector<8x384xbf16>, vector<8x384xbf16>, vector<8x384xbf16>, vector<8x384xbf16>, vector<8x384xbf16>, vector<8x384xbf16>, vector<8x384xbf16>, vector<8x384xbf16>, vector<8x384xbf16>, vector<8x384xbf16>, vector<8x384xbf16>, vector<8x384xbf16>, vector<8x384xbf16>, vector<8x384xbf16> -> vector<128x384xbf16>
    %55 = tpu.concatenate %37, %39, %41, %43, %45, %47, %49, %51, %53 in 0 : vector<8x384xbf16>, vector<8x384xbf16>, vector<8x384xbf16>, vector<8x384xbf16>, vector<8x384xbf16>, vector<8x384xbf16>, vector<8x384xbf16>, vector<8x384xbf16>, vector<8x384xbf16> -> vector<72x384xbf16>
    %56 = tpu.concatenate %54, %55 in 0 : vector<128x384xbf16>, vector<72x384xbf16> -> vector<200x384xbf16>
    %c0_79 = arith.constant 0 : index
    %c0_80 = arith.constant 0 : index
    %c0_81 = arith.constant 0 : index
    %57 = vector.load %arg7[%c0_79, %c0_80, %c0_81] : memref<5x8x200xbf16, #tpu.memory_space<vmem>>, vector<1x8x200xbf16>
    %58 = vector.shape_cast %57 : vector<1x8x200xbf16> to vector<8x200xbf16>
    %cst_82 = arith.constant dense<0.000000e+00> : vector<8x384xf32>
    %59 = tpu.matmul %58, %56, %cst_82 {dimension_numbers = #tpu.dot_dimension_numbers<[1], [0], [0], [1], [0, 0, 1, 1], [], []>} : vector<8x200xbf16>, vector<200x384xbf16>, vector<8x384xf32> -> vector<8x384xf32>
    %60 = arith.addf %3, %59 : vector<8x384xf32>
    %c0_83 = arith.constant 0 : index
    %c0_84 = arith.constant 0 : index
    %c0_85 = arith.constant 0 : index
    %c0_86 = arith.constant 0 : index
    %61 = vector.load %arg3[%c0_83, %c0_84, %c0_85, %c0_86] : memref<1x1x8x512xbf16, #tpu.memory_space<vmem>>, vector<1x1x8x384xbf16>
    %62 = vector.shape_cast %61 : vector<1x1x8x384xbf16> to vector<8x384xbf16>
    %c0_87 = arith.constant 0 : index
    %c0_88 = arith.constant 0 : index
    %c0_89 = arith.constant 0 : index
    %c1_90 = arith.constant 1 : index
    %63 = vector.load %arg3[%c0_87, %c0_88, %c0_89, %c1_90] : memref<1x1x8x512xbf16, #tpu.memory_space<vmem>>, vector<1x1x8x384xbf16>
    %64 = vector.shape_cast %63 : vector<1x1x8x384xbf16> to vector<8x384xbf16>
    %c0_91 = arith.constant 0 : index
    %c0_92 = arith.constant 0 : index
    %c0_93 = arith.constant 0 : index
    %c2_94 = arith.constant 2 : index
    %65 = vector.load %arg3[%c0_91, %c0_92, %c0_93, %c2_94] : memref<1x1x8x512xbf16, #tpu.memory_space<vmem>>, vector<1x1x8x384xbf16>
    %66 = vector.shape_cast %65 : vector<1x1x8x384xbf16> to vector<8x384xbf16>
    %c0_95 = arith.constant 0 : index
    %c0_96 = arith.constant 0 : index
    %c0_97 = arith.constant 0 : index
    %c3_98 = arith.constant 3 : index
    %67 = vector.load %arg3[%c0_95, %c0_96, %c0_97, %c3_98] : memref<1x1x8x512xbf16, #tpu.memory_space<vmem>>, vector<1x1x8x384xbf16>
    %68 = vector.shape_cast %67 : vector<1x1x8x384xbf16> to vector<8x384xbf16>
    %c0_99 = arith.constant 0 : index
    %c0_100 = arith.constant 0 : index
    %c0_101 = arith.constant 0 : index
    %c4_102 = arith.constant 4 : index
    %69 = vector.load %arg3[%c0_99, %c0_100, %c0_101, %c4_102] : memref<1x1x8x512xbf16, #tpu.memory_space<vmem>>, vector<1x1x8x384xbf16>
    %70 = vector.shape_cast %69 : vector<1x1x8x384xbf16> to vector<8x384xbf16>
    %c0_103 = arith.constant 0 : index
    %c0_104 = arith.constant 0 : index
    %c0_105 = arith.constant 0 : index
    %c20_106 = arith.constant 20 : index
    %71 = vector.load %arg3[%c0_103, %c0_104, %c0_105, %c20_106] : memref<1x1x8x512xbf16, #tpu.memory_space<vmem>>, vector<1x1x8x384xbf16>
    %72 = vector.shape_cast %71 : vector<1x1x8x384xbf16> to vector<8x384xbf16>
    %c0_107 = arith.constant 0 : index
    %c0_108 = arith.constant 0 : index
    %c0_109 = arith.constant 0 : index
    %c21_110 = arith.constant 21 : index
    %73 = vector.load %arg3[%c0_107, %c0_108, %c0_109, %c21_110] : memref<1x1x8x512xbf16, #tpu.memory_space<vmem>>, vector<1x1x8x384xbf16>
    %74 = vector.shape_cast %73 : vector<1x1x8x384xbf16> to vector<8x384xbf16>
    %c0_111 = arith.constant 0 : index
    %c0_112 = arith.constant 0 : index
    %c0_113 = arith.constant 0 : index
    %c22_114 = arith.constant 22 : index
    %75 = vector.load %arg3[%c0_111, %c0_112, %c0_113, %c22_114] : memref<1x1x8x512xbf16, #tpu.memory_space<vmem>>, vector<1x1x8x384xbf16>
    %76 = vector.shape_cast %75 : vector<1x1x8x384xbf16> to vector<8x384xbf16>
    %c0_115 = arith.constant 0 : index
    %c0_116 = arith.constant 0 : index
    %c0_117 = arith.constant 0 : index
    %c23_118 = arith.constant 23 : index
    %77 = vector.load %arg3[%c0_115, %c0_116, %c0_117, %c23_118] : memref<1x1x8x512xbf16, #tpu.memory_space<vmem>>, vector<1x1x8x384xbf16>
    %78 = vector.shape_cast %77 : vector<1x1x8x384xbf16> to vector<8x384xbf16>
    %c0_119 = arith.constant 0 : index
    %c0_120 = arith.constant 0 : index
    %c0_121 = arith.constant 0 : index
    %c24_122 = arith.constant 24 : index
    %79 = vector.load %arg3[%c0_119, %c0_120, %c0_121, %c24_122] : memref<1x1x8x512xbf16, #tpu.memory_space<vmem>>, vector<1x1x8x384xbf16>
    %80 = vector.shape_cast %79 : vector<1x1x8x384xbf16> to vector<8x384xbf16>
    %c0_123 = arith.constant 0 : index
    %c0_124 = arith.constant 0 : index
    %c0_125 = arith.constant 0 : index
    %c40_126 = arith.constant 40 : index
    %81 = vector.load %arg3[%c0_123, %c0_124, %c0_125, %c40_126] : memref<1x1x8x512xbf16, #tpu.memory_space<vmem>>, vector<1x1x8x384xbf16>
    %82 = vector.shape_cast %81 : vector<1x1x8x384xbf16> to vector<8x384xbf16>
    %c0_127 = arith.constant 0 : index
    %c0_128 = arith.constant 0 : index
    %c0_129 = arith.constant 0 : index
    %c41_130 = arith.constant 41 : index
    %83 = vector.load %arg3[%c0_127, %c0_128, %c0_129, %c41_130] : memref<1x1x8x512xbf16, #tpu.memory_space<vmem>>, vector<1x1x8x384xbf16>
    %84 = vector.shape_cast %83 : vector<1x1x8x384xbf16> to vector<8x384xbf16>
    %c0_131 = arith.constant 0 : index
    %c0_132 = arith.constant 0 : index
    %c0_133 = arith.constant 0 : index
    %c42_134 = arith.constant 42 : index
    %85 = vector.load %arg3[%c0_131, %c0_132, %c0_133, %c42_134] : memref<1x1x8x512xbf16, #tpu.memory_space<vmem>>, vector<1x1x8x384xbf16>
    %86 = vector.shape_cast %85 : vector<1x1x8x384xbf16> to vector<8x384xbf16>
    %c0_135 = arith.constant 0 : index
    %c0_136 = arith.constant 0 : index
    %c0_137 = arith.constant 0 : index
    %c43_138 = arith.constant 43 : index
    %87 = vector.load %arg3[%c0_135, %c0_136, %c0_137, %c43_138] : memref<1x1x8x512xbf16, #tpu.memory_space<vmem>>, vector<1x1x8x384xbf16>
    %88 = vector.shape_cast %87 : vector<1x1x8x384xbf16> to vector<8x384xbf16>
    %c0_139 = arith.constant 0 : index
    %c0_140 = arith.constant 0 : index
    %c0_141 = arith.constant 0 : index
    %c44_142 = arith.constant 44 : index
    %89 = vector.load %arg3[%c0_139, %c0_140, %c0_141, %c44_142] : memref<1x1x8x512xbf16, #tpu.memory_space<vmem>>, vector<1x1x8x384xbf16>
    %90 = vector.shape_cast %89 : vector<1x1x8x384xbf16> to vector<8x384xbf16>
    %c0_143 = arith.constant 0 : index
    %c0_144 = arith.constant 0 : index
    %c0_145 = arith.constant 0 : index
    %c60_146 = arith.constant 60 : index
    %91 = vector.load %arg3[%c0_143, %c0_144, %c0_145, %c60_146] : memref<1x1x8x512xbf16, #tpu.memory_space<vmem>>, vector<1x1x8x384xbf16>
    %92 = vector.shape_cast %91 : vector<1x1x8x384xbf16> to vector<8x384xbf16>
    %c0_147 = arith.constant 0 : index
    %c0_148 = arith.constant 0 : index
    %c0_149 = arith.constant 0 : index
    %c61_150 = arith.constant 61 : index
    %93 = vector.load %arg3[%c0_147, %c0_148, %c0_149, %c61_150] : memref<1x1x8x512xbf16, #tpu.memory_space<vmem>>, vector<1x1x8x384xbf16>
    %94 = vector.shape_cast %93 : vector<1x1x8x384xbf16> to vector<8x384xbf16>
    %c0_151 = arith.constant 0 : index
    %c0_152 = arith.constant 0 : index
    %c0_153 = arith.constant 0 : index
    %c62_154 = arith.constant 62 : index
    %95 = vector.load %arg3[%c0_151, %c0_152, %c0_153, %c62_154] : memref<1x1x8x512xbf16, #tpu.memory_space<vmem>>, vector<1x1x8x384xbf16>
    %96 = vector.shape_cast %95 : vector<1x1x8x384xbf16> to vector<8x384xbf16>
    %c0_155 = arith.constant 0 : index
    %c0_156 = arith.constant 0 : index
    %c0_157 = arith.constant 0 : index
    %c63_158 = arith.constant 63 : index
    %97 = vector.load %arg3[%c0_155, %c0_156, %c0_157, %c63_158] : memref<1x1x8x512xbf16, #tpu.memory_space<vmem>>, vector<1x1x8x384xbf16>
    %98 = vector.shape_cast %97 : vector<1x1x8x384xbf16> to vector<8x384xbf16>
    %c0_159 = arith.constant 0 : index
    %c0_160 = arith.constant 0 : index
    %c0_161 = arith.constant 0 : index
    %c64_162 = arith.constant 64 : index
    %99 = vector.load %arg3[%c0_159, %c0_160, %c0_161, %c64_162] : memref<1x1x8x512xbf16, #tpu.memory_space<vmem>>, vector<1x1x8x384xbf16>
    %100 = vector.shape_cast %99 : vector<1x1x8x384xbf16> to vector<8x384xbf16>
    %c0_163 = arith.constant 0 : index
    %c0_164 = arith.constant 0 : index
    %c0_165 = arith.constant 0 : index
    %c80_166 = arith.constant 80 : index
    %101 = vector.load %arg3[%c0_163, %c0_164, %c0_165, %c80_166] : memref<1x1x8x512xbf16, #tpu.memory_space<vmem>>, vector<1x1x8x384xbf16>
    %102 = vector.shape_cast %101 : vector<1x1x8x384xbf16> to vector<8x384xbf16>
    %c0_167 = arith.constant 0 : index
    %c0_168 = arith.constant 0 : index
    %c0_169 = arith.constant 0 : index
    %c81_170 = arith.constant 81 : index
    %103 = vector.load %arg3[%c0_167, %c0_168, %c0_169, %c81_170] : memref<1x1x8x512xbf16, #tpu.memory_space<vmem>>, vector<1x1x8x384xbf16>
    %104 = vector.shape_cast %103 : vector<1x1x8x384xbf16> to vector<8x384xbf16>
    %c0_171 = arith.constant 0 : index
    %c0_172 = arith.constant 0 : index
    %c0_173 = arith.constant 0 : index
    %c82_174 = arith.constant 82 : index
    %105 = vector.load %arg3[%c0_171, %c0_172, %c0_173, %c82_174] : memref<1x1x8x512xbf16, #tpu.memory_space<vmem>>, vector<1x1x8x384xbf16>
    %106 = vector.shape_cast %105 : vector<1x1x8x384xbf16> to vector<8x384xbf16>
    %c0_175 = arith.constant 0 : index
    %c0_176 = arith.constant 0 : index
    %c0_177 = arith.constant 0 : index
    %c83_178 = arith.constant 83 : index
    %107 = vector.load %arg3[%c0_175, %c0_176, %c0_177, %c83_178] : memref<1x1x8x512xbf16, #tpu.memory_space<vmem>>, vector<1x1x8x384xbf16>
    %108 = vector.shape_cast %107 : vector<1x1x8x384xbf16> to vector<8x384xbf16>
    %c0_179 = arith.constant 0 : index
    %c0_180 = arith.constant 0 : index
    %c0_181 = arith.constant 0 : index
    %c84_182 = arith.constant 84 : index
    %109 = vector.load %arg3[%c0_179, %c0_180, %c0_181, %c84_182] : memref<1x1x8x512xbf16, #tpu.memory_space<vmem>>, vector<1x1x8x384xbf16>
    %110 = vector.shape_cast %109 : vector<1x1x8x384xbf16> to vector<8x384xbf16>
    %111 = tpu.concatenate %62, %64, %66, %68, %70, %72, %74, %76, %78, %80, %82, %84, %86, %88, %90, %92 in 0 : vector<8x384xbf16>, vector<8x384xbf16>, vector<8x384xbf16>, vector<8x384xbf16>, vector<8x384xbf16>, vector<8x384xbf16>, vector<8x384xbf16>, vector<8x384xbf16>, vector<8x384xbf16>, vector<8x384xbf16>, vector<8x384xbf16>, vector<8x384xbf16>, vector<8x384xbf16>, vector<8x384xbf16>, vector<8x384xbf16>, vector<8x384xbf16> -> vector<128x384xbf16>
    %112 = tpu.concatenate %94, %96, %98, %100, %102, %104, %106, %108, %110 in 0 : vector<8x384xbf16>, vector<8x384xbf16>, vector<8x384xbf16>, vector<8x384xbf16>, vector<8x384xbf16>, vector<8x384xbf16>, vector<8x384xbf16>, vector<8x384xbf16>, vector<8x384xbf16> -> vector<72x384xbf16>
    %113 = tpu.concatenate %111, %112 in 0 : vector<128x384xbf16>, vector<72x384xbf16> -> vector<200x384xbf16>
    %c1_183 = arith.constant 1 : index
    %c0_184 = arith.constant 0 : index
    %c0_185 = arith.constant 0 : index
    %114 = vector.load %arg7[%c1_183, %c0_184, %c0_185] : memref<5x8x200xbf16, #tpu.memory_space<vmem>>, vector<1x8x200xbf16>
    %115 = vector.shape_cast %114 : vector<1x8x200xbf16> to vector<8x200xbf16>
    %cst_186 = arith.constant dense<0.000000e+00> : vector<8x384xf32>
    %116 = tpu.matmul %115, %113, %cst_186 {dimension_numbers = #tpu.dot_dimension_numbers<[1], [0], [0], [1], [0, 0, 1, 1], [], []>} : vector<8x200xbf16>, vector<200x384xbf16>, vector<8x384xf32> -> vector<8x384xf32>
    %117 = arith.addf %60, %116 : vector<8x384xf32>
    %c0_187 = arith.constant 0 : index
    %c0_188 = arith.constant 0 : index
    %c0_189 = arith.constant 0 : index
    %c0_190 = arith.constant 0 : index
    %118 = vector.load %arg4[%c0_187, %c0_188, %c0_189, %c0_190] : memref<1x1x8x512xbf16, #tpu.memory_space<vmem>>, vector<1x1x8x384xbf16>
    %119 = vector.shape_cast %118 : vector<1x1x8x384xbf16> to vector<8x384xbf16>
    %c0_191 = arith.constant 0 : index
    %c0_192 = arith.constant 0 : index
    %c0_193 = arith.constant 0 : index
    %c1_194 = arith.constant 1 : index
    %120 = vector.load %arg4[%c0_191, %c0_192, %c0_193, %c1_194] : memref<1x1x8x512xbf16, #tpu.memory_space<vmem>>, vector<1x1x8x384xbf16>
    %121 = vector.shape_cast %120 : vector<1x1x8x384xbf16> to vector<8x384xbf16>
    %c0_195 = arith.constant 0 : index
    %c0_196 = arith.constant 0 : index
    %c0_197 = arith.constant 0 : index
    %c2_198 = arith.constant 2 : index
    %122 = vector.load %arg4[%c0_195, %c0_196, %c0_197, %c2_198] : memref<1x1x8x512xbf16, #tpu.memory_space<vmem>>, vector<1x1x8x384xbf16>
    %123 = vector.shape_cast %122 : vector<1x1x8x384xbf16> to vector<8x384xbf16>
    %c0_199 = arith.constant 0 : index
    %c0_200 = arith.constant 0 : index
    %c0_201 = arith.constant 0 : index
    %c3_202 = arith.constant 3 : index
    %124 = vector.load %arg4[%c0_199, %c0_200, %c0_201, %c3_202] : memref<1x1x8x512xbf16, #tpu.memory_space<vmem>>, vector<1x1x8x384xbf16>
    %125 = vector.shape_cast %124 : vector<1x1x8x384xbf16> to vector<8x384xbf16>
    %c0_203 = arith.constant 0 : index
    %c0_204 = arith.constant 0 : index
    %c0_205 = arith.constant 0 : index
    %c4_206 = arith.constant 4 : index
    %126 = vector.load %arg4[%c0_203, %c0_204, %c0_205, %c4_206] : memref<1x1x8x512xbf16, #tpu.memory_space<vmem>>, vector<1x1x8x384xbf16>
    %127 = vector.shape_cast %126 : vector<1x1x8x384xbf16> to vector<8x384xbf16>
    %c0_207 = arith.constant 0 : index
    %c0_208 = arith.constant 0 : index
    %c0_209 = arith.constant 0 : index
    %c20_210 = arith.constant 20 : index
    %128 = vector.load %arg4[%c0_207, %c0_208, %c0_209, %c20_210] : memref<1x1x8x512xbf16, #tpu.memory_space<vmem>>, vector<1x1x8x384xbf16>
    %129 = vector.shape_cast %128 : vector<1x1x8x384xbf16> to vector<8x384xbf16>
    %c0_211 = arith.constant 0 : index
    %c0_212 = arith.constant 0 : index
    %c0_213 = arith.constant 0 : index
    %c21_214 = arith.constant 21 : index
    %130 = vector.load %arg4[%c0_211, %c0_212, %c0_213, %c21_214] : memref<1x1x8x512xbf16, #tpu.memory_space<vmem>>, vector<1x1x8x384xbf16>
    %131 = vector.shape_cast %130 : vector<1x1x8x384xbf16> to vector<8x384xbf16>
    %c0_215 = arith.constant 0 : index
    %c0_216 = arith.constant 0 : index
    %c0_217 = arith.constant 0 : index
    %c22_218 = arith.constant 22 : index
    %132 = vector.load %arg4[%c0_215, %c0_216, %c0_217, %c22_218] : memref<1x1x8x512xbf16, #tpu.memory_space<vmem>>, vector<1x1x8x384xbf16>
    %133 = vector.shape_cast %132 : vector<1x1x8x384xbf16> to vector<8x384xbf16>
    %c0_219 = arith.constant 0 : index
    %c0_220 = arith.constant 0 : index
    %c0_221 = arith.constant 0 : index
    %c23_222 = arith.constant 23 : index
    %134 = vector.load %arg4[%c0_219, %c0_220, %c0_221, %c23_222] : memref<1x1x8x512xbf16, #tpu.memory_space<vmem>>, vector<1x1x8x384xbf16>
    %135 = vector.shape_cast %134 : vector<1x1x8x384xbf16> to vector<8x384xbf16>
    %c0_223 = arith.constant 0 : index
    %c0_224 = arith.constant 0 : index
    %c0_225 = arith.constant 0 : index
    %c24_226 = arith.constant 24 : index
    %136 = vector.load %arg4[%c0_223, %c0_224, %c0_225, %c24_226] : memref<1x1x8x512xbf16, #tpu.memory_space<vmem>>, vector<1x1x8x384xbf16>
    %137 = vector.shape_cast %136 : vector<1x1x8x384xbf16> to vector<8x384xbf16>
    %c0_227 = arith.constant 0 : index
    %c0_228 = arith.constant 0 : index
    %c0_229 = arith.constant 0 : index
    %c40_230 = arith.constant 40 : index
    %138 = vector.load %arg4[%c0_227, %c0_228, %c0_229, %c40_230] : memref<1x1x8x512xbf16, #tpu.memory_space<vmem>>, vector<1x1x8x384xbf16>
    %139 = vector.shape_cast %138 : vector<1x1x8x384xbf16> to vector<8x384xbf16>
    %c0_231 = arith.constant 0 : index
    %c0_232 = arith.constant 0 : index
    %c0_233 = arith.constant 0 : index
    %c41_234 = arith.constant 41 : index
    %140 = vector.load %arg4[%c0_231, %c0_232, %c0_233, %c41_234] : memref<1x1x8x512xbf16, #tpu.memory_space<vmem>>, vector<1x1x8x384xbf16>
    %141 = vector.shape_cast %140 : vector<1x1x8x384xbf16> to vector<8x384xbf16>
    %c0_235 = arith.constant 0 : index
    %c0_236 = arith.constant 0 : index
    %c0_237 = arith.constant 0 : index
    %c42_238 = arith.constant 42 : index
    %142 = vector.load %arg4[%c0_235, %c0_236, %c0_237, %c42_238] : memref<1x1x8x512xbf16, #tpu.memory_space<vmem>>, vector<1x1x8x384xbf16>
    %143 = vector.shape_cast %142 : vector<1x1x8x384xbf16> to vector<8x384xbf16>
    %c0_239 = arith.constant 0 : index
    %c0_240 = arith.constant 0 : index
    %c0_241 = arith.constant 0 : index
    %c43_242 = arith.constant 43 : index
    %144 = vector.load %arg4[%c0_239, %c0_240, %c0_241, %c43_242] : memref<1x1x8x512xbf16, #tpu.memory_space<vmem>>, vector<1x1x8x384xbf16>
    %145 = vector.shape_cast %144 : vector<1x1x8x384xbf16> to vector<8x384xbf16>
    %c0_243 = arith.constant 0 : index
    %c0_244 = arith.constant 0 : index
    %c0_245 = arith.constant 0 : index
    %c44_246 = arith.constant 44 : index
    %146 = vector.load %arg4[%c0_243, %c0_244, %c0_245, %c44_246] : memref<1x1x8x512xbf16, #tpu.memory_space<vmem>>, vector<1x1x8x384xbf16>
    %147 = vector.shape_cast %146 : vector<1x1x8x384xbf16> to vector<8x384xbf16>
    %c0_247 = arith.constant 0 : index
    %c0_248 = arith.constant 0 : index
    %c0_249 = arith.constant 0 : index
    %c60_250 = arith.constant 60 : index
    %148 = vector.load %arg4[%c0_247, %c0_248, %c0_249, %c60_250] : memref<1x1x8x512xbf16, #tpu.memory_space<vmem>>, vector<1x1x8x384xbf16>
    %149 = vector.shape_cast %148 : vector<1x1x8x384xbf16> to vector<8x384xbf16>
    %c0_251 = arith.constant 0 : index
    %c0_252 = arith.constant 0 : index
    %c0_253 = arith.constant 0 : index
    %c61_254 = arith.constant 61 : index
    %150 = vector.load %arg4[%c0_251, %c0_252, %c0_253, %c61_254] : memref<1x1x8x512xbf16, #tpu.memory_space<vmem>>, vector<1x1x8x384xbf16>
    %151 = vector.shape_cast %150 : vector<1x1x8x384xbf16> to vector<8x384xbf16>
    %c0_255 = arith.constant 0 : index
    %c0_256 = arith.constant 0 : index
    %c0_257 = arith.constant 0 : index
    %c62_258 = arith.constant 62 : index
    %152 = vector.load %arg4[%c0_255, %c0_256, %c0_257, %c62_258] : memref<1x1x8x512xbf16, #tpu.memory_space<vmem>>, vector<1x1x8x384xbf16>
    %153 = vector.shape_cast %152 : vector<1x1x8x384xbf16> to vector<8x384xbf16>
    %c0_259 = arith.constant 0 : index
    %c0_260 = arith.constant 0 : index
    %c0_261 = arith.constant 0 : index
    %c63_262 = arith.constant 63 : index
    %154 = vector.load %arg4[%c0_259, %c0_260, %c0_261, %c63_262] : memref<1x1x8x512xbf16, #tpu.memory_space<vmem>>, vector<1x1x8x384xbf16>
    %155 = vector.shape_cast %154 : vector<1x1x8x384xbf16> to vector<8x384xbf16>
    %c0_263 = arith.constant 0 : index
    %c0_264 = arith.constant 0 : index
    %c0_265 = arith.constant 0 : index
    %c64_266 = arith.constant 64 : index
    %156 = vector.load %arg4[%c0_263, %c0_264, %c0_265, %c64_266] : memref<1x1x8x512xbf16, #tpu.memory_space<vmem>>, vector<1x1x8x384xbf16>
    %157 = vector.shape_cast %156 : vector<1x1x8x384xbf16> to vector<8x384xbf16>
    %c0_267 = arith.constant 0 : index
    %c0_268 = arith.constant 0 : index
    %c0_269 = arith.constant 0 : index
    %c80_270 = arith.constant 80 : index
    %158 = vector.load %arg4[%c0_267, %c0_268, %c0_269, %c80_270] : memref<1x1x8x512xbf16, #tpu.memory_space<vmem>>, vector<1x1x8x384xbf16>
    %159 = vector.shape_cast %158 : vector<1x1x8x384xbf16> to vector<8x384xbf16>
    %c0_271 = arith.constant 0 : index
    %c0_272 = arith.constant 0 : index
    %c0_273 = arith.constant 0 : index
    %c81_274 = arith.constant 81 : index
    %160 = vector.load %arg4[%c0_271, %c0_272, %c0_273, %c81_274] : memref<1x1x8x512xbf16, #tpu.memory_space<vmem>>, vector<1x1x8x384xbf16>
    %161 = vector.shape_cast %160 : vector<1x1x8x384xbf16> to vector<8x384xbf16>
    %c0_275 = arith.constant 0 : index
    %c0_276 = arith.constant 0 : index
    %c0_277 = arith.constant 0 : index
    %c82_278 = arith.constant 82 : index
    %162 = vector.load %arg4[%c0_275, %c0_276, %c0_277, %c82_278] : memref<1x1x8x512xbf16, #tpu.memory_space<vmem>>, vector<1x1x8x384xbf16>
    %163 = vector.shape_cast %162 : vector<1x1x8x384xbf16> to vector<8x384xbf16>
    %c0_279 = arith.constant 0 : index
    %c0_280 = arith.constant 0 : index
    %c0_281 = arith.constant 0 : index
    %c83_282 = arith.constant 83 : index
    %164 = vector.load %arg4[%c0_279, %c0_280, %c0_281, %c83_282] : memref<1x1x8x512xbf16, #tpu.memory_space<vmem>>, vector<1x1x8x384xbf16>
    %165 = vector.shape_cast %164 : vector<1x1x8x384xbf16> to vector<8x384xbf16>
    %c0_283 = arith.constant 0 : index
    %c0_284 = arith.constant 0 : index
    %c0_285 = arith.constant 0 : index
    %c84_286 = arith.constant 84 : index
    %166 = vector.load %arg4[%c0_283, %c0_284, %c0_285, %c84_286] : memref<1x1x8x512xbf16, #tpu.memory_space<vmem>>, vector<1x1x8x384xbf16>
    %167 = vector.shape_cast %166 : vector<1x1x8x384xbf16> to vector<8x384xbf16>
    %168 = tpu.concatenate %119, %121, %123, %125, %127, %129, %131, %133, %135, %137, %139, %141, %143, %145, %147, %149 in 0 : vector<8x384xbf16>, vector<8x384xbf16>, vector<8x384xbf16>, vector<8x384xbf16>, vector<8x384xbf16>, vector<8x384xbf16>, vector<8x384xbf16>, vector<8x384xbf16>, vector<8x384xbf16>, vector<8x384xbf16>, vector<8x384xbf16>, vector<8x384xbf16>, vector<8x384xbf16>, vector<8x384xbf16>, vector<8x384xbf16>, vector<8x384xbf16> -> vector<128x384xbf16>
    %169 = tpu.concatenate %151, %153, %155, %157, %159, %161, %163, %165, %167 in 0 : vector<8x384xbf16>, vector<8x384xbf16>, vector<8x384xbf16>, vector<8x384xbf16>, vector<8x384xbf16>, vector<8x384xbf16>, vector<8x384xbf16>, vector<8x384xbf16>, vector<8x384xbf16> -> vector<72x384xbf16>
    %170 = tpu.concatenate %168, %169 in 0 : vector<128x384xbf16>, vector<72x384xbf16> -> vector<200x384xbf16>
    %c2_287 = arith.constant 2 : index
    %c0_288 = arith.constant 0 : index
    %c0_289 = arith.constant 0 : index
    %171 = vector.load %arg7[%c2_287, %c0_288, %c0_289] : memref<5x8x200xbf16, #tpu.memory_space<vmem>>, vector<1x8x200xbf16>
    %172 = vector.shape_cast %171 : vector<1x8x200xbf16> to vector<8x200xbf16>
    %cst_290 = arith.constant dense<0.000000e+00> : vector<8x384xf32>
    %173 = tpu.matmul %172, %170, %cst_290 {dimension_numbers = #tpu.dot_dimension_numbers<[1], [0], [0], [1], [0, 0, 1, 1], [], []>} : vector<8x200xbf16>, vector<200x384xbf16>, vector<8x384xf32> -> vector<8x384xf32>
    %174 = arith.addf %117, %173 : vector<8x384xf32>
    %c0_291 = arith.constant 0 : index
    %c0_292 = arith.constant 0 : index
    %c0_293 = arith.constant 0 : index
    %c0_294 = arith.constant 0 : index
    %175 = vector.load %arg5[%c0_291, %c0_292, %c0_293, %c0_294] : memref<1x1x8x512xbf16, #tpu.memory_space<vmem>>, vector<1x1x8x384xbf16>
    %176 = vector.shape_cast %175 : vector<1x1x8x384xbf16> to vector<8x384xbf16>
    %c0_295 = arith.constant 0 : index
    %c0_296 = arith.constant 0 : index
    %c0_297 = arith.constant 0 : index
    %c1_298 = arith.constant 1 : index
    %177 = vector.load %arg5[%c0_295, %c0_296, %c0_297, %c1_298] : memref<1x1x8x512xbf16, #tpu.memory_space<vmem>>, vector<1x1x8x384xbf16>
    %178 = vector.shape_cast %177 : vector<1x1x8x384xbf16> to vector<8x384xbf16>
    %c0_299 = arith.constant 0 : index
    %c0_300 = arith.constant 0 : index
    %c0_301 = arith.constant 0 : index
    %c2_302 = arith.constant 2 : index
    %179 = vector.load %arg5[%c0_299, %c0_300, %c0_301, %c2_302] : memref<1x1x8x512xbf16, #tpu.memory_space<vmem>>, vector<1x1x8x384xbf16>
    %180 = vector.shape_cast %179 : vector<1x1x8x384xbf16> to vector<8x384xbf16>
    %c0_303 = arith.constant 0 : index
    %c0_304 = arith.constant 0 : index
    %c0_305 = arith.constant 0 : index
    %c3_306 = arith.constant 3 : index
    %181 = vector.load %arg5[%c0_303, %c0_304, %c0_305, %c3_306] : memref<1x1x8x512xbf16, #tpu.memory_space<vmem>>, vector<1x1x8x384xbf16>
    %182 = vector.shape_cast %181 : vector<1x1x8x384xbf16> to vector<8x384xbf16>
    %c0_307 = arith.constant 0 : index
    %c0_308 = arith.constant 0 : index
    %c0_309 = arith.constant 0 : index
    %c4_310 = arith.constant 4 : index
    %183 = vector.load %arg5[%c0_307, %c0_308, %c0_309, %c4_310] : memref<1x1x8x512xbf16, #tpu.memory_space<vmem>>, vector<1x1x8x384xbf16>
    %184 = vector.shape_cast %183 : vector<1x1x8x384xbf16> to vector<8x384xbf16>
    %c0_311 = arith.constant 0 : index
    %c0_312 = arith.constant 0 : index
    %c0_313 = arith.constant 0 : index
    %c20_314 = arith.constant 20 : index
    %185 = vector.load %arg5[%c0_311, %c0_312, %c0_313, %c20_314] : memref<1x1x8x512xbf16, #tpu.memory_space<vmem>>, vector<1x1x8x384xbf16>
    %186 = vector.shape_cast %185 : vector<1x1x8x384xbf16> to vector<8x384xbf16>
    %c0_315 = arith.constant 0 : index
    %c0_316 = arith.constant 0 : index
    %c0_317 = arith.constant 0 : index
    %c21_318 = arith.constant 21 : index
    %187 = vector.load %arg5[%c0_315, %c0_316, %c0_317, %c21_318] : memref<1x1x8x512xbf16, #tpu.memory_space<vmem>>, vector<1x1x8x384xbf16>
    %188 = vector.shape_cast %187 : vector<1x1x8x384xbf16> to vector<8x384xbf16>
    %c0_319 = arith.constant 0 : index
    %c0_320 = arith.constant 0 : index
    %c0_321 = arith.constant 0 : index
    %c22_322 = arith.constant 22 : index
    %189 = vector.load %arg5[%c0_319, %c0_320, %c0_321, %c22_322] : memref<1x1x8x512xbf16, #tpu.memory_space<vmem>>, vector<1x1x8x384xbf16>
    %190 = vector.shape_cast %189 : vector<1x1x8x384xbf16> to vector<8x384xbf16>
    %c0_323 = arith.constant 0 : index
    %c0_324 = arith.constant 0 : index
    %c0_325 = arith.constant 0 : index
    %c23_326 = arith.constant 23 : index
    %191 = vector.load %arg5[%c0_323, %c0_324, %c0_325, %c23_326] : memref<1x1x8x512xbf16, #tpu.memory_space<vmem>>, vector<1x1x8x384xbf16>
    %192 = vector.shape_cast %191 : vector<1x1x8x384xbf16> to vector<8x384xbf16>
    %c0_327 = arith.constant 0 : index
    %c0_328 = arith.constant 0 : index
    %c0_329 = arith.constant 0 : index
    %c24_330 = arith.constant 24 : index
    %193 = vector.load %arg5[%c0_327, %c0_328, %c0_329, %c24_330] : memref<1x1x8x512xbf16, #tpu.memory_space<vmem>>, vector<1x1x8x384xbf16>
    %194 = vector.shape_cast %193 : vector<1x1x8x384xbf16> to vector<8x384xbf16>
    %c0_331 = arith.constant 0 : index
    %c0_332 = arith.constant 0 : index
    %c0_333 = arith.constant 0 : index
    %c40_334 = arith.constant 40 : index
    %195 = vector.load %arg5[%c0_331, %c0_332, %c0_333, %c40_334] : memref<1x1x8x512xbf16, #tpu.memory_space<vmem>>, vector<1x1x8x384xbf16>
    %196 = vector.shape_cast %195 : vector<1x1x8x384xbf16> to vector<8x384xbf16>
    %c0_335 = arith.constant 0 : index
    %c0_336 = arith.constant 0 : index
    %c0_337 = arith.constant 0 : index
    %c41_338 = arith.constant 41 : index
    %197 = vector.load %arg5[%c0_335, %c0_336, %c0_337, %c41_338] : memref<1x1x8x512xbf16, #tpu.memory_space<vmem>>, vector<1x1x8x384xbf16>
    %198 = vector.shape_cast %197 : vector<1x1x8x384xbf16> to vector<8x384xbf16>
    %c0_339 = arith.constant 0 : index
    %c0_340 = arith.constant 0 : index
    %c0_341 = arith.constant 0 : index
    %c42_342 = arith.constant 42 : index
    %199 = vector.load %arg5[%c0_339, %c0_340, %c0_341, %c42_342] : memref<1x1x8x512xbf16, #tpu.memory_space<vmem>>, vector<1x1x8x384xbf16>
    %200 = vector.shape_cast %199 : vector<1x1x8x384xbf16> to vector<8x384xbf16>
    %c0_343 = arith.constant 0 : index
    %c0_344 = arith.constant 0 : index
    %c0_345 = arith.constant 0 : index
    %c43_346 = arith.constant 43 : index
    %201 = vector.load %arg5[%c0_343, %c0_344, %c0_345, %c43_346] : memref<1x1x8x512xbf16, #tpu.memory_space<vmem>>, vector<1x1x8x384xbf16>
    %202 = vector.shape_cast %201 : vector<1x1x8x384xbf16> to vector<8x384xbf16>
    %c0_347 = arith.constant 0 : index
    %c0_348 = arith.constant 0 : index
    %c0_349 = arith.constant 0 : index
    %c44_350 = arith.constant 44 : index
    %203 = vector.load %arg5[%c0_347, %c0_348, %c0_349, %c44_350] : memref<1x1x8x512xbf16, #tpu.memory_space<vmem>>, vector<1x1x8x384xbf16>
    %204 = vector.shape_cast %203 : vector<1x1x8x384xbf16> to vector<8x384xbf16>
    %c0_351 = arith.constant 0 : index
    %c0_352 = arith.constant 0 : index
    %c0_353 = arith.constant 0 : index
    %c60_354 = arith.constant 60 : index
    %205 = vector.load %arg5[%c0_351, %c0_352, %c0_353, %c60_354] : memref<1x1x8x512xbf16, #tpu.memory_space<vmem>>, vector<1x1x8x384xbf16>
    %206 = vector.shape_cast %205 : vector<1x1x8x384xbf16> to vector<8x384xbf16>
    %c0_355 = arith.constant 0 : index
    %c0_356 = arith.constant 0 : index
    %c0_357 = arith.constant 0 : index
    %c61_358 = arith.constant 61 : index
    %207 = vector.load %arg5[%c0_355, %c0_356, %c0_357, %c61_358] : memref<1x1x8x512xbf16, #tpu.memory_space<vmem>>, vector<1x1x8x384xbf16>
    %208 = vector.shape_cast %207 : vector<1x1x8x384xbf16> to vector<8x384xbf16>
    %c0_359 = arith.constant 0 : index
    %c0_360 = arith.constant 0 : index
    %c0_361 = arith.constant 0 : index
    %c62_362 = arith.constant 62 : index
    %209 = vector.load %arg5[%c0_359, %c0_360, %c0_361, %c62_362] : memref<1x1x8x512xbf16, #tpu.memory_space<vmem>>, vector<1x1x8x384xbf16>
    %210 = vector.shape_cast %209 : vector<1x1x8x384xbf16> to vector<8x384xbf16>
    %c0_363 = arith.constant 0 : index
    %c0_364 = arith.constant 0 : index
    %c0_365 = arith.constant 0 : index
    %c63_366 = arith.constant 63 : index
    %211 = vector.load %arg5[%c0_363, %c0_364, %c0_365, %c63_366] : memref<1x1x8x512xbf16, #tpu.memory_space<vmem>>, vector<1x1x8x384xbf16>
    %212 = vector.shape_cast %211 : vector<1x1x8x384xbf16> to vector<8x384xbf16>
    %c0_367 = arith.constant 0 : index
    %c0_368 = arith.constant 0 : index
    %c0_369 = arith.constant 0 : index
    %c64_370 = arith.constant 64 : index
    %213 = vector.load %arg5[%c0_367, %c0_368, %c0_369, %c64_370] : memref<1x1x8x512xbf16, #tpu.memory_space<vmem>>, vector<1x1x8x384xbf16>
    %214 = vector.shape_cast %213 : vector<1x1x8x384xbf16> to vector<8x384xbf16>
    %c0_371 = arith.constant 0 : index
    %c0_372 = arith.constant 0 : index
    %c0_373 = arith.constant 0 : index
    %c80_374 = arith.constant 80 : index
    %215 = vector.load %arg5[%c0_371, %c0_372, %c0_373, %c80_374] : memref<1x1x8x512xbf16, #tpu.memory_space<vmem>>, vector<1x1x8x384xbf16>
    %216 = vector.shape_cast %215 : vector<1x1x8x384xbf16> to vector<8x384xbf16>
    %c0_375 = arith.constant 0 : index
    %c0_376 = arith.constant 0 : index
    %c0_377 = arith.constant 0 : index
    %c81_378 = arith.constant 81 : index
    %217 = vector.load %arg5[%c0_375, %c0_376, %c0_377, %c81_378] : memref<1x1x8x512xbf16, #tpu.memory_space<vmem>>, vector<1x1x8x384xbf16>
    %218 = vector.shape_cast %217 : vector<1x1x8x384xbf16> to vector<8x384xbf16>
    %c0_379 = arith.constant 0 : index
    %c0_380 = arith.constant 0 : index
    %c0_381 = arith.constant 0 : index
    %c82_382 = arith.constant 82 : index
    %219 = vector.load %arg5[%c0_379, %c0_380, %c0_381, %c82_382] : memref<1x1x8x512xbf16, #tpu.memory_space<vmem>>, vector<1x1x8x384xbf16>
    %220 = vector.shape_cast %219 : vector<1x1x8x384xbf16> to vector<8x384xbf16>
    %c0_383 = arith.constant 0 : index
    %c0_384 = arith.constant 0 : index
    %c0_385 = arith.constant 0 : index
    %c83_386 = arith.constant 83 : index
    %221 = vector.load %arg5[%c0_383, %c0_384, %c0_385, %c83_386] : memref<1x1x8x512xbf16, #tpu.memory_space<vmem>>, vector<1x1x8x384xbf16>
    %222 = vector.shape_cast %221 : vector<1x1x8x384xbf16> to vector<8x384xbf16>
    %c0_387 = arith.constant 0 : index
    %c0_388 = arith.constant 0 : index
    %c0_389 = arith.constant 0 : index
    %c84_390 = arith.constant 84 : index
    %223 = vector.load %arg5[%c0_387, %c0_388, %c0_389, %c84_390] : memref<1x1x8x512xbf16, #tpu.memory_space<vmem>>, vector<1x1x8x384xbf16>
    %224 = vector.shape_cast %223 : vector<1x1x8x384xbf16> to vector<8x384xbf16>
    %225 = tpu.concatenate %176, %178, %180, %182, %184, %186, %188, %190, %192, %194, %196, %198, %200, %202, %204, %206 in 0 : vector<8x384xbf16>, vector<8x384xbf16>, vector<8x384xbf16>, vector<8x384xbf16>, vector<8x384xbf16>, vector<8x384xbf16>, vector<8x384xbf16>, vector<8x384xbf16>, vector<8x384xbf16>, vector<8x384xbf16>, vector<8x384xbf16>, vector<8x384xbf16>, vector<8x384xbf16>, vector<8x384xbf16>, vector<8x384xbf16>, vector<8x384xbf16> -> vector<128x384xbf16>
    %226 = tpu.concatenate %208, %210, %212, %214, %216, %218, %220, %222, %224 in 0 : vector<8x384xbf16>, vector<8x384xbf16>, vector<8x384xbf16>, vector<8x384xbf16>, vector<8x384xbf16>, vector<8x384xbf16>, vector<8x384xbf16>, vector<8x384xbf16>, vector<8x384xbf16> -> vector<72x384xbf16>
    %227 = tpu.concatenate %225, %226 in 0 : vector<128x384xbf16>, vector<72x384xbf16> -> vector<200x384xbf16>
    %c3_391 = arith.constant 3 : index
    %c0_392 = arith.constant 0 : index
    %c0_393 = arith.constant 0 : index
    %228 = vector.load %arg7[%c3_391, %c0_392, %c0_393] : memref<5x8x200xbf16, #tpu.memory_space<vmem>>, vector<1x8x200xbf16>
    %229 = vector.shape_cast %228 : vector<1x8x200xbf16> to vector<8x200xbf16>
    %cst_394 = arith.constant dense<0.000000e+00> : vector<8x384xf32>
    %230 = tpu.matmul %229, %227, %cst_394 {dimension_numbers = #tpu.dot_dimension_numbers<[1], [0], [0], [1], [0, 0, 1, 1], [], []>} : vector<8x200xbf16>, vector<200x384xbf16>, vector<8x384xf32> -> vector<8x384xf32>
    %231 = arith.addf %174, %230 : vector<8x384xf32>
    %c0_395 = arith.constant 0 : index
    %c0_396 = arith.constant 0 : index
    %c0_397 = arith.constant 0 : index
    %c0_398 = arith.constant 0 : index
    %232 = vector.load %arg6[%c0_395, %c0_396, %c0_397, %c0_398] : memref<1x1x8x512xbf16, #tpu.memory_space<vmem>>, vector<1x1x8x384xbf16>
    %233 = vector.shape_cast %232 : vector<1x1x8x384xbf16> to vector<8x384xbf16>
    %c0_399 = arith.constant 0 : index
    %c0_400 = arith.constant 0 : index
    %c0_401 = arith.constant 0 : index
    %c1_402 = arith.constant 1 : index
    %234 = vector.load %arg6[%c0_399, %c0_400, %c0_401, %c1_402] : memref<1x1x8x512xbf16, #tpu.memory_space<vmem>>, vector<1x1x8x384xbf16>
    %235 = vector.shape_cast %234 : vector<1x1x8x384xbf16> to vector<8x384xbf16>
    %c0_403 = arith.constant 0 : index
    %c0_404 = arith.constant 0 : index
    %c0_405 = arith.constant 0 : index
    %c2_406 = arith.constant 2 : index
    %236 = vector.load %arg6[%c0_403, %c0_404, %c0_405, %c2_406] : memref<1x1x8x512xbf16, #tpu.memory_space<vmem>>, vector<1x1x8x384xbf16>
    %237 = vector.shape_cast %236 : vector<1x1x8x384xbf16> to vector<8x384xbf16>
    %c0_407 = arith.constant 0 : index
    %c0_408 = arith.constant 0 : index
    %c0_409 = arith.constant 0 : index
    %c3_410 = arith.constant 3 : index
    %238 = vector.load %arg6[%c0_407, %c0_408, %c0_409, %c3_410] : memref<1x1x8x512xbf16, #tpu.memory_space<vmem>>, vector<1x1x8x384xbf16>
    %239 = vector.shape_cast %238 : vector<1x1x8x384xbf16> to vector<8x384xbf16>
    %c0_411 = arith.constant 0 : index
    %c0_412 = arith.constant 0 : index
    %c0_413 = arith.constant 0 : index
    %c4_414 = arith.constant 4 : index
    %240 = vector.load %arg6[%c0_411, %c0_412, %c0_413, %c4_414] : memref<1x1x8x512xbf16, #tpu.memory_space<vmem>>, vector<1x1x8x384xbf16>
    %241 = vector.shape_cast %240 : vector<1x1x8x384xbf16> to vector<8x384xbf16>
    %c0_415 = arith.constant 0 : index
    %c0_416 = arith.constant 0 : index
    %c0_417 = arith.constant 0 : index
    %c20_418 = arith.constant 20 : index
    %242 = vector.load %arg6[%c0_415, %c0_416, %c0_417, %c20_418] : memref<1x1x8x512xbf16, #tpu.memory_space<vmem>>, vector<1x1x8x384xbf16>
    %243 = vector.shape_cast %242 : vector<1x1x8x384xbf16> to vector<8x384xbf16>
    %c0_419 = arith.constant 0 : index
    %c0_420 = arith.constant 0 : index
    %c0_421 = arith.constant 0 : index
    %c21_422 = arith.constant 21 : index
    %244 = vector.load %arg6[%c0_419, %c0_420, %c0_421, %c21_422] : memref<1x1x8x512xbf16, #tpu.memory_space<vmem>>, vector<1x1x8x384xbf16>
    %245 = vector.shape_cast %244 : vector<1x1x8x384xbf16> to vector<8x384xbf16>
    %c0_423 = arith.constant 0 : index
    %c0_424 = arith.constant 0 : index
    %c0_425 = arith.constant 0 : index
    %c22_426 = arith.constant 22 : index
    %246 = vector.load %arg6[%c0_423, %c0_424, %c0_425, %c22_426] : memref<1x1x8x512xbf16, #tpu.memory_space<vmem>>, vector<1x1x8x384xbf16>
    %247 = vector.shape_cast %246 : vector<1x1x8x384xbf16> to vector<8x384xbf16>
    %c0_427 = arith.constant 0 : index
    %c0_428 = arith.constant 0 : index
    %c0_429 = arith.constant 0 : index
    %c23_430 = arith.constant 23 : index
    %248 = vector.load %arg6[%c0_427, %c0_428, %c0_429, %c23_430] : memref<1x1x8x512xbf16, #tpu.memory_space<vmem>>, vector<1x1x8x384xbf16>
    %249 = vector.shape_cast %248 : vector<1x1x8x384xbf16> to vector<8x384xbf16>
    %c0_431 = arith.constant 0 : index
    %c0_432 = arith.constant 0 : index
    %c0_433 = arith.constant 0 : index
    %c24_434 = arith.constant 24 : index
    %250 = vector.load %arg6[%c0_431, %c0_432, %c0_433, %c24_434] : memref<1x1x8x512xbf16, #tpu.memory_space<vmem>>, vector<1x1x8x384xbf16>
    %251 = vector.shape_cast %250 : vector<1x1x8x384xbf16> to vector<8x384xbf16>
    %c0_435 = arith.constant 0 : index
    %c0_436 = arith.constant 0 : index
    %c0_437 = arith.constant 0 : index
    %c40_438 = arith.constant 40 : index
    %252 = vector.load %arg6[%c0_435, %c0_436, %c0_437, %c40_438] : memref<1x1x8x512xbf16, #tpu.memory_space<vmem>>, vector<1x1x8x384xbf16>
    %253 = vector.shape_cast %252 : vector<1x1x8x384xbf16> to vector<8x384xbf16>
    %c0_439 = arith.constant 0 : index
    %c0_440 = arith.constant 0 : index
    %c0_441 = arith.constant 0 : index
    %c41_442 = arith.constant 41 : index
    %254 = vector.load %arg6[%c0_439, %c0_440, %c0_441, %c41_442] : memref<1x1x8x512xbf16, #tpu.memory_space<vmem>>, vector<1x1x8x384xbf16>
    %255 = vector.shape_cast %254 : vector<1x1x8x384xbf16> to vector<8x384xbf16>
    %c0_443 = arith.constant 0 : index
    %c0_444 = arith.constant 0 : index
    %c0_445 = arith.constant 0 : index
    %c42_446 = arith.constant 42 : index
    %256 = vector.load %arg6[%c0_443, %c0_444, %c0_445, %c42_446] : memref<1x1x8x512xbf16, #tpu.memory_space<vmem>>, vector<1x1x8x384xbf16>
    %257 = vector.shape_cast %256 : vector<1x1x8x384xbf16> to vector<8x384xbf16>
    %c0_447 = arith.constant 0 : index
    %c0_448 = arith.constant 0 : index
    %c0_449 = arith.constant 0 : index
    %c43_450 = arith.constant 43 : index
    %258 = vector.load %arg6[%c0_447, %c0_448, %c0_449, %c43_450] : memref<1x1x8x512xbf16, #tpu.memory_space<vmem>>, vector<1x1x8x384xbf16>
    %259 = vector.shape_cast %258 : vector<1x1x8x384xbf16> to vector<8x384xbf16>
    %c0_451 = arith.constant 0 : index
    %c0_452 = arith.constant 0 : index
    %c0_453 = arith.constant 0 : index
    %c44_454 = arith.constant 44 : index
    %260 = vector.load %arg6[%c0_451, %c0_452, %c0_453, %c44_454] : memref<1x1x8x512xbf16, #tpu.memory_space<vmem>>, vector<1x1x8x384xbf16>
    %261 = vector.shape_cast %260 : vector<1x1x8x384xbf16> to vector<8x384xbf16>
    %c0_455 = arith.constant 0 : index
    %c0_456 = arith.constant 0 : index
    %c0_457 = arith.constant 0 : index
    %c60_458 = arith.constant 60 : index
    %262 = vector.load %arg6[%c0_455, %c0_456, %c0_457, %c60_458] : memref<1x1x8x512xbf16, #tpu.memory_space<vmem>>, vector<1x1x8x384xbf16>
    %263 = vector.shape_cast %262 : vector<1x1x8x384xbf16> to vector<8x384xbf16>
    %c0_459 = arith.constant 0 : index
    %c0_460 = arith.constant 0 : index
    %c0_461 = arith.constant 0 : index
    %c61_462 = arith.constant 61 : index
    %264 = vector.load %arg6[%c0_459, %c0_460, %c0_461, %c61_462] : memref<1x1x8x512xbf16, #tpu.memory_space<vmem>>, vector<1x1x8x384xbf16>
    %265 = vector.shape_cast %264 : vector<1x1x8x384xbf16> to vector<8x384xbf16>
    %c0_463 = arith.constant 0 : index
    %c0_464 = arith.constant 0 : index
    %c0_465 = arith.constant 0 : index
    %c62_466 = arith.constant 62 : index
    %266 = vector.load %arg6[%c0_463, %c0_464, %c0_465, %c62_466] : memref<1x1x8x512xbf16, #tpu.memory_space<vmem>>, vector<1x1x8x384xbf16>
    %267 = vector.shape_cast %266 : vector<1x1x8x384xbf16> to vector<8x384xbf16>
    %c0_467 = arith.constant 0 : index
    %c0_468 = arith.constant 0 : index
    %c0_469 = arith.constant 0 : index
    %c63_470 = arith.constant 63 : index
    %268 = vector.load %arg6[%c0_467, %c0_468, %c0_469, %c63_470] : memref<1x1x8x512xbf16, #tpu.memory_space<vmem>>, vector<1x1x8x384xbf16>
    %269 = vector.shape_cast %268 : vector<1x1x8x384xbf16> to vector<8x384xbf16>
    %c0_471 = arith.constant 0 : index
    %c0_472 = arith.constant 0 : index
    %c0_473 = arith.constant 0 : index
    %c64_474 = arith.constant 64 : index
    %270 = vector.load %arg6[%c0_471, %c0_472, %c0_473, %c64_474] : memref<1x1x8x512xbf16, #tpu.memory_space<vmem>>, vector<1x1x8x384xbf16>
    %271 = vector.shape_cast %270 : vector<1x1x8x384xbf16> to vector<8x384xbf16>
    %c0_475 = arith.constant 0 : index
    %c0_476 = arith.constant 0 : index
    %c0_477 = arith.constant 0 : index
    %c80_478 = arith.constant 80 : index
    %272 = vector.load %arg6[%c0_475, %c0_476, %c0_477, %c80_478] : memref<1x1x8x512xbf16, #tpu.memory_space<vmem>>, vector<1x1x8x384xbf16>
    %273 = vector.shape_cast %272 : vector<1x1x8x384xbf16> to vector<8x384xbf16>
    %c0_479 = arith.constant 0 : index
    %c0_480 = arith.constant 0 : index
    %c0_481 = arith.constant 0 : index
    %c81_482 = arith.constant 81 : index
    %274 = vector.load %arg6[%c0_479, %c0_480, %c0_481, %c81_482] : memref<1x1x8x512xbf16, #tpu.memory_space<vmem>>, vector<1x1x8x384xbf16>
    %275 = vector.shape_cast %274 : vector<1x1x8x384xbf16> to vector<8x384xbf16>
    %c0_483 = arith.constant 0 : index
    %c0_484 = arith.constant 0 : index
    %c0_485 = arith.constant 0 : index
    %c82_486 = arith.constant 82 : index
    %276 = vector.load %arg6[%c0_483, %c0_484, %c0_485, %c82_486] : memref<1x1x8x512xbf16, #tpu.memory_space<vmem>>, vector<1x1x8x384xbf16>
    %277 = vector.shape_cast %276 : vector<1x1x8x384xbf16> to vector<8x384xbf16>
    %c0_487 = arith.constant 0 : index
    %c0_488 = arith.constant 0 : index
    %c0_489 = arith.constant 0 : index
    %c83_490 = arith.constant 83 : index
    %278 = vector.load %arg6[%c0_487, %c0_488, %c0_489, %c83_490] : memref<1x1x8x512xbf16, #tpu.memory_space<vmem>>, vector<1x1x8x384xbf16>
    %279 = vector.shape_cast %278 : vector<1x1x8x384xbf16> to vector<8x384xbf16>
    %c0_491 = arith.constant 0 : index
    %c0_492 = arith.constant 0 : index
    %c0_493 = arith.constant 0 : index
    %c84_494 = arith.constant 84 : index
    %280 = vector.load %arg6[%c0_491, %c0_492, %c0_493, %c84_494] : memref<1x1x8x512xbf16, #tpu.memory_space<vmem>>, vector<1x1x8x384xbf16>
    %281 = vector.shape_cast %280 : vector<1x1x8x384xbf16> to vector<8x384xbf16>
    %282 = tpu.concatenate %233, %235, %237, %239, %241, %243, %245, %247, %249, %251, %253, %255, %257, %259, %261, %263 in 0 : vector<8x384xbf16>, vector<8x384xbf16>, vector<8x384xbf16>, vector<8x384xbf16>, vector<8x384xbf16>, vector<8x384xbf16>, vector<8x384xbf16>, vector<8x384xbf16>, vector<8x384xbf16>, vector<8x384xbf16>, vector<8x384xbf16>, vector<8x384xbf16>, vector<8x384xbf16>, vector<8x384xbf16>, vector<8x384xbf16>, vector<8x384xbf16> -> vector<128x384xbf16>
    %283 = tpu.concatenate %265, %267, %269, %271, %273, %275, %277, %279, %281 in 0 : vector<8x384xbf16>, vector<8x384xbf16>, vector<8x384xbf16>, vector<8x384xbf16>, vector<8x384xbf16>, vector<8x384xbf16>, vector<8x384xbf16>, vector<8x384xbf16>, vector<8x384xbf16> -> vector<72x384xbf16>
    %284 = tpu.concatenate %282, %283 in 0 : vector<128x384xbf16>, vector<72x384xbf16> -> vector<200x384xbf16>
    %c4_495 = arith.constant 4 : index
    %c0_496 = arith.constant 0 : index
    %c0_497 = arith.constant 0 : index
    %285 = vector.load %arg7[%c4_495, %c0_496, %c0_497] : memref<5x8x200xbf16, #tpu.memory_space<vmem>>, vector<1x8x200xbf16>
    %286 = vector.shape_cast %285 : vector<1x8x200xbf16> to vector<8x200xbf16>
    %cst_498 = arith.constant dense<0.000000e+00> : vector<8x384xf32>
    %287 = tpu.matmul %286, %284, %cst_498 {dimension_numbers = #tpu.dot_dimension_numbers<[1], [0], [0], [1], [0, 0, 1, 1], [], []>} : vector<8x200xbf16>, vector<200x384xbf16>, vector<8x384xf32> -> vector<8x384xf32>
    %288 = arith.addf %231, %287 : vector<8x384xf32>
    %289 = vector.broadcast %0 : vector<8x1xf32> to vector<8x384xf32>
    %290 = arith.addf %288, %289 : vector<8x384xf32>
    %c0_499 = arith.constant 0 : index
    %c0_500 = arith.constant 0 : index
    %c0_501 = arith.constant 0 : index
    %c0_502 = arith.constant 0 : index
    %291 = vector.load %arg10[%c0_499, %c0_500, %c0_501, %c0_502] : memref<1x1x8x384xf32, #tpu.memory_space<vmem>>, vector<1x1x8x384xf32>
    %292 = vector.shape_cast %291 : vector<1x1x8x384xf32> to vector<8x384xf32>
    %293 = vector.shape_cast %290 : vector<8x384xf32> to vector<1x1x8x384xf32>
    tpu.vector_store %arg10[%c0_499, %c0_500, %c0_501, %c0_502], %293 {strides = array<i32>} : memref<1x1x8x384xf32, #tpu.memory_space<vmem>>, vector<1x1x8x384xf32>,
    %c0_503 = arith.constant 0 : index
    %c0_504 = arith.constant 0 : index
    %294 = vector.load %arg9[%c0_503, %c0_504] : memref<1x384xf32, #tpu.memory_space<vmem>>, vector<1x384xf32>
    %295 = vector.broadcast %294 : vector<1x384xf32> to vector<8x384xf32>
    %296 = arith.mulf %290, %295 : vector<8x384xf32>
    %cst_505 = arith.constant dense<0.000000e+00> : vector<8xf32>
    %297 = vector.multi_reduction <add>, %296, %cst_505 [1] : vector<8x384xf32> to vector<8xf32>
    %298 = vector.shape_cast %297 : vector<8xf32> to vector<8x1xf32>
    %299 = arith.addf %1, %298 : vector<8x1xf32>
    %300 = arith.mulf %296, %290 : vector<8x384xf32>
    %cst_506 = arith.constant dense<0.000000e+00> : vector<8xf32>
    %301 = vector.multi_reduction <add>, %300, %cst_506 [1] : vector<8x384xf32> to vector<8xf32>
    %302 = vector.shape_cast %301 : vector<8xf32> to vector<8x1xf32>
    %303 = arith.addf %2, %302 : vector<8x1xf32>
    %304 = tpu.concatenate %299, %303 in 1 : vector<8x1xf32>, vector<8x1xf32> -> vector<8x2xf32>
    %c0_507 = arith.constant 0 : index
    %c0_508 = arith.constant 0 : index
    %c0_509 = arith.constant 0 : index
    %c0_510 = arith.constant 0 : index
    %305 = vector.load %arg11[%c0_507, %c0_508, %c0_509, %c0_510] : memref<1x1x8x2xf32, #tpu.memory_space<vmem>>, vector<1x1x8x2xf32>
    %306 = vector.shape_cast %305 : vector<1x1x8x2xf32> to vector<8x2xf32>
    %307 = vector.shape_cast %304 : vector<8x2xf32> to vector<1x1x8x2xf32>
    tpu.vector_store %arg11[%c0_507, %c0_508, %c0_509, %c0_510], %307 {strides = array<i32>} : memref<1x1x8x2xf32, #tpu.memory_space<vmem>>, vector<1x1x8x2xf32>,
    return
  }
  func.func @transform_0(%arg0: i32, %arg1: i32) -> (i32, i32, i32, i32) {
    %c0_i32 = arith.constant 0 : i32
    %0 = arith.addi %arg1, %c0_i32 : i32
    %c0_i32_0 = arith.constant 0 : i32
    %c0_i32_1 = arith.constant 0 : i32
    %c0_i32_2 = arith.constant 0 : i32
    return %arg0, %0, %c0_i32_0, %c0_i32_1 : i32, i32, i32, i32
  }
  func.func @transform_1(%arg0: i32, %arg1: i32) -> (i32, i32, i32, i32) {
    %c1_i32 = arith.constant 1 : i32
    %0 = arith.addi %arg1, %c1_i32 : i32
    %c0_i32 = arith.constant 0 : i32
    %c0_i32_0 = arith.constant 0 : i32
    %c0_i32_1 = arith.constant 0 : i32
    return %arg0, %0, %c0_i32, %c0_i32_0 : i32, i32, i32, i32
  }
  func.func @transform_2(%arg0: i32, %arg1: i32) -> (i32, i32, i32, i32) {
    %c2_i32 = arith.constant 2 : i32
    %0 = arith.addi %arg1, %c2_i32 : i32
    %c0_i32 = arith.constant 0 : i32
    %c0_i32_0 = arith.constant 0 : i32
    %c0_i32_1 = arith.constant 0 : i32
    return %arg0, %0, %c0_i32, %c0_i32_0 : i32, i32, i32, i32
  }
  func.func @transform_3(%arg0: i32, %arg1: i32) -> (i32, i32, i32, i32) {
    %c3_i32 = arith.constant 3 : i32
    %0 = arith.addi %arg1, %c3_i32 : i32
    %c0_i32 = arith.constant 0 : i32
    %c0_i32_0 = arith.constant 0 : i32
    %c0_i32_1 = arith.constant 0 : i32
    return %arg0, %0, %c0_i32, %c0_i32_0 : i32, i32, i32, i32
  }
  func.func @transform_4(%arg0: i32, %arg1: i32) -> (i32, i32, i32, i32) {
    %c4_i32 = arith.constant 4 : i32
    %0 = arith.addi %arg1, %c4_i32 : i32
    %c0_i32 = arith.constant 0 : i32
    %c0_i32_0 = arith.constant 0 : i32
    %c0_i32_1 = arith.constant 0 : i32
    return %arg0, %0, %c0_i32, %c0_i32_0 : i32, i32, i32, i32
  }
  func.func @transform_5(%arg0: i32, %arg1: i32) -> (i32, i32, i32) {
    %c0_i32 = arith.constant 0 : i32
    %c0_i32_0 = arith.constant 0 : i32
    %c0_i32_1 = arith.constant 0 : i32
    %c0_i32_2 = arith.constant 0 : i32
    return %c0_i32, %c0_i32_0, %c0_i32_1 : i32, i32, i32
  }
  func.func @transform_6(%arg0: i32, %arg1: i32) -> (i32, i32) {
    %c0_i32 = arith.constant 0 : i32
    %c0_i32_0 = arith.constant 0 : i32
    %c0_i32_1 = arith.constant 0 : i32
    return %c0_i32, %c0_i32_0 : i32, i32
  }
  func.func @transform_7(%arg0: i32, %arg1: i32) -> (i32, i32) {
    %c0_i32 = arith.constant 0 : i32
    %c0_i32_0 = arith.constant 0 : i32
    %c0_i32_1 = arith.constant 0 : i32
    return %c0_i32, %c0_i32_0 : i32, i32
  }
  func.func @transform_8(%arg0: i32, %arg1: i32) -> (i32, i32, i32, i32) {
    %c0_i32 = arith.constant 0 : i32
    %c0_i32_0 = arith.constant 0 : i32
    %c0_i32_1 = arith.constant 0 : i32
    return %arg0, %arg1, %c0_i32, %c0_i32_0 : i32, i32, i32, i32
  }
  func.func @transform_9(%arg0: i32, %arg1: i32) -> (i32, i32, i32, i32) {
    %c0_i32 = arith.constant 0 : i32
    %c0_i32_0 = arith.constant 0 : i32
    %c0_i32_1 = arith.constant 0 : i32
    return %arg0, %arg1, %c0_i32, %c0_i32_0 : i32, i32, i32, i32
  }
}

module attributes {stable_mosaic.version = 11 : i64} {
  func.func @_bn_apply_elu_kernel(%arg0: i32, %arg1: i32, %arg2: memref<1x1x8x384xf32, #tpu.memory_space<vmem>>, %arg3: memref<8x1xf32, #tpu.memory_space<vmem>>, %arg4: memref<8x1xf32, #tpu.memory_space<vmem>>, %arg5: memref<1x1x8x384xf32, #tpu.memory_space<vmem>>) attributes {dimension_semantics = [#tpu.dimension_semantics<parallel>, #tpu.dimension_semantics<parallel>], iteration_bounds = array<i64: 2, 4>, scalar_prefetch = 0 : i64, scratch_operands = 0 : i64, tpu.core_type = #tpu.core_type<tc>, window_params = [{transform_indices = @transform_0, window_bounds = array<i64: 1, 1, 8, 384>}, {pipeline_mode = #tpu.pipeline_mode<synchronous>, transform_indices = @transform_1, window_bounds = array<i64: 8, 1>}, {pipeline_mode = #tpu.pipeline_mode<synchronous>, transform_indices = @transform_2, window_bounds = array<i64: 8, 1>}, {transform_indices = @transform_3, window_bounds = array<i64: 1, 1, 8, 384>}]} {
    %c0 = arith.constant 0 : index
    %c0_0 = arith.constant 0 : index
    %c0_1 = arith.constant 0 : index
    %c0_2 = arith.constant 0 : index
    %0 = vector.load %arg2[%c0, %c0_0, %c0_1, %c0_2] : memref<1x1x8x384xf32, #tpu.memory_space<vmem>>, vector<1x1x8x384xf32>
    %1 = vector.shape_cast %0 : vector<1x1x8x384xf32> to vector<8x384xf32>
    %c0_3 = arith.constant 0 : index
    %c0_4 = arith.constant 0 : index
    %2 = vector.load %arg3[%c0_3, %c0_4] : memref<8x1xf32, #tpu.memory_space<vmem>>, vector<8x1xf32>
    %3 = vector.broadcast %2 : vector<8x1xf32> to vector<8x384xf32>
    %4 = arith.mulf %1, %3 : vector<8x384xf32>
    %c0_5 = arith.constant 0 : index
    %c0_6 = arith.constant 0 : index
    %5 = vector.load %arg4[%c0_5, %c0_6] : memref<8x1xf32, #tpu.memory_space<vmem>>, vector<8x1xf32>
    %6 = vector.broadcast %5 : vector<8x1xf32> to vector<8x384xf32>
    %7 = arith.addf %4, %6 : vector<8x384xf32>
    %cst = arith.constant 0.000000e+00 : f32
    %8 = vector.broadcast %cst : f32 to vector<8x384xf32>
    %9 = arith.cmpf ogt, %7, %8 : vector<8x384xf32>
    %cst_7 = arith.constant 0.000000e+00 : f32
    %10 = vector.broadcast %cst_7 : f32 to vector<8x384xf32>
    %11 = arith.minimumf %7, %10 : vector<8x384xf32>
    %12 = math.exp %11 : vector<8x384xf32>
    %cst_8 = arith.constant 1.000000e+00 : f32
    %13 = vector.broadcast %cst_8 : f32 to vector<8x384xf32>
    %14 = arith.subf %12, %13 : vector<8x384xf32>
    %15 = arith.select %9, %7, %14 : vector<8x384xi1>, vector<8x384xf32>
    %c0_9 = arith.constant 0 : index
    %c0_10 = arith.constant 0 : index
    %c0_11 = arith.constant 0 : index
    %c0_12 = arith.constant 0 : index
    %16 = vector.load %arg5[%c0_9, %c0_10, %c0_11, %c0_12] : memref<1x1x8x384xf32, #tpu.memory_space<vmem>>, vector<1x1x8x384xf32>
    %17 = vector.shape_cast %16 : vector<1x1x8x384xf32> to vector<8x384xf32>
    %18 = vector.shape_cast %15 : vector<8x384xf32> to vector<1x1x8x384xf32>
    tpu.vector_store %arg5[%c0_9, %c0_10, %c0_11, %c0_12], %18 {strides = array<i32>} : memref<1x1x8x384xf32, #tpu.memory_space<vmem>>, vector<1x1x8x384xf32>,
    return
  }
  func.func @transform_0(%arg0: i32, %arg1: i32) -> (i32, i32, i32, i32) {
    %c0_i32 = arith.constant 0 : i32
    %c0_i32_0 = arith.constant 0 : i32
    %c0_i32_1 = arith.constant 0 : i32
    return %arg0, %arg1, %c0_i32, %c0_i32_0 : i32, i32, i32, i32
  }
  func.func @transform_1(%arg0: i32, %arg1: i32) -> (i32, i32) {
    %c0_i32 = arith.constant 0 : i32
    %c0_i32_0 = arith.constant 0 : i32
    %c0_i32_1 = arith.constant 0 : i32
    return %c0_i32, %c0_i32_0 : i32, i32
  }
  func.func @transform_2(%arg0: i32, %arg1: i32) -> (i32, i32) {
    %c0_i32 = arith.constant 0 : i32
    %c0_i32_0 = arith.constant 0 : i32
    %c0_i32_1 = arith.constant 0 : i32
    return %c0_i32, %c0_i32_0 : i32, i32
  }
  func.func @transform_3(%arg0: i32, %arg1: i32) -> (i32, i32, i32, i32) {
    %c0_i32 = arith.constant 0 : i32
    %c0_i32_0 = arith.constant 0 : i32
    %c0_i32_1 = arith.constant 0 : i32
    return %arg0, %arg1, %c0_i32, %c0_i32_0 : i32, i32, i32, i32
  }
}

module attributes {stable_mosaic.version = 11 : i64} {
  func.func @_bn_apply_elu_res_kernel(%arg0: i32, %arg1: i32, %arg2: memref<1x1x8x384xf32, #tpu.memory_space<vmem>>, %arg3: memref<1x1x8x384xf32, #tpu.memory_space<vmem>>, %arg4: memref<8x1xf32, #tpu.memory_space<vmem>>, %arg5: memref<8x1xf32, #tpu.memory_space<vmem>>, %arg6: memref<1x1x8x384xf32, #tpu.memory_space<vmem>>) attributes {dimension_semantics = [#tpu.dimension_semantics<parallel>, #tpu.dimension_semantics<parallel>], iteration_bounds = array<i64: 2, 4>, scalar_prefetch = 0 : i64, scratch_operands = 0 : i64, tpu.core_type = #tpu.core_type<tc>, window_params = [{transform_indices = @transform_0, window_bounds = array<i64: 1, 1, 8, 384>}, {transform_indices = @transform_1, window_bounds = array<i64: 1, 1, 8, 384>}, {pipeline_mode = #tpu.pipeline_mode<synchronous>, transform_indices = @transform_2, window_bounds = array<i64: 8, 1>}, {pipeline_mode = #tpu.pipeline_mode<synchronous>, transform_indices = @transform_3, window_bounds = array<i64: 8, 1>}, {transform_indices = @transform_4, window_bounds = array<i64: 1, 1, 8, 384>}]} {
    %c0 = arith.constant 0 : index
    %c0_0 = arith.constant 0 : index
    %c0_1 = arith.constant 0 : index
    %c0_2 = arith.constant 0 : index
    %0 = vector.load %arg2[%c0, %c0_0, %c0_1, %c0_2] : memref<1x1x8x384xf32, #tpu.memory_space<vmem>>, vector<1x1x8x384xf32>
    %1 = vector.shape_cast %0 : vector<1x1x8x384xf32> to vector<8x384xf32>
    %c0_3 = arith.constant 0 : index
    %c0_4 = arith.constant 0 : index
    %2 = vector.load %arg4[%c0_3, %c0_4] : memref<8x1xf32, #tpu.memory_space<vmem>>, vector<8x1xf32>
    %3 = vector.broadcast %2 : vector<8x1xf32> to vector<8x384xf32>
    %4 = arith.mulf %1, %3 : vector<8x384xf32>
    %c0_5 = arith.constant 0 : index
    %c0_6 = arith.constant 0 : index
    %5 = vector.load %arg5[%c0_5, %c0_6] : memref<8x1xf32, #tpu.memory_space<vmem>>, vector<8x1xf32>
    %6 = vector.broadcast %5 : vector<8x1xf32> to vector<8x384xf32>
    %7 = arith.addf %4, %6 : vector<8x384xf32>
    %cst = arith.constant 0.000000e+00 : f32
    %8 = vector.broadcast %cst : f32 to vector<8x384xf32>
    %9 = arith.cmpf ogt, %7, %8 : vector<8x384xf32>
    %cst_7 = arith.constant 0.000000e+00 : f32
    %10 = vector.broadcast %cst_7 : f32 to vector<8x384xf32>
    %11 = arith.minimumf %7, %10 : vector<8x384xf32>
    %12 = math.exp %11 : vector<8x384xf32>
    %cst_8 = arith.constant 1.000000e+00 : f32
    %13 = vector.broadcast %cst_8 : f32 to vector<8x384xf32>
    %14 = arith.subf %12, %13 : vector<8x384xf32>
    %15 = arith.select %9, %7, %14 : vector<8x384xi1>, vector<8x384xf32>
    %c0_9 = arith.constant 0 : index
    %c0_10 = arith.constant 0 : index
    %c0_11 = arith.constant 0 : index
    %c0_12 = arith.constant 0 : index
    %16 = vector.load %arg3[%c0_9, %c0_10, %c0_11, %c0_12] : memref<1x1x8x384xf32, #tpu.memory_space<vmem>>, vector<1x1x8x384xf32>
    %17 = vector.shape_cast %16 : vector<1x1x8x384xf32> to vector<8x384xf32>
    %18 = arith.addf %15, %17 : vector<8x384xf32>
    %cst_13 = arith.constant 0.000000e+00 : f32
    %19 = vector.broadcast %cst_13 : f32 to vector<8x384xf32>
    %20 = arith.cmpf ogt, %18, %19 : vector<8x384xf32>
    %cst_14 = arith.constant 0.000000e+00 : f32
    %21 = vector.broadcast %cst_14 : f32 to vector<8x384xf32>
    %22 = arith.minimumf %18, %21 : vector<8x384xf32>
    %23 = math.exp %22 : vector<8x384xf32>
    %cst_15 = arith.constant 1.000000e+00 : f32
    %24 = vector.broadcast %cst_15 : f32 to vector<8x384xf32>
    %25 = arith.subf %23, %24 : vector<8x384xf32>
    %26 = arith.select %20, %18, %25 : vector<8x384xi1>, vector<8x384xf32>
    %c0_16 = arith.constant 0 : index
    %c0_17 = arith.constant 0 : index
    %c0_18 = arith.constant 0 : index
    %c0_19 = arith.constant 0 : index
    %27 = vector.load %arg6[%c0_16, %c0_17, %c0_18, %c0_19] : memref<1x1x8x384xf32, #tpu.memory_space<vmem>>, vector<1x1x8x384xf32>
    %28 = vector.shape_cast %27 : vector<1x1x8x384xf32> to vector<8x384xf32>
    %29 = vector.shape_cast %26 : vector<8x384xf32> to vector<1x1x8x384xf32>
    tpu.vector_store %arg6[%c0_16, %c0_17, %c0_18, %c0_19], %29 {strides = array<i32>} : memref<1x1x8x384xf32, #tpu.memory_space<vmem>>, vector<1x1x8x384xf32>,
    return
  }
  func.func @transform_0(%arg0: i32, %arg1: i32) -> (i32, i32, i32, i32) {
    %c0_i32 = arith.constant 0 : i32
    %c0_i32_0 = arith.constant 0 : i32
    %c0_i32_1 = arith.constant 0 : i32
    return %arg0, %arg1, %c0_i32, %c0_i32_0 : i32, i32, i32, i32
  }
  func.func @transform_1(%arg0: i32, %arg1: i32) -> (i32, i32, i32, i32) {
    %c0_i32 = arith.constant 0 : i32
    %c0_i32_0 = arith.constant 0 : i32
    %c0_i32_1 = arith.constant 0 : i32
    return %arg0, %arg1, %c0_i32, %c0_i32_0 : i32, i32, i32, i32
  }
  func.func @transform_2(%arg0: i32, %arg1: i32) -> (i32, i32) {
    %c0_i32 = arith.constant 0 : i32
    %c0_i32_0 = arith.constant 0 : i32
    %c0_i32_1 = arith.constant 0 : i32
    return %c0_i32, %c0_i32_0 : i32, i32
  }
  func.func @transform_3(%arg0: i32, %arg1: i32) -> (i32, i32) {
    %c0_i32 = arith.constant 0 : i32
    %c0_i32_0 = arith.constant 0 : i32
    %c0_i32_1 = arith.constant 0 : i32
    return %c0_i32, %c0_i32_0 : i32, i32
  }
  func.func @transform_4(%arg0: i32, %arg1: i32) -> (i32, i32, i32, i32) {
    %c0_i32 = arith.constant 0 : i32
    %c0_i32_0 = arith.constant 0 : i32
    %c0_i32_1 = arith.constant 0 : i32
    return %arg0, %arg1, %c0_i32, %c0_i32_0 : i32, i32, i32, i32
  }
}

</mosaic_0001>

<bundles_post_ra>
// kernel: up_transition_forward.5
= control target key start
LH: loop header
LB: loop body
LE: loop exit
PB: predicated region body
PF: predicated region fallthrough
CT: control target
= control target key end

     0   :  { %s694_s18 = smov 0   ;;  %s696_s19 = smov 0   ;;  %s762_s0 = inlined_call_operand.vmem [shape: f32[2,4,256], index: 0, kind: input, shape index: {}]   ;;  %s763_s1 = inlined_call_operand.vmem [shape: f32[16,4], index: 1, kind: input, shape index: {}]   ;;  %s764_s2 = inlined_call_operand.vmem [shape: f32[16,1], index: 2, kind: input, shape index: {}]   ;;  %s765_s3 = inlined_call_operand.vmem [shape: f32[1,256], index: 3, kind: input, shape index: {}]   ;;  %s766_s4 = inlined_call_operand.vmem [shape: f32[2,16,256], index: 4, kind: output, shape index: {0}]   ;;  %s767_s5 = inlined_call_operand.vmem [shape: f32[2,16,2], index: 5, kind: output, shape index: {1}]  }
   0x1   :  { %s698_s20 = smov 0  }
   0x2 LB: > { %s28_s21 = sadd.s32 1, %s656_s19  ;;  %p592_p0 = scmp.ge.s32.totalorder %s660_s20, 1  ;;  %s660_s20 = sphi %s698_s20, %s16_s20   ;;  %s656_s19 = sphi %s696_s19, %s769_s19   ;;  %s652_s18 = sphi %s694_s18, %s768_s18  }
   0x3   : > { %p30_p1 = scmp.ge.s32.totalorder %s28_s21, 2  ;;  %p221_p2 = scmp.lt.s32.totalorder %s660_s20, 3 }
   0x5   : > { %s771_s21 = smov (%p30_p1, %s28_s21), 0  ;;  %p222_p3 = pnand %p592_p0, %p221_p2 }
   0x6   : > { %p267_p4 = scmp.lt.s32.totalorder (!%p222_p3), %s652_s18, 1  ;;  %v662_v0 = vmov (!%p222_p3), 0.0   ;;  %v306_v1 = vld [vmem:[%s764_s2] sm:$0xff] (!%p222_p3)  ;;  %v663_v2 = vmov (!%p222_p3), 0   ;;  %vm300_vm0 = vcmask (!%p222_p3), 15360   ;;  %v307_v3 = vld [vmem:[%s764_s2 + $0x8] sm:$0xff] (!%p222_p3)  ;;  %v415_v8 = vlaneseq (!%p222_p3) }
   0x7   : > { %225 = sbr.rel (%p222_p3) target bundleno = 395 (0x18b), region = 36  ;;  %396 = vmatprep.mubr.f32.mxu0 (!%p222_p3), %v662_v0  ;;  %402 = vmatprep.mubr.f32.mxu1 (!%p222_p3), %v662_v0  ;;  %vm327_vm1 = vcmask (!%p222_p3), 1043456   ;;  %v303_v6 = vld [vmem:[%s763_s1] sm:$0xff] (!%p222_p3)  ;;  %vm320_vm2 = vcmask (!%p222_p3), 31744   ;;  %v304_v7 = vld [vmem:[%s763_s1 + $0x8] sm:$0xff] (!%p222_p3)  ;;  %vm445_vm3 = vcmask (!%p222_p3), 7168  }
   0x8   : > { %636 = vset.pattern.permute.xlu0 (!%p222_p3), %v663_v2  ;;  %v416_v9 = vshrl.u32 (!%p222_p3), %v415_v8, 7  ;;  %v413_v12 = vld [vmem:[%s765_s3] sm:$0x3] (!%p222_p3) }
   0x9   : > { %310 = vperm.xlu0 (!%p222_p3), %636, %v306_v1  }
   0xa   : > { %v417_v11 = vsub.s32 (!%p222_p3), 0, %v416_v9  ;;  %v421_v13 = vsub.s32 (!%p222_p3), 1, %v416_v9 }
   0xc   : > { %v418_v15 = vrot.slane (!%p222_p3), %v413_v12, %v417_v11  ;;  %v422_v18 = vrot.slane (!%p222_p3), %v413_v12, %v421_v13 }
   0xd   : > { %315 = vperm.xlu0 (!%p222_p3), %636, %v307_v3  }
   0xe   : > { %s773_s18 = smov (!%p267_p4, %s652_s18), 1 }
   0xf   : > { %s605_s24 = sshll.u32 %s773_s18, 3  ;;  %s607_s25 = sshll.u32 %s773_s18, 4 }
  0x10   : > { %s274_s30 = scalar_lea.vmem %s762_s0, %s605_s24  ;;  %s728_s8 = scalar_lea.vmem %s767_s5, %s607_s25 }
  0x11   : > { %v305_v4 = vld [vmem:[%s274_s30] sm:$0xff]  ;;  %301 = vst.msk [vmem:[%s728_s8] sm:$0xff] %vm300_vm0, %v662_v0  ;;  %302 = vst.msk [vmem:[%s728_s8 + $0x8] sm:$0xff] %vm300_vm0, %v662_v0  ;;  %s606_s15 = sshll.u32 %s773_s18, 5 }
  0x12   : > { %v319_v5 = vcombine.high %v305_v4, %v305_v4  ;;  %s289_s22 = scalar_lea.vmem %s766_s4, %s606_s15 }
  0x14   : > { %599 = vmatprep.subr.msk.mxu0 %vm327_vm1, %v319_v5  ;;  %608 = vmatprep.subr.msk.mxu1 %vm327_vm1, %v319_v5 }
  0x15   : > { %600 = vmatpush1.msk.msra.mxu0 %vm327_vm1, %v305_v4  ;;  %609 = vmatpush1.msk.msra.mxu1 %vm327_vm1, %v305_v4 }
  0x16   : > { %601 = vmatmul.mubr.msk.f32.vlgmr.msra.gmra.mrb[0].mxu0 %vm320_vm2, %v303_v6  ;;  %602 = vmatmul.mubr.msk.f32.vlgmr.msra.gmra.mrb[0].mxu1 %vm320_vm2, %v304_v7 }
  0x18   : > { %v448_v38 = vld [vmem:[%s728_s8] sm:$0xff]  ;;  %v449_v43 = vld [vmem:[%s728_s8 + $0x8] sm:$0xff] }
  0x88   : > { %v311_v10 = vpop.permute.xlu0 %310 }
  0x8c   : > { %v316_v14 = vpop.permute.xlu0 %315 }
  0xe9   : > { %v398_v16 = vpop.f32.mrb[0].mxu0  ;;  %v404_v17 = vpop.f32.mrb[0].mxu1 }
  0xea   : > { %v399_v19 = vadd.f32 %v398_v16, %v311_v10  ;;  %v405_v20 = vadd.f32 %v404_v17, %v316_v14  ;;  %v400_v21 = vpop.f32.mrb[1].mxu0  ;;  %v406_v22 = vpop.f32.mrb[1].mxu1 }
  0xeb   : > { %v401_v23 = vadd.f32 %v400_v21, %v311_v10  ;;  %v407_v24 = vadd.f32 %v406_v22, %v316_v14 }
  0xec   : > { %409 = vst [vmem:[%s289_s22] sm:$0xff] %v399_v19  ;;  %411 = vst [vmem:[%s289_s22 + $0x10] sm:$0xff] %v405_v20  ;;  %v425_v25 = vmul.f32 %v418_v15, %v399_v19  ;;  %v427_v26 = vmul.f32 %v418_v15, %v405_v20 }
  0xed   : > { %410 = vst [vmem:[%s289_s22 + $0x8] sm:$0xff] %v401_v23  ;;  %412 = vst [vmem:[%s289_s22 + $0x18] sm:$0xff] %v407_v24  ;;  %v426_v27 = vmul.f32 %v422_v18, %v401_v23  ;;  %v428_v28 = vmul.f32 %v422_v18, %v407_v24 }
  0xee   : > { %v435_v29 = vmul.f32 %v425_v25, %v399_v19  ;;  %v437_v30 = vmul.f32 %v427_v26, %v405_v20 }
  0xef   : > { %v429_v31 = vadd.f32 %v426_v27, %v425_v25  ;;  %v436_v32 = vmul.f32 %v426_v27, %v401_v23  ;;  %v432_v33 = vadd.f32 %v428_v28, %v427_v26  ;;  %v438_v34 = vmul.f32 %v428_v28, %v407_v24 }
  0xf1   : > { %430 = vadd.xlane.f32.xlu1 %v429_v31  ;;  %v439_v35 = vadd.f32 %v436_v32, %v435_v29  ;;  %v442_v36 = vadd.f32 %v438_v34, %v437_v30 }
  0xf3   : > { %440 = vadd.xlane.f32.xlu0 %v439_v35 }
  0xf5   : > { %433 = vadd.xlane.f32.xlu1 %v432_v33 }
  0xf9   : > { %443 = vadd.xlane.f32.xlu1 %v442_v36 }
 0x17e   : > { %v431_v37 = vpop.xlane.xlu1 %430 }
 0x180   : > { %v441_v39 = vpop.xlane.xlu0 %440 }
 0x181   : > { %v446_v40 = vsel %vm445_vm3, %v431_v37, %v441_v39 }
 0x182   : > { %v450_v41 = vadd.f32 %v448_v38, %v446_v40  ;;  %v434_v42 = vpop.xlane.xlu1 %433 }
 0x184   : > { %453 = vst.msk [vmem:[%s728_s8] sm:$0xff] %vm300_vm0, %v450_v41 }
 0x186   : > { %v444_v44 = vpop.xlane.xlu1 %443 }
 0x187   : > { %v447_v45 = vsel %vm445_vm3, %v434_v42, %v444_v44 }
 0x188   : > { %v451_v46 = vadd.f32 %v449_v43, %v447_v45 }
 0x18a   : > { %454 = vst.msk [vmem:[%s728_s8 + $0x8] sm:$0xff] %vm300_vm0, %v451_v46 }
 0x18b PF: > { %s16_s20 = sadd.s32 1, %s660_s20   ;;  %s768_s18 = smov %s656_s19 }
 0x18c   : > { %p13_p5 = scmp.ge.s32.totalorder %s16_s20, 4   ;;  %s769_s19 = smov %s771_s21 }
 0x18e   :  { %15 = sbr.rel (!%p13_p5) target bundleno = 2 (0x2), region = 85 }

// kernel: up_transition_forward.7
= control target key start
LH: loop header
LB: loop body
LE: loop exit
PB: predicated region body
PF: predicated region fallthrough
CT: control target
= control target key end

     0   :  { %s467_s12 = smov 0   ;;  %s469_s13 = smov 0   ;;  %s524_s0 = inlined_call_operand.vmem [shape: f32[2,4,8,384], index: 0, kind: input, shape index: {}]   ;;  %s525_s1 = inlined_call_operand.vmem [shape: f32[8,1], index: 1, kind: input, shape index: {}]   ;;  %s526_s2 = inlined_call_operand.vmem [shape: f32[8,1], index: 2, kind: input, shape index: {}]   ;;  %s527_s3 = inlined_call_operand.vmem [shape: f32[2,4,8,384], index: 3, kind: output, shape index: {}]  }
   0x1   :  { %s471_s14 = smov 0   ;;  %s473_s15 = smov 0  }
   0x2   :  { %s475_s16 = smov 0  }
   0x3 LB: > { %s22_s17 = sadd.s32 1, %s436_s14  ;;  %s25_s18 = sadd.s32 1, %s440_s15  ;;  %s444_s16 = sphi %s475_s16, %s13_s16   ;;  %s440_s15 = sphi %s473_s15, %s531_s15   ;;  %s436_s14 = sphi %s471_s14, %s530_s14   ;;  %s432_s13 = sphi %s469_s13, %s529_s13   ;;  %s428_s12 = sphi %s467_s12, %s528_s12  }
   0x4   : > { %p23_p0 = scmp.ge.s32.totalorder %s22_s17, 4  ;;  %p348_p1 = scmp.ge.s32.totalorder %s444_s16, 1 }
   0x5   : > { %p157_p2 = scmp.lt.s32.totalorder %s444_s16, 9 }
   0x6   : > { %s533_s17 = smov (%p23_p0, %s22_s17), 0  ;;  %s535_s18 = smov (!%p23_p0, %s25_s18), %s440_s15 }
   0x7   : > { %p158_p3 = pnand %p348_p1, %p157_p2  ;;  %p27_p4 = scmp.ge.s32.totalorder %s535_s18, 2 }
   0x8   : > { %v210_v0 = vld [vmem:[%s525_s1] sm:$0xff] (!%p158_p3)  ;;  %v446_v1 = vmov (!%p158_p3), 0   ;;  %p189_p5 = scmp.lt.s32.totalorder (!%p158_p3), %s432_s13, 1  ;;  %p191_p6 = scmp.lt.s32.totalorder (!%p158_p3), %s428_s12, 3 }
   0x9   : > { %s537_s18 = smov (%p27_p4, %s535_s18), 0  ;;  %161 = sbr.rel (%p158_p3) target bundleno = 166 (0xa6), region = 32 }
   0xa   : > { %399 = vset.pattern.permute.xlu0 (!%p158_p3), %v446_v1  ;;  %v219_v2 = vld [vmem:[%s526_s2] sm:$0xff] (!%p158_p3) }
   0xb   : > { %213 = vperm.xlu0 (!%p158_p3), %399, %v210_v0  }
   0xf   : > { %222 = vperm.xlu0 (!%p158_p3), %399, %v219_v2  }
  0x10   : > { %s539_s13 = smov (!%p189_p5, %s432_s13), 1  ;;  %s541_s12 = smov (!%p191_p6, %s428_s12), 3 }
  0x11   : > { %s357_s23 = smul.u32 12, %s539_s13 }
  0x12   : > { %s356_s24 = smul.u32 3, %s541_s12 }
  0x14   : > { %s195_s25 = sadd.s32 %s357_s23, %s356_s24 }
  0x15   : > { %s349_s26 = sshll.u32 %s195_s25, 3 }
  0x16   : > { %s197_s29 = scalar_lea.vmem %s524_s0, %s349_s26  ;;  %s206_s5 = scalar_lea.vmem %s527_s3, %s349_s26 }
  0x17   : > { %v207_v4 = vld [vmem:[%s197_s29] sm:$0xff]  ;;  %v208_v5 = vld [vmem:[%s197_s29 + $0x8] sm:$0xff]  ;;  %v209_v6 = vld [vmem:[%s197_s29 + $0x10] sm:$0xff] }
  0x8a   : > { %v214_v3 = vpop.permute.xlu0 %213 }
  0x8b   : > { %v216_v7 = vmul.f32 %v214_v3, %v207_v4  ;;  %v217_v8 = vmul.f32 %v214_v3, %v208_v5  ;;  %v218_v9 = vmul.f32 %v214_v3, %v209_v6 }
  0x8e   : > { %v223_v10 = vpop.permute.xlu0 %222 }
  0x8f   : > { %v225_v11 = vadd.f32 %v223_v10, %v216_v7  ;;  %v226_v12 = vadd.f32 %v223_v10, %v217_v8  ;;  %v227_v13 = vadd.f32 %v223_v10, %v218_v9 }
  0x91   : > { %v231_v14 = vmin.f32 %v225_v11, 0.0  ;;  %v232_v15 = vmin.f32 %v226_v12, 0.0  ;;  %v233_v16 = vmin.f32 %v227_v13, 0.0  ;;  %vm228_vm0 = vcmp.gt.f32.partialorder %v225_v11, 0.0 }
  0x92   : > { %vm229_vm1 = vcmp.gt.f32.partialorder %v226_v12, 0.0  ;;  %vm230_vm2 = vcmp.gt.f32.partialorder %v227_v13, 0.0 }
  0x93   : > { %v234_v17 = vmul.f32 1.442695, %v231_v14  ;;  %v236_v18 = vmul.f32 1.442695, %v232_v15  ;;  %v238_v19 = vmul.f32 1.442695, %v233_v16 }
  0x95   : > { %400 = vpow2.f32 %v234_v17 }
  0x96   : > { %402 = vpow2.f32 %v236_v18 }
  0x97   : > { %404 = vpow2.f32 %v238_v19 }
  0x9f   : > { %v401_v20 = vpop.eup %400 }
  0xa0   : > { %v403_v21 = vpop.eup %402  ;;  %v351_v22 = vadd.f32 -1.0, %v401_v20 }
  0xa1   : > { %v405_v23 = vpop.eup %404  ;;  %v352_v24 = vadd.f32 -1.0, %v403_v21 }
  0xa2   : > { %v353_v25 = vadd.f32 -1.0, %v405_v23  ;;  %v243_v26 = vsel %vm228_vm0, %v225_v11, %v351_v22 }
  0xa3   : > { %v244_v27 = vsel %vm229_vm1, %v226_v12, %v352_v24  ;;  %246 = vst [vmem:[%s206_s5] sm:$0xff] %v243_v26 }
  0xa4   : > { %v245_v28 = vsel %vm230_vm2, %v227_v13, %v353_v25  ;;  %247 = vst [vmem:[%s206_s5 + $0x8] sm:$0xff] %v244_v27 }
  0xa5   : > { %248 = vst [vmem:[%s206_s5 + $0x10] sm:$0xff] %v245_v28 }
  0xa6 PF: > { %s13_s16 = sadd.s32 1, %s444_s16   ;;  %s528_s12 = smov %s436_s14 }
  0xa7   : > { %p10_p7 = scmp.ge.s32.totalorder %s13_s16, 10   ;;  %s529_s13 = smov %s440_s15 }
  0xa8   : > { %s530_s14 = smov %s533_s17  ;;  %s531_s15 = smov %s537_s18 }
  0xa9   :  { %12 = sbr.rel (!%p10_p7) target bundleno = 3 (0x3), region = 62 }

// kernel: up_transition_forward.6
= control target key start
LH: loop header
LB: loop body
LE: loop exit
PB: predicated region body
PF: predicated region fallthrough
CT: control target
= control target key end

     0   :  { %s3664_s30 = smov 0   ;;  %s3666_s10 = smov 0   ;;  %s5919_s0 = inlined_call_operand.vmem [shape: bf16[2,8,8,512], index: 0, kind: input, shape index: {}, may-alias: {0,1,2,3,4}]   ;;  %s5920_s1 = inlined_call_operand.vmem [shape: bf16[2,8,8,512], index: 1, kind: input, shape index: {}, may-alias: {0,1,2,3,4}]   ;;  %s5921_s2 = inlined_call_operand.vmem [shape: bf16[2,8,8,512], index: 2, kind: input, shape index: {}, may-alias: {0,1,2,3,4}]   ;;  %s5922_s3 = inlined_call_operand.vmem [shape: bf16[2,8,8,512], index: 3, kind: input, shape index: {}, may-alias: {0,1,2,3,4}]   ;;  %s5923_s4 = inlined_call_operand.vmem [shape: bf16[2,8,8,512], index: 4, kind: input, shape index: {}, may-alias: {0,1,2,3,4}]   ;;  %s5924_s5 = inlined_call_operand.vmem [shape: bf16[5,8,200], index: 5, kind: input, shape index: {}]   ;;  %s5925_s6 = inlined_call_operand.vmem [shape: f32[8,1], index: 6, kind: input, shape index: {}]   ;;  %s5926_s7 = inlined_call_operand.vmem [shape: f32[1,384], index: 7, kind: input, shape index: {}]   ;;  %s5927_s8 = inlined_call_operand.vmem [shape: f32[2,4,8,384], index: 8, kind: output, shape index: {0}]   ;;  %s5928_s9 = inlined_call_operand.vmem [shape: f32[2,4,8,2], index: 9, kind: output, shape index: {1}]  }
   0x1   :  { %5984 = sst [smem:[#allocation32_spill]] %s5919_s0  ;;  %s3668_s11 = smov 0  }
   0x2   :  { %5985 = sst [smem:[#allocation33_spill]] %s5920_s1  ;;  %s3670_s12 = smov 0  }
   0x3   :  { %5986 = sst [smem:[#allocation34_spill]] %s5921_s2  ;;  %s3672_s13 = smov 0  }
   0x4   :  { %5987 = sst [smem:[#allocation35_spill]] %s5922_s3 }
   0x5   :  { %5988 = sst [smem:[#allocation36_spill]] %s5928_s9 }
   0x6 LB: > { %5989 = sst [smem:[#allocation2_spill]] %s3586_s11  ;;  %s29_s14 = sadd.s32 1, %s3586_s11  ;;  %s3594_s13 = sphi %s3672_s13, %s20_s13   ;;  %s3590_s12 = sphi %s3670_s12, %s6112_s12   ;;  %s3586_s11 = sphi %s3668_s11, %s6111_s11   ;;  %s3582_s10 = sphi %s3666_s10, %s6110_s10   ;;  %s3578_s30 = sphi %s3664_s30, %s6109_s30  }
   0x7   : > { %5990 = sst [smem:[#allocation3_spill]] %s3590_s12  ;;  %s32_s15 = sadd.s32 1, %s3590_s12 }
   0x8   : > { %5991 = sst [smem:[#allocation4_spill]] %s3594_s13  ;;  %p30_p0 = scmp.ge.s32.totalorder %s29_s14, 4 }
   0x9   : > { %p3371_p1 = scmp.ge.s32.totalorder %s3594_s13, 1  ;;  %p392_p2 = scmp.lt.s32.totalorder %s3594_s13, 9 }
   0xa   : > { %s6114_s14 = smov (%p30_p0, %s29_s14), 0  ;;  %s6116_s15 = smov (!%p30_p0, %s32_s15), %s3590_s12 }
   0xb   : > { %5992 = sst [smem:[#allocation5_spill]] %s6114_s14  ;;  %p393_p3 = pnand %p3371_p1, %p392_p2 }
   0xc   : > { %p34_p4 = scmp.ge.s32.totalorder %s6116_s15, 2 }
   0xd   : > { %396 = sbr.rel (%p393_p3) target bundleno = 1484 (0x5cc), region = 52 }
   0xe   : > { %s6118_s15 = smov (%p34_p4, %s6116_s15), 0 }
   0xf   : > { %5993 = sst [smem:[#allocation6_spill]] %s6118_s15 }
  0x14   : > { %p484_p5 = scmp.lt.s32.totalorder %s3582_s10, 1  ;;  %p486_p6 = scmp.lt.s32.totalorder %s3578_s30, 7  ;;  %vm586_vm0 = vcmask 1039360   ;;  %vm758_vm1 = vcmask 1043456   ;;  %vm610_vm2 = vcmask 1022976   ;;  %vm5981_vm3 = vcmask 1031168  }
  0x15   : > { %s5994_s0 = sld [smem:[#allocation32_spill]]  ;;  %s5959_s24 = smov 127   ;;  %vm5983_vm4 = vcmask 883712   ;;  %vm5977_vm5 = vcmask 891904   ;;  %vm658_vm6 = vcmask 867328   ;;  %vm5979_vm7 = vcmask 875520  }
  0x16   : > { %s6120_s10 = smov (!%p484_p5, %s3582_s10), 1  ;;  %s5957_s25 = smov 126   ;;  %vm5978_vm8 = vcmask 859136   ;;  %vm5982_vm9 = vcmask 1014784   ;;  %vm1385_vm10 = vcmask 588800   ;;  %vm682_vm11 = vcmask 850944  }
  0x17   : > { %s487_s16 = scalar_select %p486_p6, %s3578_s30, 7  ;;  %vm694_vm12 = vcmask 719872   ;;  %vm706_vm13 = vcmask 711680   ;;  %vm718_vm14 = vcmask 703488   ;;  %vm730_vm15 = vcmask 695296  }
  0x18   : > { %s3701_s17 = sshll.u32 %s6120_s10, 5  ;;  %s5955_s26 = smov 125  }
  0x19   : > { %s3372_s18 = sshll.u32 %s487_s16, 2  ;;  %s5951_s27 = smov 124  }
  0x1a   : > { %s490_s19 = sadd.s32 %s3701_s17, %s3372_s18  ;;  %s5953_s28 = smov 108  }
  0x1b   : > { %s3374_s20 = sshll.u32 %s490_s19, 2  ;;  %s5949_s29 = smov 107  }
  0x1c   : > { %s3707_s23 = scalar_lea.vmem %s5994_s0, %s3374_s20  ;;  %s5945_s16 = smov 106  }
  0x1d   : > { %v559_v0 = vld [vmem:[%s3707_s23 + $0x8] sm:$0xff]  ;;  %v558_v1 = vld [vmem:[%s3707_s23] sm:$0xff]  ;;  %s5943_s18 = smov 105   ;;  %s5941_s19 = smov 104  }
  0x1e   : > { %v3711_v2 = vcombine.low %v559_v0, %v559_v0  ;;  %v3713_v3 = vcombine.low %v558_v1, %v558_v1  ;;  %v3719_v4 = vcombine.high %v559_v0, %v559_v0  ;;  %v3721_v5 = vcombine.high %v558_v1, %v558_v1  ;;  %s5929_s20 = smov 88   ;;  %s5931_s21 = smov 87   ;;  %v556_v8 = vld [vmem:[%s3707_s23] sm:$0xff]  ;;  %v3538_v11 = vld [vmem:[%s3707_s23 + $0x8] ss:$0 sps:$4 sm:$0xff]  }
  0x1f   : > { %s5933_s22 = smov 86   ;;  %v3391_v9 = vcombine.high %v556_v8, %v556_v8  ;;  %v3390_v10 = vcombine.low %v556_v8, %v556_v8  ;;  %s5995_s1 = sld [smem:[#allocation33_spill]] }
  0x20   : > { %582 = vrot.lane.b32.xlu1 %v3711_v2, %s5959_s24  ;;  %578 = vrot.lane.b32.xlu0 %v3713_v3, %s5959_s24  ;;  %s6006_s2 = sld [smem:[#allocation34_spill]]  ;;  %s515_s0 = sadd.s32 3, %s3578_s30 }
  0x21   : > { %p518_p9 = scmp.lt.s32.totalorder %s515_s0, 7  ;;  %s6035_s3 = sld [smem:[#allocation35_spill]] }
  0x22   : > { %s6037_s12 = smov 126   ;;  %s6038_s14 = smov 125  }
  0x23   : > { %s6126_s0 = smov (!%p518_p9, %s515_s0), 7  ;;  %p539_p11 = scmp.lt.s32.totalorder %s3578_s30, 3 }
  0x24   : > { %584 = vrot.lane.b32.xlu1 %v3719_v4, %s5959_s24  ;;  %580 = vrot.lane.b32.xlu0 %v3721_v5, %s5959_s24 }
  0x28   : > { %592 = vrot.lane.b32.xlu1 %v3721_v5, %s5957_s25  ;;  %590 = vrot.lane.b32.xlu0 %v3713_v3, %s5957_s25 }
  0x2c   : > { %596 = vrot.lane.b32.xlu1 %v3719_v4, %s5957_s25  ;;  %594 = vrot.lane.b32.xlu0 %v3711_v2, %s5957_s25 }
  0x30   : > { %604 = vrot.lane.b32.xlu1 %v3721_v5, %s5955_s26  ;;  %602 = vrot.lane.b32.xlu0 %v3713_v3, %s5955_s26 }
  0x34   : > { %608 = vrot.lane.b32.xlu1 %v3719_v4, %s5955_s26  ;;  %606 = vrot.lane.b32.xlu0 %v3711_v2, %s5955_s26 }
  0x38   : > { %616 = vrot.lane.b32.xlu1 %v3721_v5, %s5951_s27  ;;  %614 = vrot.lane.b32.xlu0 %v3713_v3, %s5951_s27 }
  0x3c   : > { %620 = vrot.lane.b32.xlu1 %v3719_v4, %s5951_s27  ;;  %618 = vrot.lane.b32.xlu0 %v3711_v2, %s5951_s27 }
  0x40   : > { %628 = vrot.lane.b32.xlu1 %v3721_v5, %s5953_s28  ;;  %626 = vrot.lane.b32.xlu0 %v3713_v3, %s5953_s28 }
  0x44   : > { %632 = vrot.lane.b32.xlu1 %v3719_v4, %s5953_s28  ;;  %630 = vrot.lane.b32.xlu0 %v3711_v2, %s5953_s28 }
  0x48   : > { %640 = vrot.lane.b32.xlu1 %v3721_v5, %s5949_s29  ;;  %638 = vrot.lane.b32.xlu0 %v3713_v3, %s5949_s29 }
  0x4c   : > { %644 = vrot.lane.b32.xlu1 %v3719_v4, %s5949_s29  ;;  %642 = vrot.lane.b32.xlu0 %v3711_v2, %s5949_s29 }
  0x50   : > { %652 = vrot.lane.b32.xlu1 %v3721_v5, %s5945_s16  ;;  %650 = vrot.lane.b32.xlu0 %v3713_v3, %s5945_s16 }
  0x54   : > { %656 = vrot.lane.b32.xlu1 %v3719_v4, %s5945_s16  ;;  %654 = vrot.lane.b32.xlu0 %v3711_v2, %s5945_s16  ;;  %s6001_s16 = smov 107  }
  0x58   : > { %664 = vrot.lane.b32.xlu1 %v3721_v5, %s5943_s18  ;;  %662 = vrot.lane.b32.xlu0 %v3713_v3, %s5943_s18 }
  0x5c   : > { %668 = vrot.lane.b32.xlu1 %v3719_v4, %s5943_s18  ;;  %666 = vrot.lane.b32.xlu0 %v3711_v2, %s5943_s18 }
  0x60   : > { %676 = vrot.lane.b32.xlu1 %v3721_v5, %s5941_s19  ;;  %674 = vrot.lane.b32.xlu0 %v3713_v3, %s5941_s19 }
  0x64   : > { %680 = vrot.lane.b32.xlu1 %v3719_v4, %s5941_s19  ;;  %678 = vrot.lane.b32.xlu0 %v3711_v2, %s5941_s19  ;;  %s5961_s19 = smov 67  }
  0x68   : > { %688 = vrot.lane.b32.xlu1 %v3721_v5, %s5929_s20  ;;  %686 = vrot.lane.b32.xlu0 %v3713_v3, %s5929_s20 }
  0x6c   : > { %692 = vrot.lane.b32.xlu1 %v3719_v4, %s5929_s20  ;;  %690 = vrot.lane.b32.xlu0 %v3711_v2, %s5929_s20  ;;  %s5939_s20 = smov 85  }
  0x70   : > { %700 = vrot.lane.b32.xlu1 %v3721_v5, %s5931_s21  ;;  %698 = vrot.lane.b32.xlu0 %v3713_v3, %s5931_s21 }
  0x74   : > { %704 = vrot.lane.b32.xlu1 %v3719_v4, %s5931_s21  ;;  %702 = vrot.lane.b32.xlu0 %v3711_v2, %s5931_s21  ;;  %s5935_s21 = smov 84  }
  0x78   : > { %712 = vrot.lane.b32.xlu1 %v3721_v5, %s5933_s22  ;;  %710 = vrot.lane.b32.xlu0 %v3713_v3, %s5933_s22 }
  0x7c   : > { %716 = vrot.lane.b32.xlu1 %v3719_v4, %s5933_s22  ;;  %714 = vrot.lane.b32.xlu0 %v3711_v2, %s5933_s22  ;;  %s5937_s22 = smov 68  }
  0x80   : > { %724 = vrot.lane.b32.xlu1 %v3721_v5, %s5939_s20  ;;  %722 = vrot.lane.b32.xlu0 %v3713_v3, %s5939_s20 }
  0x84   : > { %728 = vrot.lane.b32.xlu1 %v3719_v4, %s5939_s20  ;;  %726 = vrot.lane.b32.xlu0 %v3711_v2, %s5939_s20 }
  0x88   : > { %736 = vrot.lane.b32.xlu1 %v3721_v5, %s5935_s21  ;;  %734 = vrot.lane.b32.xlu0 %v3713_v3, %s5935_s21 }
  0x8c   : > { %740 = vrot.lane.b32.xlu1 %v3719_v4, %s5935_s21  ;;  %738 = vrot.lane.b32.xlu0 %v3711_v2, %s5935_s21  ;;  %s5947_s21 = smov 109  }
  0x90   : > { %748 = vrot.lane.b32.xlu1 %v3721_v5, %s5937_s22  ;;  %746 = vrot.lane.b32.xlu0 %v3713_v3, %s5937_s22 }
  0x92   : > { %v583_v6 = vpop.permute.xlu1 %582  ;;  %v579_v7 = vpop.permute.xlu0 %578 }
  0x94   : > { %752 = vrot.lane.b32.xlu1 %v3719_v4, %s5937_s22  ;;  %750 = vrot.lane.b32.xlu0 %v3711_v2, %s5937_s22  ;;  %s493_s22 = sadd.s32 1, %s3578_s30 }
  0x95   : > { %p496_p7 = scmp.lt.s32.totalorder %s493_s22, 7 }
  0x96   : > { %v585_v12 = vpop.permute.xlu1 %584  ;;  %v581_v13 = vpop.permute.xlu0 %580 }
  0x97   : > { %v589_v14 = vsel %vm586_vm0, %v583_v6, %v585_v12  ;;  %v587_v15 = vsel %vm586_vm0, %v579_v7, %v581_v13  ;;  %v588_v16 = vsel %vm586_vm0, %v581_v13, %v583_v6  ;;  %s6122_s22 = smov (!%p496_p7, %s493_s22), 7  ;;  %v875_v28 = vsel %vm758_vm1, %v3719_v4, %v585_v12 }
  0x98   : > { %857 = vrot.lane.b32.xlu1 %v3721_v5, %s5947_s21  ;;  %855 = vrot.lane.b32.xlu0 %v3713_v3, %s5947_s21  ;;  %v3850_v17 = vsel %vm758_vm1, %v3391_v9, %v588_v16  ;;  %v3853_v18 = vsel %vm758_vm1, %v3390_v10, %v587_v15  ;;  %v3856_v19 = vsel %vm758_vm1, %v3538_v11, %v589_v14  ;;  %s3375_s23 = sshll.u32 %s6122_s22, 2  ;;  %s504_s22 = sadd.s32 2, %s3578_s30 }
  0x99   : > { %v870_v24 = vsel %vm758_vm1, %v3721_v5, %v588_v16  ;;  %v868_v25 = vsel %vm758_vm1, %v3713_v3, %v587_v15  ;;  %s500_s20 = sadd.s32 %s3375_s23, %s3701_s17  ;;  %v872_v29 = vsel %vm758_vm1, %v3711_v2, %v589_v14  ;;  %p507_p8 = scmp.lt.s32.totalorder %s504_s22, 7 }
  0x9a   : > { %v593_v20 = vpop.permute.xlu1 %592  ;;  %v591_v21 = vpop.permute.xlu0 %590  ;;  %s3377_s18 = sshll.u32 %s500_s20, 2  ;;  %s6003_s20 = smov 105  }
  0x9b   : > { %s3872_s29 = scalar_lea.vmem %s5995_s1, %s3377_s18  ;;  %v599_v31 = vsel %vm5981_vm3, %v591_v21, %v593_v20  ;;  %s6002_s18 = smov 106  }
  0x9c   : > { %861 = vrot.lane.b32.xlu1 %v3719_v4, %s5947_s21  ;;  %859 = vrot.lane.b32.xlu0 %v3711_v2, %s5947_s21  ;;  %s6004_s21 = smov 109   ;;  %s6124_s22 = smov (!%p507_p8, %s504_s22), 7 }
  0x9d   : > { %s3378_s23 = sshll.u32 %s6124_s22, 2  ;;  %s6030_s22 = smov 84  }
  0x9e   : > { %v597_v22 = vpop.permute.xlu1 %596  ;;  %v595_v23 = vpop.permute.xlu0 %594  ;;  %s3381_s1 = sshll.u32 %s6126_s0, 2  ;;  %s6040_s0 = smov 124  }
  0x9f   : > { %v600_v34 = vsel %vm5981_vm3, %v593_v20, %v595_v23  ;;  %v601_v39 = vsel %vm5981_vm3, %v595_v23, %v597_v22 }
  0xa0   : > { %909 = vrot.lane.b32.xlu1 %v870_v24, %s5961_s19  ;;  %907 = vrot.lane.b32.xlu0 %v868_v25, %s5961_s19 }
  0xa2   : > { %v605_v26 = vpop.permute.xlu1 %604  ;;  %v603_v27 = vpop.permute.xlu0 %602 }
  0xa3   : > { %v611_v30 = vsel %vm610_vm2, %v603_v27, %v605_v26 }
  0xa4   : > { %913 = vrot.lane.b32.xlu1 %v875_v28, %s5961_s19  ;;  %911 = vrot.lane.b32.xlu0 %v872_v29, %s5961_s19  ;;  %v3885_v36 = vsel %vm758_vm1, %v599_v31, %v611_v30 }
  0xa6   : > { %v609_v32 = vpop.permute.xlu1 %608  ;;  %v607_v33 = vpop.permute.xlu0 %606 }
  0xa7   : > { %v612_v35 = vsel %vm610_vm2, %v605_v26, %v607_v33  ;;  %v613_v37 = vsel %vm610_vm2, %v607_v33, %v609_v32  ;;  %v878_v43 = vsel %vm758_vm1, %v597_v22, %v609_v32 }
  0xa8   : > { %915 = vrot.lane.b32.xlu0 %v3885_v36, %s5961_s19  ;;  %v3891_v38 = vsel %vm758_vm1, %v600_v34, %v612_v35  ;;  %v3901_v42 = vsel %vm758_vm1, %v601_v39, %v613_v37 }
  0xa9   : > { %917 = vrot.lane.b32.xlu1 %v3891_v38, %s5961_s19 }
  0xaa   : > { %v3896_v40 = vpop.permute.xlu1 %616  ;;  %v3898_v41 = vpop.permute.xlu0 %614 }
  0xac   : > { %919 = vrot.lane.b32.xlu0 %v3901_v42, %s5961_s19 }
  0xad   : > { %921 = vrot.lane.b32.xlu1 %v878_v43, %s5961_s19 }
  0xae   : > { %v3907_v44 = vpop.permute.xlu1 %620  ;;  %v3909_v45 = vpop.permute.xlu0 %618 }
  0xb2   : > { %v629_v46 = vpop.permute.xlu1 %628  ;;  %v627_v47 = vpop.permute.xlu0 %626 }
  0xb3   : > { %v3986_v31 = vsel %vm5983_vm4, %v627_v47, %v629_v46 }
  0xb6   : > { %v3911_v48 = vpop.permute.xlu1 %632  ;;  %v631_v49 = vpop.permute.xlu0 %630 }
  0xb7   : > { %v3993_v37 = vsel %vm5983_vm4, %v629_v46, %v631_v49  ;;  %v3997_v39 = vsel %vm5983_vm4, %v631_v49, %v3911_v48 }
  0xba   : > { %v3913_v50 = vpop.permute.xlu1 %640  ;;  %v639_v51 = vpop.permute.xlu0 %638 }
  0xbb   : > { %v647_v46 = vsel %vm5979_vm7, %v639_v51, %v3913_v50 }
  0xbe   : > { %v3915_v52 = vpop.permute.xlu1 %644  ;;  %v3917_v53 = vpop.permute.xlu0 %642 }
  0xbf   : > { %v648_v51 = vsel %vm5979_vm7, %v3913_v50, %v3917_v53 }
  0xc2   : > { %v653_v54 = vpop.permute.xlu1 %652  ;;  %v651_v55 = vpop.permute.xlu0 %650 }
  0xc6   : > { %v3919_v56 = vpop.permute.xlu1 %656  ;;  %v655_v57 = vpop.permute.xlu0 %654 }
  0xca   : > { %v3921_v58 = vpop.permute.xlu1 %664  ;;  %v3923_v59 = vpop.permute.xlu0 %662 }
  0xcb   : > { %v4040_v50 = vsel %vm5978_vm8, %v3923_v59, %v3921_v58 }
  0xce   : > { %v3925_v60 = vpop.permute.xlu1 %668  ;;  %v3927_v61 = vpop.permute.xlu0 %666 }
  0xcf   : > { %v4057_v59 = vsel %vm5978_vm8, %v3921_v58, %v3927_v61 }
  0xd2   : > { %v3929_v62 = vpop.permute.xlu1 %676  ;;  %v3931_v63 = vpop.permute.xlu0 %674 }
  0xd6   : > { %v3933_v0 = vpop.permute.xlu1 %680  ;;  %v3935_v1 = vpop.permute.xlu0 %678 }
  0xda   : > { %v3937_v2 = vpop.permute.xlu1 %688  ;;  %v3939_v3 = vpop.permute.xlu0 %686 }
  0xde   : > { %v3941_v4 = vpop.permute.xlu1 %692  ;;  %v3943_v5 = vpop.permute.xlu0 %690 }
  0xe2   : > { %v3945_v6 = vpop.permute.xlu1 %700  ;;  %v3947_v7 = vpop.permute.xlu0 %698 }
  0xe6   : > { %v3949_v8 = vpop.permute.xlu1 %704  ;;  %v3951_v9 = vpop.permute.xlu0 %702 }
  0xea   : > { %v3953_v10 = vpop.permute.xlu1 %712  ;;  %v3955_v11 = vpop.permute.xlu0 %710 }
  0xee   : > { %v3957_v12 = vpop.permute.xlu1 %716  ;;  %v3959_v13 = vpop.permute.xlu0 %714 }
  0xef   : > { %5996 = vst [vmem:[#allocation7_spill] sm:$0xff] %v3957_v12 }
  0xf2   : > { %v3961_v14 = vpop.permute.xlu1 %724  ;;  %v3963_v15 = vpop.permute.xlu0 %722 }
  0xf6   : > { %v3965_v16 = vpop.permute.xlu1 %728  ;;  %v3967_v20 = vpop.permute.xlu0 %726 }
  0xfa   : > { %v3969_v21 = vpop.permute.xlu1 %736  ;;  %v3971_v22 = vpop.permute.xlu0 %734 }
  0xfb   : > { %5997 = vst [vmem:[#allocation8_spill] sm:$0xff] %v3971_v22 }
  0xfe   : > { %v3973_v23 = vpop.permute.xlu1 %740  ;;  %v3975_v24 = vpop.permute.xlu0 %738 }
  0xff   : > { %5998 = vst [vmem:[#allocation9_spill] sm:$0xff] %v3973_v23 }
 0x102   : > { %v3977_v25 = vpop.permute.xlu1 %748  ;;  %v3979_v26 = vpop.permute.xlu0 %746 }
 0x103   : > { %5999 = vst [vmem:[#allocation10_spill] sm:$0xff] %v3979_v26 }
 0x106   : > { %v3981_v27 = vpop.permute.xlu1 %752  ;;  %v3983_v28 = vpop.permute.xlu0 %750 }
 0x107   : > { %6000 = vst [vmem:[#allocation11_spill] sm:$0xff] %v3981_v27 }
 0x10a   : > { %v858_v29 = vpop.permute.xlu1 %857  ;;  %v856_v30 = vpop.permute.xlu0 %855 }
 0x10b   : > { %v864_v32 = vsel %vm5977_vm5, %v856_v30, %v858_v29 }
 0x10c   : > { %v880_v33 = vsel %vm758_vm1, %v864_v32, %v3986_v31 }
 0x10d   : > { %923 = vrot.lane.b32.xlu0 %v880_v33, %s5961_s19  ;;  %v659_v33 = vsel %vm658_vm6, %v651_v55, %v653_v54  ;;  %v649_v55 = vsel %vm5979_vm7, %v3917_v53, %v3915_v52  ;;  %v890_v53 = vsel %vm758_vm1, %v3915_v52, %v3919_v56 }
 0x10e   : > { %v862_v34 = vpop.permute.xlu1 %861  ;;  %v860_v35 = vpop.permute.xlu0 %859  ;;  %v4011_v49 = vsel %vm758_vm1, %v647_v46, %v659_v33 }
 0x10f   : > { %v865_v43 = vsel %vm5977_vm5, %v858_v29, %v860_v35  ;;  %v866_v47 = vsel %vm5977_vm5, %v860_v35, %v862_v34  ;;  %v887_v29 = vsel %vm758_vm1, %v862_v34, %v3911_v48  ;;  %v660_v35 = vsel %vm658_vm6, %v653_v54, %v655_v57 }
 0x110   : > { %v884_v30 = vsel %vm758_vm1, %v866_v47, %v3997_v39  ;;  %v882_v32 = vsel %vm758_vm1, %v865_v43, %v3993_v37  ;;  %v661_v43 = vsel %vm658_vm6, %v655_v57, %v3919_v56  ;;  %v4031_v54 = vsel %vm758_vm1, %v648_v51, %v660_v35  ;;  %v978_v57 = vld [vmem:[%s3872_s29] sm:$0xff]  ;;  %v979_v56 = vld [vmem:[%s3872_s29 + $0x8] sm:$0xff] }
 0x111   : > { %927 = vrot.lane.b32.xlu0 %v884_v30, %s5961_s19  ;;  %925 = vrot.lane.b32.xlu1 %v882_v32, %s5961_s19  ;;  %v4028_v48 = vsel %vm758_vm1, %v649_v55, %v661_v43  ;;  %v4052_v34 = vsel %vm5978_vm8, %v3927_v61, %v3925_v60  ;;  %v5963_v47 = vmov 0   ;;  %v4065_v52 = vcombine.low %v978_v57, %v978_v57 }
 0x112   : > { %1439 = vmatprep.subr.bf16.mxu1 %v5963_v47  ;;  %3516 = vset.pattern.permute.xlu0 %v5963_v47  ;;  %v4072_v58 = vcombine.low %v979_v56, %v979_v56  ;;  %v4074_v61 = vcombine.high %v978_v57, %v978_v57  ;;  %v4080_v30 = vcombine.high %v979_v56, %v979_v56  ;;  %v4155_v32 = vpop.permute.xlu1 %909 }
 0x113   : > { %6007 = vst [vmem:[#allocation13_spill] sm:$0xff] %v4155_v32 }
 0x115   : > { %931 = vrot.lane.b32.xlu0 %v4011_v49, %s5961_s19  ;;  %929 = vrot.lane.b32.xlu1 %v887_v29, %s5961_s19 }
 0x116   : > { %v4167_v46 = vpop.permute.xlu1 %913 }
 0x117   : > { %6010 = vst [vmem:[#allocation15_spill] sm:$0xff] %v4167_v46 }
 0x119   : > { %935 = vrot.lane.b32.xlu0 %v4028_v48, %s5961_s19  ;;  %933 = vrot.lane.b32.xlu1 %v4031_v54, %s5961_s19 }
 0x11b   : > { %v4175_v35 = vpop.permute.xlu1 %917 }
 0x11c   : > { %6013 = vst [vmem:[#allocation17_spill] sm:$0xff] %v4175_v35 }
 0x11d   : > { %939 = vrot.lane.b32.xlu0 %v4040_v50, %s5961_s19  ;;  %937 = vrot.lane.b32.xlu1 %v890_v53, %s5961_s19 }
 0x11f   : > { %v4187_v51 = vpop.permute.xlu1 %921 }
 0x120   : > { %6016 = vst [vmem:[#allocation19_spill] sm:$0xff] %v4187_v51 }
 0x121   : > { %943 = vrot.lane.b32.xlu0 %v4052_v34, %s5961_s19  ;;  %941 = vrot.lane.b32.xlu1 %v4057_v59, %s5961_s19 }
 0x125   : > { %998 = vrot.lane.b32.xlu0 %v4065_v52, %s5959_s24  ;;  %945 = vrot.lane.b32.xlu1 %v3925_v60, %s5961_s19  ;;  %v4143_v60 = vpop.permute.xlu0 %907  ;;  %s6008_s19 = smov 104  }
 0x126   : > { %6005 = vst [vmem:[#allocation12_spill] sm:$0xff] %v4143_v60 }
 0x129   : > { %1002 = vrot.lane.b32.xlu0 %v4072_v58, %s5959_s24  ;;  %1000 = vrot.lane.b32.xlu1 %v4074_v61, %s5959_s24  ;;  %v4161_v33 = vpop.permute.xlu0 %911 }
 0x12a   : > { %6009 = vst [vmem:[#allocation14_spill] sm:$0xff] %v4161_v33 }
 0x12d   : > { %1009 = vrot.lane.b32.xlu0 %v4065_v52, %s5957_s25  ;;  %1004 = vrot.lane.b32.xlu1 %v4080_v30, %s5959_s24  ;;  %v4169_v29 = vpop.permute.xlu0 %915 }
 0x12e   : > { %6011 = vst [vmem:[#allocation16_spill] sm:$0xff] %v4169_v29  ;;  %v3525_v29 = vld [vmem:[%s3872_s29 + $0x8] ss:$0 sps:$4 sm:$0xff]   ;;  %s6034_s29 = smov 67  }
 0x131   : > { %1013 = vrot.lane.b32.xlu0 %v4072_v58, %s5957_s25  ;;  %1011 = vrot.lane.b32.xlu1 %v4074_v61, %s5957_s25  ;;  %v4181_v43 = vpop.permute.xlu0 %919 }
 0x132   : > { %6014 = vst [vmem:[#allocation18_spill] sm:$0xff] %v4181_v43 }
 0x135   : > { %1020 = vrot.lane.b32.xlu0 %v4065_v52, %s5955_s26  ;;  %1015 = vrot.lane.b32.xlu1 %v4080_v30, %s5957_s25  ;;  %s6012_s25 = smov 88  }
 0x139   : > { %1024 = vrot.lane.b32.xlu0 %v4072_v58, %s5955_s26  ;;  %1022 = vrot.lane.b32.xlu1 %v4074_v61, %s5955_s26 }
 0x13d   : > { %1031 = vrot.lane.b32.xlu0 %v4065_v52, %s5951_s27  ;;  %1026 = vrot.lane.b32.xlu1 %v4080_v30, %s5955_s26  ;;  %s6015_s26 = smov 87  }
 0x141   : > { %1035 = vrot.lane.b32.xlu0 %v4072_v58, %s5951_s27  ;;  %1033 = vrot.lane.b32.xlu1 %v4074_v61, %s5951_s27 }
 0x145   : > { %1042 = vrot.lane.b32.xlu0 %v4065_v52, %s5953_s28  ;;  %1037 = vrot.lane.b32.xlu1 %v4080_v30, %s5951_s27  ;;  %s511_s27 = sadd.s32 %s3378_s23, %s3701_s17  ;;  %s6032_s23 = smov 68  }
 0x149   : > { %1046 = vrot.lane.b32.xlu0 %v4072_v58, %s5953_s28  ;;  %1044 = vrot.lane.b32.xlu1 %v4074_v61, %s5953_s28 }
 0x14d   : > { %1053 = vrot.lane.b32.xlu0 %v4065_v52, %s6001_s16  ;;  %1048 = vrot.lane.b32.xlu1 %v4080_v30, %s5953_s28  ;;  %s3380_s28 = sshll.u32 %s511_s27, 2  ;;  %s6020_s27 = smov 86  }
 0x14e   : > { %s4153_s24 = scalar_lea.vmem %s6006_s2, %s3380_s28  ;;  %s6025_s28 = smov 85  }
 0x14f   : > { %s522_s2 = sadd.s32 %s3381_s1, %s3701_s17 }
 0x150   : > { %s3383_s15 = sshll.u32 %s522_s2, 2  ;;  %s6036_s2 = smov 127  }
 0x151   : > { %1057 = vrot.lane.b32.xlu0 %v4072_v58, %s6001_s16  ;;  %1055 = vrot.lane.b32.xlu1 %v4074_v61, %s6001_s16  ;;  %s4312_s11 = scalar_lea.vmem %s6035_s3, %s3383_s15  ;;  %s6039_s15 = smov 108  }
 0x152   : > { %s526_s3 = sadd.s32 4, %s3578_s30  ;;  %s6130_s30 = smov (!%p539_p11, %s3578_s30), 3 }
 0x153   : > { %p529_p10 = scmp.lt.s32.totalorder %s526_s3, 7 }
 0x155   : > { %1064 = vrot.lane.b32.xlu0 %v4065_v52, %s6002_s18  ;;  %1059 = vrot.lane.b32.xlu1 %v4080_v30, %s6001_s16  ;;  %s6128_s3 = smov (!%p529_p10, %s526_s3), 7 }
 0x156   : > { %s3384_s1 = sshll.u32 %s6128_s3, 2  ;;  %s6107_s3 = sld [smem:[#allocation36_spill]] }
 0x157   : > { %s533_s13 = sadd.s32 %s3384_s1, %s3701_s17 }
 0x158   : > { %s3386_s9 = sshll.u32 %s533_s13, 2 }
 0x159   : > { %1068 = vrot.lane.b32.xlu0 %v4072_v58, %s6002_s18  ;;  %1066 = vrot.lane.b32.xlu1 %v4074_v61, %s6002_s18  ;;  %s4716_s1 = scalar_lea.vmem %s5923_s4, %s3386_s9 }
 0x15d   : > { %1075 = vrot.lane.b32.xlu0 %v4065_v52, %s6003_s20  ;;  %1070 = vrot.lane.b32.xlu1 %v4080_v30, %s6002_s18 }
 0x161   : > { %1263 = vrot.lane.b32.xlu0 %v4072_v58, %s6004_s21  ;;  %1261 = vrot.lane.b32.xlu1 %v4074_v61, %s6004_s21 }
 0x165   : > { %1259 = vrot.lane.b32.xlu0 %v4065_v52, %s6004_s21  ;;  %1265 = vrot.lane.b32.xlu1 %v4080_v30, %s6004_s21 }
 0x169   : > { %1079 = vrot.lane.b32.xlu0 %v4072_v58, %s6003_s20  ;;  %1077 = vrot.lane.b32.xlu1 %v4074_v61, %s6003_s20 }
 0x16d   : > { %1086 = vrot.lane.b32.xlu0 %v4065_v52, %s6008_s19  ;;  %1081 = vrot.lane.b32.xlu1 %v4080_v30, %s6003_s20 }
 0x171   : > { %1090 = vrot.lane.b32.xlu0 %v4072_v58, %s6008_s19  ;;  %1088 = vrot.lane.b32.xlu1 %v4074_v61, %s6008_s19 }
 0x175   : > { %1097 = vrot.lane.b32.xlu0 %v4065_v52, %s6012_s25  ;;  %1092 = vrot.lane.b32.xlu1 %v4080_v30, %s6008_s19 }
 0x179   : > { %1101 = vrot.lane.b32.xlu0 %v4072_v58, %s6012_s25  ;;  %1099 = vrot.lane.b32.xlu1 %v4074_v61, %s6012_s25 }
 0x17d   : > { %1108 = vrot.lane.b32.xlu0 %v4065_v52, %s6015_s26  ;;  %1103 = vrot.lane.b32.xlu1 %v4080_v30, %s6012_s25 }
 0x17f   : > { %v4189_v55 = vpop.permute.xlu0 %923 }
 0x180   : > { %6017 = vst [vmem:[#allocation20_spill] sm:$0xff] %v4189_v55 }
 0x181   : > { %1112 = vrot.lane.b32.xlu0 %v4072_v58, %s6015_s26  ;;  %1110 = vrot.lane.b32.xlu1 %v4074_v61, %s6015_s26 }
 0x183   : > { %v4195_v53 = vpop.permute.xlu1 %925  ;;  %v4197_v57 = vpop.permute.xlu0 %927 }
 0x184   : > { %6018 = vst [vmem:[#allocation21_spill] sm:$0xff] %v4195_v53  ;;  %6019 = vst [vmem:[#allocation22_spill] sm:$0xff] %v4197_v57 }
 0x185   : > { %1119 = vrot.lane.b32.xlu0 %v4065_v52, %s6020_s27  ;;  %1114 = vrot.lane.b32.xlu1 %v4080_v30, %s6015_s26 }
 0x187   : > { %v4203_v56 = vpop.permute.xlu1 %929  ;;  %v4205_v47 = vpop.permute.xlu0 %931 }
 0x188   : > { %6021 = vst [vmem:[#allocation23_spill] sm:$0xff] %v4203_v56  ;;  %6022 = vst [vmem:[#allocation24_spill] sm:$0xff] %v4205_v47 }
 0x189   : > { %1123 = vrot.lane.b32.xlu0 %v4072_v58, %s6020_s27  ;;  %1121 = vrot.lane.b32.xlu1 %v4074_v61, %s6020_s27 }
 0x18b   : > { %v4211_v55 = vpop.permute.xlu1 %933  ;;  %v4213_v51 = vpop.permute.xlu0 %935 }
 0x18c   : > { %6023 = vst [vmem:[#allocation25_spill] sm:$0xff] %v4211_v55  ;;  %6024 = vst [vmem:[#allocation26_spill] sm:$0xff] %v4213_v51 }
 0x18d   : > { %1134 = vrot.lane.b32.xlu0 %v4072_v58, %s6025_s28  ;;  %1132 = vrot.lane.b32.xlu1 %v4074_v61, %s6025_s28 }
 0x18f   : > { %v4219_v53 = vpop.permute.xlu1 %937  ;;  %v4221_v56 = vpop.permute.xlu0 %939 }
 0x190   : > { %6026 = vst [vmem:[#allocation27_spill] sm:$0xff] %v4219_v53  ;;  %6027 = vst [vmem:[#allocation28_spill] sm:$0xff] %v4221_v56 }
 0x191   : > { %1125 = vrot.lane.b32.xlu0 %v4080_v30, %s6020_s27  ;;  %1130 = vrot.lane.b32.xlu1 %v4065_v52, %s6025_s28 }
 0x193   : > { %v4227_v47 = vpop.permute.xlu1 %941  ;;  %v4229_v55 = vpop.permute.xlu0 %943 }
 0x194   : > { %6028 = vst [vmem:[#allocation29_spill] sm:$0xff] %v4227_v47  ;;  %6029 = vst [vmem:[#allocation30_spill] sm:$0xff] %v4229_v55 }
 0x195   : > { %1143 = vrot.lane.b32.xlu0 %v4074_v61, %s6030_s22  ;;  %1136 = vrot.lane.b32.xlu1 %v4080_v30, %s6025_s28 }
 0x197   : > { %v4235_v53 = vpop.permute.xlu1 %945  ;;  %v999_v56 = vpop.permute.xlu0 %998 }
 0x198   : > { %6031 = vst [vmem:[#allocation31_spill] sm:$0xff] %v4235_v53 }
 0x199   : > { %1154 = vrot.lane.b32.xlu0 %v4074_v61, %s6032_s23  ;;  %1145 = vrot.lane.b32.xlu1 %v4072_v58, %s6030_s22 }
 0x19b   : > { %v1001_v51 = vpop.permute.xlu1 %1000  ;;  %v1003_v47 = vpop.permute.xlu0 %1002 }
 0x19c   : > { %v1007_v57 = vsel %vm586_vm0, %v1001_v51, %v1003_v47  ;;  %v1006_v55 = vsel %vm586_vm0, %v999_v56, %v1001_v51  ;;  %v6033_v56 = vmov 0  }
 0x19d   : > { %1141 = vrot.lane.b32.xlu0 %v4065_v52, %s6030_s22  ;;  %1156 = vrot.lane.b32.xlu1 %v4072_v58, %s6032_s23  ;;  %v1169_v53 = vsel %vm758_vm1, %v4074_v61, %v1007_v57  ;;  %v1165_v46 = vsel %vm758_vm1, %v4065_v52, %v1006_v55 }
 0x19e   : > { %1398 = vmatprep.subr.bf16.mxu0 %v1169_v53 }
 0x19f   : > { %v1005_v35 = vpop.permute.xlu1 %1004  ;;  %1399 = vmatpush1.bf16.msra.mxu0 %v1165_v46  ;;  %v1010_v43 = vpop.permute.xlu0 %1009 }
 0x1a0   : > { %v1008_v60 = vsel %vm586_vm0, %v1003_v47, %v1005_v35 }
 0x1a1   : > { %1147 = vrot.lane.b32.xlu0 %v4080_v30, %s6030_s22  ;;  %1152 = vrot.lane.b32.xlu1 %v4065_v52, %s6032_s23  ;;  %v1173_v51 = vsel %vm758_vm1, %v3525_v29, %v1008_v60  ;;  %v1275_v23 = vsel %vm758_vm1, %v4072_v58, %v1008_v60 }
 0x1a2   : > { %1440 = vmatpush1.bf16.msra.mxu1 %v1173_v51  ;;  %v1278_v51 = vsel %vm758_vm1, %v4080_v30, %v1005_v35 }
 0x1a3   : > { %v1012_v61 = vpop.permute.xlu1 %1011  ;;  %v1014_v57 = vpop.permute.xlu0 %1013  ;;  %1441 = vmatprep.subr.bf16.mxu1 %v6033_v56 }
 0x1a4   : > { %v1017_v32 = vsel %vm5981_vm3, %v1010_v43, %v1012_v61  ;;  %v1018_v33 = vsel %vm5981_vm3, %v1012_v61, %v1014_v57 }
 0x1a5   : > { %1158 = vrot.lane.b32.xlu1 %v4080_v30, %s6032_s23  ;;  %1312 = vrot.lane.b32.xlu0 %v1169_v53, %s6034_s29 }
 0x1a7   : > { %v1016_v55 = vpop.permute.xlu1 %1015  ;;  %v1021_v47 = vpop.permute.xlu0 %1020 }
 0x1a9   : > { %1314 = vrot.lane.b32.xlu1 %v1275_v23, %s6034_s29  ;;  %1310 = vrot.lane.b32.xlu0 %v1165_v46, %s6034_s29  ;;  %v1019_v46 = vsel %vm5981_vm3, %v1014_v57, %v1016_v55 }
 0x1ab   : > { %v1023_v52 = vpop.permute.xlu1 %1022  ;;  %v1025_v29 = vpop.permute.xlu0 %1024 }
 0x1ac   : > { %v1028_v53 = vsel %vm610_vm2, %v1021_v47, %v1023_v52  ;;  %v1029_v27 = vsel %vm610_vm2, %v1023_v52, %v1025_v29 }
 0x1ad   : > { %1316 = vrot.lane.b32.xlu1 %v1278_v51, %s6034_s29  ;;  %v1181_v58 = vsel %vm758_vm1, %v1018_v33, %v1029_v27  ;;  %v1177_v23 = vsel %vm758_vm1, %v1017_v32, %v1028_v53 }
 0x1ae   : > { %1320 = vrot.lane.b32.xlu0 %v1181_v58, %s6034_s29  ;;  %1400 = vmatprep.subr.bf16.mxu0 %v1181_v58 }
 0x1af   : > { %v1027_v60 = vpop.permute.xlu1 %1026  ;;  %1401 = vmatpush1.bf16.msra.mxu0 %v1177_v23  ;;  %v1032_v30 = vpop.permute.xlu0 %1031 }
 0x1b0   : > { %v1030_v35 = vsel %vm610_vm2, %v1025_v29, %v1027_v60  ;;  %v1281_v32 = vsel %vm758_vm1, %v1016_v55, %v1027_v60 }
 0x1b1   : > { %v1185_v43 = vsel %vm758_vm1, %v1019_v46, %v1030_v35 }
 0x1b2   : > { %1322 = vrot.lane.b32.xlu1 %v1185_v43, %s6034_s29  ;;  %1442 = vmatpush1.bf16.msra.mxu1 %v1185_v43 }
 0x1b3   : > { %1318 = vrot.lane.b32.xlu0 %v1177_v23, %s6034_s29  ;;  %v1034_v27 = vpop.permute.xlu1 %1033  ;;  %v1036_v33 = vpop.permute.xlu0 %1035  ;;  %1443 = vmatprep.subr.bf16.mxu1 %v6033_v56 }
 0x1b4   : > { %v1039_v29 = vsel %vm5982_vm9, %v1032_v30, %v1034_v27  ;;  %v1040_v51 = vsel %vm5982_vm9, %v1034_v27, %v1036_v33 }
 0x1b6   : > { %1324 = vrot.lane.b32.xlu1 %v1281_v32, %s6034_s29 }
 0x1b7   : > { %v1038_v61 = vpop.permute.xlu1 %1037  ;;  %v1043_v47 = vpop.permute.xlu0 %1042 }
 0x1b8   : > { %v1041_v35 = vsel %vm5982_vm9, %v1036_v33, %v1038_v61 }
 0x1bb   : > { %v1045_v57 = vpop.permute.xlu1 %1044  ;;  %v1047_v52 = vpop.permute.xlu0 %1046 }
 0x1bc   : > { %v1050_v53 = vsel %vm5983_vm4, %v1043_v47, %v1045_v57  ;;  %v1051_v58 = vsel %vm5983_vm4, %v1045_v57, %v1047_v52 }
 0x1bd   : > { %v1193_v23 = vsel %vm758_vm1, %v1040_v51, %v1051_v58  ;;  %v1189_v46 = vsel %vm758_vm1, %v1039_v29, %v1050_v53 }
 0x1be   : > { %1402 = vmatprep.subr.bf16.mxu0 %v1193_v23 }
 0x1bf   : > { %v1049_v55 = vpop.permute.xlu1 %1048  ;;  %1403 = vmatpush1.bf16.msra.mxu0 %v1189_v46  ;;  %v1054_v60 = vpop.permute.xlu0 %1053 }
 0x1c0   : > { %v1052_v43 = vsel %vm5983_vm4, %v1047_v52, %v1049_v55 }
 0x1c1   : > { %v1197_v30 = vsel %vm758_vm1, %v1041_v35, %v1052_v43 }
 0x1c2   : > { %1444 = vmatpush1.bf16.msra.mxu1 %v1197_v30 }
 0x1c3   : > { %v1056_v27 = vpop.permute.xlu1 %1055  ;;  %v1058_v32 = vpop.permute.xlu0 %1057  ;;  %1445 = vmatprep.subr.bf16.mxu1 %v6033_v56 }
 0x1c4   : > { %v1061_v23 = vsel %vm5979_vm7, %v1054_v60, %v1056_v27  ;;  %v1062_v46 = vsel %vm5979_vm7, %v1056_v27, %v1058_v32 }
 0x1c7   : > { %v1060_v47 = vpop.permute.xlu1 %1059  ;;  %v1065_v57 = vpop.permute.xlu0 %1064 }
 0x1c8   : > { %v1063_v12 = vsel %vm5979_vm7, %v1058_v32, %v1060_v47  ;;  %vm947_vm7 = vcmask 547840  }
 0x1cb   : > { %v1067_v51 = vpop.permute.xlu1 %1066  ;;  %v1069_v29 = vpop.permute.xlu0 %1068 }
 0x1cc   : > { %v1072_v33 = vsel %vm658_vm6, %v1065_v57, %v1067_v51  ;;  %v1073_v61 = vsel %vm658_vm6, %v1067_v51, %v1069_v29 }
 0x1cd   : > { %v1205_v52 = vsel %vm758_vm1, %v1062_v46, %v1073_v61  ;;  %v1201_v35 = vsel %vm758_vm1, %v1061_v23, %v1072_v33 }
 0x1ce   : > { %1404 = vmatprep.subr.bf16.mxu0 %v1205_v52 }
 0x1cf   : > { %v1071_v30 = vpop.permute.xlu1 %1070  ;;  %1405 = vmatpush1.bf16.msra.mxu0 %v1201_v35  ;;  %v1076_v22 = vpop.permute.xlu0 %1075 }
 0x1d0   : > { %v1074_v60 = vsel %vm658_vm6, %v1069_v29, %v1071_v30 }
 0x1d1   : > { %v1209_v27 = vsel %vm758_vm1, %v1063_v12, %v1074_v60 }
 0x1d2   : > { %1446 = vmatpush1.bf16.msra.mxu1 %v1209_v27 }
 0x1d3   : > { %v1262_v57 = vpop.permute.xlu1 %1261  ;;  %v1264_v51 = vpop.permute.xlu0 %1263  ;;  %1447 = vmatprep.subr.bf16.mxu1 %v6033_v56 }
 0x1d4   : > { %v1268_v23 = vsel %vm5977_vm5, %v1262_v57, %v1264_v51 }
 0x1d5   : > { %v1285_v46 = vsel %vm758_vm1, %v1268_v23, %v1051_v58 }
 0x1d6   : > { %1328 = vrot.lane.b32.xlu0 %v1285_v46, %s6034_s29 }
 0x1d7   : > { %v1266_v32 = vpop.permute.xlu1 %1265  ;;  %v1260_v29 = vpop.permute.xlu0 %1259 }
 0x1d8   : > { %v1269_v12 = vsel %vm5977_vm5, %v1264_v51, %v1266_v32  ;;  %v1267_v33 = vsel %vm5977_vm5, %v1260_v29, %v1262_v57  ;;  %v1290_v46 = vsel %vm758_vm1, %v1266_v32, %v1049_v55  ;;  %vm742_vm5 = vcmask 687104  }
 0x1d9   : > { %v1287_v61 = vsel %vm758_vm1, %v1269_v12, %v1052_v43  ;;  %v1283_v60 = vsel %vm758_vm1, %v1267_v33, %v1050_v53  ;;  %v4326_v43 = vld [vmem:[%s5924_s5 + $0x8] sm:$0xff]  ;;  %v1293_v33 = vsel %vm758_vm1, %v1060_v47, %v1071_v30 }
 0x1da   : > { %1330 = vrot.lane.b32.xlu1 %v1287_v61, %s6034_s29  ;;  %1326 = vrot.lane.b32.xlu0 %v1283_v60, %s6034_s29  ;;  %v3406_v53 = vcombine.high %v4326_v43, %v4326_v43 }
 0x1db   : > { %v1078_v58 = vpop.permute.xlu1 %1077  ;;  %v1080_v23 = vpop.permute.xlu0 %1079 }
 0x1dc   : > { %v1084_v57 = vsel %vm5978_vm8, %v1078_v58, %v1080_v23  ;;  %3408 = vmatprep.mubr.msk.bf16.mxu0 %vm1385_vm10, %v3406_v53  ;;  %3409 = vmatprep.mubr.msk.bf16.mxu1 %vm1385_vm10, %v3406_v53  ;;  %v1083_v12 = vsel %vm5978_vm8, %v1076_v22, %v1078_v58 }
 0x1de   : > { %1332 = vrot.lane.b32.xlu1 %v1290_v46, %s6034_s29  ;;  %1336 = vrot.lane.b32.xlu0 %v1205_v52, %s6034_s29 }
 0x1df   : > { %v1082_v26 = vpop.permute.xlu1 %1081  ;;  %v1087_v51 = vpop.permute.xlu0 %1086 }
 0x1e0   : > { %v1085_v61 = vsel %vm5978_vm8, %v1080_v23, %v1082_v26  ;;  %vm754_vm8 = vcmask 556032  }
 0x1e2   : > { %1338 = vrot.lane.b32.xlu1 %v1209_v27, %s6034_s29  ;;  %1334 = vrot.lane.b32.xlu0 %v1201_v35, %s6034_s29 }
 0x1e3   : > { %v1089_v55 = vpop.permute.xlu1 %1088  ;;  %v1091_v52 = vpop.permute.xlu0 %1090 }
 0x1e4   : > { %v1094_v32 = vsel %vm682_vm11, %v1087_v51, %v1089_v55  ;;  %v1095_v29 = vsel %vm682_vm11, %v1089_v55, %v1091_v52  ;;  %v1580_v51 = vld [vmem:[%s4153_s24] sm:$0xff]  ;;  %v1581_v55 = vld [vmem:[%s4153_s24 + $0x8] sm:$0xff] }
 0x1e5   : > { %v1217_v27 = vsel %vm758_vm1, %v1084_v57, %v1095_v29  ;;  %v1213_v35 = vsel %vm758_vm1, %v1083_v12, %v1094_v32  ;;  %v4349_v47 = vcombine.high %v1580_v51, %v1580_v51  ;;  %v4356_v23 = vcombine.high %v1581_v55, %v1581_v55 }
 0x1e6   : > { %1340 = vrot.lane.b32.xlu1 %v1293_v33, %s6034_s29  ;;  %1342 = vrot.lane.b32.xlu0 %v1083_v12, %s6034_s29  ;;  %v4366_v33 = vcombine.low %v1580_v51, %v1580_v51 }
 0x1e7   : > { %1406 = vmatprep.subr.bf16.mxu0 %v1217_v27  ;;  %v1093_v60 = vpop.permute.xlu1 %1092  ;;  %v1098_v46 = vpop.permute.xlu0 %1097 }
 0x1e8   : > { %v1096_v53 = vsel %vm682_vm11, %v1091_v52, %v1093_v60  ;;  %1407 = vmatpush1.bf16.msra.mxu0 %v1213_v35  ;;  %v4358_v52 = vcombine.low %v1581_v55, %v1581_v55 }
 0x1e9   : > { %v1221_v22 = vsel %vm758_vm1, %v1085_v61, %v1096_v53 }
 0x1ea   : > { %1346 = vrot.lane.b32.xlu0 %v1085_v61, %s6034_s29  ;;  %1344 = vrot.lane.b32.xlu1 %v1084_v57, %s6034_s29 }
 0x1eb   : > { %v1100_v30 = vpop.permute.xlu1 %1099  ;;  %1448 = vmatpush1.bf16.msra.mxu1 %v1221_v22  ;;  %v1102_v58 = vpop.permute.xlu0 %1101 }
 0x1ec   : > { %1449 = vmatprep.subr.bf16.mxu1 %v6033_v56  ;;  %v1105_v57 = vsel %vm694_vm12, %v1098_v46, %v1100_v30  ;;  %v1106_v12 = vsel %vm694_vm12, %v1100_v30, %v1102_v58 }
 0x1ee   : > { %1602 = vrot.lane.b32.xlu0 %v4349_v47, %s6036_s2  ;;  %1348 = vrot.lane.b32.xlu1 %v1082_v26, %s6034_s29 }
 0x1ef   : > { %v1104_v32 = vpop.permute.xlu1 %1103  ;;  %v1109_v29 = vpop.permute.xlu0 %1108 }
 0x1f0   : > { %v1107_v53 = vsel %vm694_vm12, %v1102_v58, %v1104_v32 }
 0x1f2   : > { %1606 = vrot.lane.b32.xlu0 %v4356_v23, %s6036_s2  ;;  %1604 = vrot.lane.b32.xlu1 %v4358_v52, %s6036_s2 }
 0x1f3   : > { %v1111_v26 = vpop.permute.xlu1 %1110  ;;  %v1113_v27 = vpop.permute.xlu0 %1112 }
 0x1f4   : > { %v1116_v35 = vsel %vm706_vm13, %v1109_v29, %v1111_v26  ;;  %v1117_v61 = vsel %vm706_vm13, %v1111_v26, %v1113_v27 }
 0x1f5   : > { %v1229_v60 = vsel %vm758_vm1, %v1106_v12, %v1117_v61  ;;  %v1225_v46 = vsel %vm758_vm1, %v1105_v57, %v1116_v35 }
 0x1f6   : > { %1613 = vrot.lane.b32.xlu0 %v4349_v47, %s6037_s12  ;;  %1600 = vrot.lane.b32.xlu1 %v4366_v33, %s6036_s2 }
 0x1f7   : > { %v1115_v51 = vpop.permute.xlu1 %1114  ;;  %v1120_v22 = vpop.permute.xlu0 %1119  ;;  %1408 = vmatprep.subr.bf16.mxu0 %v1229_v60 }
 0x1f8   : > { %v1118_v30 = vsel %vm706_vm13, %v1113_v27, %v1115_v51  ;;  %1409 = vmatpush1.bf16.msra.mxu0 %v1225_v46 }
 0x1f9   : > { %v1233_v55 = vsel %vm758_vm1, %v1107_v53, %v1118_v30 }
 0x1fa   : > { %1617 = vrot.lane.b32.xlu0 %v4356_v23, %s6037_s12  ;;  %1615 = vrot.lane.b32.xlu1 %v4358_v52, %s6037_s12 }
 0x1fb   : > { %v1122_v58 = vpop.permute.xlu1 %1121  ;;  %v1124_v32 = vpop.permute.xlu0 %1123  ;;  %1450 = vmatpush1.bf16.msra.mxu1 %v1233_v55 }
 0x1fc   : > { %1451 = vmatprep.subr.bf16.mxu1 %v6033_v56  ;;  %v1128_v29 = vsel %vm718_vm14, %v1122_v58, %v1124_v32  ;;  %v1127_v35 = vsel %vm718_vm14, %v1120_v22, %v1122_v58 }
 0x1fe   : > { %1626 = vrot.lane.b32.xlu0 %v4358_v52, %s6038_s14  ;;  %1624 = vrot.lane.b32.xlu1 %v4349_v47, %s6038_s14 }
 0x1ff   : > { %v1133_v57 = vpop.permute.xlu1 %1132  ;;  %v1135_v12 = vpop.permute.xlu0 %1134 }
 0x200   : > { %v1139_v26 = vsel %vm730_vm15, %v1133_v57, %v1135_v12 }
 0x201   : > { %v1241_v27 = vsel %vm758_vm1, %v1128_v29, %v1139_v26 }
 0x202   : > { %1611 = vrot.lane.b32.xlu0 %v4366_v33, %s6037_s12  ;;  %1628 = vrot.lane.b32.xlu1 %v4356_v23, %s6038_s14 }
 0x203   : > { %v1131_v61 = vpop.permute.xlu1 %1130  ;;  %v1126_v60 = vpop.permute.xlu0 %1125  ;;  %1410 = vmatprep.subr.bf16.mxu0 %v1241_v27 }
 0x204   : > { %v1138_v46 = vsel %vm730_vm15, %v1131_v61, %v1133_v57  ;;  %v1129_v51 = vsel %vm718_vm14, %v1124_v32, %v1126_v60 }
 0x205   : > { %v1237_v53 = vsel %vm758_vm1, %v1127_v35, %v1138_v46 }
 0x206   : > { %1646 = vrot.lane.b32.xlu0 %v4349_v47, %s6039_s15  ;;  %1622 = vrot.lane.b32.xlu1 %v4366_v33, %s6038_s14 }
 0x207   : > { %v1137_v22 = vpop.permute.xlu1 %1136  ;;  %v1144_v30 = vpop.permute.xlu0 %1143  ;;  %1411 = vmatpush1.bf16.msra.mxu0 %v1237_v53 }
 0x208   : > { %v1140_v55 = vsel %vm730_vm15, %v1135_v12, %v1137_v22 }
 0x209   : > { %v1245_v58 = vsel %vm758_vm1, %v1129_v51, %v1140_v55 }
 0x20a   : > { %1650 = vrot.lane.b32.xlu0 %v4356_v23, %s6039_s15  ;;  %1648 = vrot.lane.b32.xlu1 %v4358_v52, %s6039_s15 }
 0x20b   : > { %v1146_v32 = vpop.permute.xlu1 %1145  ;;  %v1155_v29 = vpop.permute.xlu0 %1154  ;;  %1452 = vmatpush1.bf16.msra.mxu1 %v1245_v58 }
 0x20c   : > { %1453 = vmatprep.subr.bf16.mxu1 %v6033_v56  ;;  %v1150_v57 = vsel %vm742_vm5, %v1144_v30, %v1146_v32 }
 0x20e   : > { %1865 = vrot.lane.b32.xlu0 %v4358_v52, %s6004_s21  ;;  %1863 = vrot.lane.b32.xlu1 %v4349_v47, %s6004_s21 }
 0x20f   : > { %v1157_v12 = vpop.permute.xlu1 %1156  ;;  %v1142_v26 = vpop.permute.xlu0 %1141 }
 0x210   : > { %v1161_v27 = vsel %vm754_vm8, %v1155_v29, %v1157_v12  ;;  %v1149_v61 = vsel %vm742_vm5, %v1142_v26, %v1144_v30 }
 0x211   : > { %v1253_v35 = vsel %vm758_vm1, %v1150_v57, %v1161_v27 }
 0x212   : > { %1644 = vrot.lane.b32.xlu0 %v4366_v33, %s6039_s15  ;;  %1867 = vrot.lane.b32.xlu1 %v4356_v23, %s6004_s21 }
 0x213   : > { %v1153_v60 = vpop.permute.xlu1 %1152  ;;  %v1148_v46 = vpop.permute.xlu0 %1147  ;;  %1412 = vmatprep.subr.bf16.mxu0 %v1253_v35 }
 0x214   : > { %v1160_v53 = vsel %vm754_vm8, %v1153_v60, %v1155_v29  ;;  %v1151_v22 = vsel %vm742_vm5, %v1146_v32, %v1148_v46 }
 0x215   : > { %v1249_v51 = vsel %vm758_vm1, %v1149_v61, %v1160_v53 }
 0x216   : > { %1657 = vrot.lane.b32.xlu0 %v4349_v47, %s6001_s16  ;;  %1861 = vrot.lane.b32.xlu1 %v4366_v33, %s6004_s21 }
 0x217   : > { %v1159_v30 = vpop.permute.xlu1 %1158  ;;  %v1313_v55 = vpop.permute.xlu0 %1312  ;;  %1413 = vmatpush1.bf16.msra.mxu0 %v1249_v51 }
 0x218   : > { %v1162_v58 = vsel %vm754_vm8, %v1157_v12, %v1159_v30 }
 0x219   : > { %v1257_v57 = vsel %vm758_vm1, %v1151_v22, %v1162_v58 }
 0x21a   : > { %1661 = vrot.lane.b32.xlu0 %v4356_v23, %s6001_s16  ;;  %1659 = vrot.lane.b32.xlu1 %v4358_v52, %s6001_s16 }
 0x21b   : > { %v1315_v32 = vpop.permute.xlu1 %1314  ;;  %v1311_v29 = vpop.permute.xlu0 %1310  ;;  %1454 = vmatpush1.bf16.msra.mxu1 %v1257_v57 }
 0x21c   : > { %v1351_v26 = vsel %vm947_vm7, %v1313_v55, %v1315_v32  ;;  %v1350_v27 = vsel %vm947_vm7, %v1311_v29, %v1313_v55  ;;  %1455 = vmatprep.subr.bf16.mxu1 %v6033_v56 }
 0x21d   : > { %1414 = vmatprep.subr.bf16.mxu0 %v1351_v26 }
 0x21e   : > { %1670 = vrot.lane.b32.xlu0 %v4358_v52, %s6002_s18  ;;  %1668 = vrot.lane.b32.xlu1 %v4349_v47, %s6002_s18 }
 0x21f   : > { %1415 = vmatpush1.bf16.msra.mxu0 %v1350_v27  ;;  %v1317_v12 = vpop.permute.xlu1 %1316 }
 0x220   : > { %v1321_v35 = vpop.permute.xlu0 %1320  ;;  %v1352_v61 = vsel %vm947_vm7, %v1315_v32, %v1317_v12 }
 0x221   : > { %1456 = vmatpush1.bf16.msra.mxu1 %v1352_v61 }
 0x222   : > { %1655 = vrot.lane.b32.xlu0 %v4366_v33, %s6001_s16  ;;  %1672 = vrot.lane.b32.xlu1 %v4356_v23, %s6002_s18 }
 0x223   : > { %1457 = vmatprep.subr.bf16.mxu1 %v6033_v56 }
 0x224   : > { %v1323_v60 = vpop.permute.xlu1 %1322 }
 0x225   : > { %v1319_v46 = vpop.permute.xlu0 %1318  ;;  %v1354_v53 = vsel %vm947_vm7, %v1321_v35, %v1323_v60 }
 0x226   : > { %1677 = vrot.lane.b32.xlu0 %v4366_v33, %s6003_s20  ;;  %1666 = vrot.lane.b32.xlu1 %v4366_v33, %s6002_s18  ;;  %v1353_v51 = vsel %vm947_vm7, %v1319_v46, %v1321_v35  ;;  %v2085_v35 = vld [vmem:[%s4312_s11] sm:$0xff] }
 0x227   : > { %1416 = vmatprep.subr.bf16.mxu0 %v1354_v53 }
 0x228   : > { %1417 = vmatpush1.bf16.msra.mxu0 %v1353_v51  ;;  %v1325_v22 = vpop.permute.xlu1 %1324  ;;  %v4511_v51 = vcombine.high %v2085_v35, %v2085_v35 }
 0x229   : > { %v1355_v30 = vsel %vm947_vm7, %v1323_v60, %v1325_v22  ;;  %v2086_v22 = vld [vmem:[%s4312_s11 + $0x8] sm:$0xff] }
 0x22a   : > { %1681 = vrot.lane.b32.xlu0 %v4358_v52, %s6003_s20  ;;  %1679 = vrot.lane.b32.xlu1 %v4349_v47, %s6003_s20 }
 0x22b   : > { %1458 = vmatpush1.bf16.msra.mxu1 %v1355_v30 }
 0x22c   : > { %1459 = vmatprep.subr.bf16.mxu1 %v6033_v56 }
 0x22e   : > { %1635 = vrot.lane.b32.xlu0 %v4349_v47, %s6040_s0  ;;  %1683 = vrot.lane.b32.xlu1 %v4356_v23, %s6003_s20 }
 0x232   : > { %1633 = vrot.lane.b32.xlu0 %v4366_v33, %s6040_s0  ;;  %1637 = vrot.lane.b32.xlu1 %v4358_v52, %s6040_s0 }
 0x236   : > { %1690 = vrot.lane.b32.xlu0 %v4349_v47, %s6008_s19  ;;  %1639 = vrot.lane.b32.xlu1 %v4356_v23, %s6040_s0 }
 0x23a   : > { %1688 = vrot.lane.b32.xlu0 %v4366_v33, %s6008_s19  ;;  %1692 = vrot.lane.b32.xlu1 %v4358_v52, %s6008_s19 }
 0x23e   : > { %1701 = vrot.lane.b32.xlu0 %v4349_v47, %s6012_s25  ;;  %1694 = vrot.lane.b32.xlu1 %v4356_v23, %s6008_s19 }
 0x242   : > { %1712 = vrot.lane.b32.xlu0 %v4349_v47, %s6015_s26  ;;  %1703 = vrot.lane.b32.xlu1 %v4358_v52, %s6012_s25 }
 0x246   : > { %1699 = vrot.lane.b32.xlu0 %v4366_v33, %s6012_s25  ;;  %1714 = vrot.lane.b32.xlu1 %v4358_v52, %s6015_s26 }
 0x248   : > { %v1329_v55 = vpop.permute.xlu0 %1328 }
 0x24a   : > { %1705 = vrot.lane.b32.xlu0 %v4356_v23, %s6012_s25  ;;  %1710 = vrot.lane.b32.xlu1 %v4366_v33, %s6015_s26 }
 0x24c   : > { %v1331_v58 = vpop.permute.xlu1 %1330  ;;  %v1327_v57 = vpop.permute.xlu0 %1326 }
 0x24d   : > { %v1357_v32 = vsel %vm947_vm7, %v1329_v55, %v1331_v58  ;;  %v1356_v29 = vsel %vm947_vm7, %v1327_v57, %v1329_v55  ;;  %v4519_v57 = vcombine.low %v2086_v22, %v2086_v22 }
 0x24e   : > { %1723 = vrot.lane.b32.xlu0 %v4349_v47, %s6020_s27  ;;  %1716 = vrot.lane.b32.xlu1 %v4356_v23, %s6015_s26 }
 0x24f   : > { %1418 = vmatprep.subr.bf16.mxu0 %v1357_v32  ;;  %v4521_v32 = vcombine.high %v2086_v22, %v2086_v22 }
 0x250   : > { %1419 = vmatpush1.bf16.msra.mxu0 %v1356_v29  ;;  %v1333_v26 = vpop.permute.xlu1 %1332  ;;  %v1337_v27 = vpop.permute.xlu0 %1336 }
 0x251   : > { %v1358_v12 = vsel %vm947_vm7, %v1331_v58, %v1333_v26 }
 0x252   : > { %1725 = vrot.lane.b32.xlu1 %v4358_v52, %s6020_s27  ;;  %1734 = vrot.lane.b32.xlu0 %v4349_v47, %s6025_s28 }
 0x253   : > { %1460 = vmatpush1.bf16.msra.mxu1 %v1358_v12 }
 0x254   : > { %v1339_v61 = vpop.permute.xlu1 %1338  ;;  %v1335_v60 = vpop.permute.xlu0 %1334  ;;  %1461 = vmatprep.subr.bf16.mxu1 %v6033_v56 }
 0x255   : > { %v1360_v46 = vsel %vm947_vm7, %v1337_v27, %v1339_v61  ;;  %v1359_v53 = vsel %vm947_vm7, %v1335_v60, %v1337_v27  ;;  %v4531_v60 = vcombine.low %v2085_v35, %v2085_v35 }
 0x256   : > { %1736 = vrot.lane.b32.xlu1 %v4358_v52, %s6025_s28  ;;  %1721 = vrot.lane.b32.xlu0 %v4366_v33, %s6020_s27 }
 0x257   : > { %1420 = vmatprep.subr.bf16.mxu0 %v1360_v46  ;;  %v4536_v46 = vld [vmem:[%s5924_s5] sm:$0xff] }
 0x258   : > { %1421 = vmatpush1.bf16.msra.mxu0 %v1359_v53  ;;  %v1341_v30 = vpop.permute.xlu1 %1340  ;;  %v1343_v55 = vpop.permute.xlu0 %1342  ;;  %v3405_v53 = vcombine.low %v4326_v43, %v4326_v43  ;;  %v3411_v35 = vcombine.high %v4536_v46, %v4536_v46 }
 0x259   : > { %v1361_v58 = vsel %vm947_vm7, %v1339_v61, %v1341_v30 }
 0x25a   : > { %1732 = vrot.lane.b32.xlu1 %v4366_v33, %s6025_s28  ;;  %2107 = vrot.lane.b32.xlu0 %v4511_v51, %s6036_s2 }
 0x25b   : > { %1462 = vmatpush1.bf16.msra.mxu1 %v1361_v58 }
 0x25c   : > { %v1345_v29 = vpop.permute.xlu1 %1344  ;;  %v1347_v26 = vpop.permute.xlu0 %1346  ;;  %1463 = vmatprep.subr.bf16.mxu1 %v6033_v56 }
 0x25d   : > { %v1363_v27 = vsel %vm947_vm7, %v1345_v29, %v1347_v26  ;;  %v1362_v12 = vsel %vm947_vm7, %v1343_v55, %v1345_v29 }
 0x25e   : > { %2109 = vrot.lane.b32.xlu1 %v4519_v57, %s6036_s2  ;;  %2111 = vrot.lane.b32.xlu0 %v4521_v32, %s6036_s2  ;;  %v1390_v61 = vsel %vm758_vm1, %v1362_v12, 0 }
 0x25f   : > { %3407 = vmatprep.subr.msk.bf16.mxu0 %vm758_vm1, %v1363_v27  ;;  %v623_v27 = vsel %vm5982_vm9, %v3898_v41, %v3896_v40  ;;  %v625_v41 = vsel %vm5982_vm9, %v3909_v45, %v3907_v44 }
 0x260   : > { %1423 = vmatpush1.bf16.msra.mxu0 %v1390_v61  ;;  %v1349_v22 = vpop.permute.xlu1 %1348  ;;  %v4541_v30 = vpop.permute.xlu0 %1602 }
 0x261   : > { %v1364_v55 = vsel %vm947_vm7, %v1347_v26, %v1349_v22  ;;  %1497 = vmatprep.subr.bf16.mxu0 %v3850_v17  ;;  %v624_v17 = vsel %vm5982_vm9, %v3896_v40, %v3909_v45  ;;  %v684_v40 = vsel %vm682_vm11, %v3929_v62, %v3935_v1  ;;  %v708_v45 = vsel %vm706_vm13, %v3945_v6, %v3951_v9 }
 0x262   : > { %2105 = vrot.lane.b32.xlu1 %v4531_v60, %s6036_s2  ;;  %1727 = vrot.lane.b32.xlu0 %v4356_v23, %s6020_s27  ;;  %v1396_v58 = vsel %vm758_vm1, %v1364_v55, 0  ;;  %v789_v26 = vsel %vm758_vm1, %v624_v17, %v3993_v37  ;;  %v813_v44 = vsel %vm758_vm1, %v4057_v59, %v684_v40 }
 0x263   : > { %1431 = vmatmul.mubr.bf16.vlgmr.msra.gmra.mrb[0].mxu0 %v3405_v53  ;;  %1464 = vmatpush1.bf16.msra.mxu1 %v1396_v58 }
 0x264   : > { %1498 = vmatpush1.bf16.msra.mxu0 %v3853_v18  ;;  %v4553_v43 = vpop.permute.xlu1 %1604  ;;  %v4555_v29 = vpop.permute.xlu0 %1606  ;;  %1538 = vmatprep.subr.bf16.mxu1 %v6033_v56 }
 0x265   : > { %1499 = vmatprep.subr.bf16.mxu0 %v3891_v38  ;;  %3413 = vmatprep.mubr.msk.bf16.mxu0 %vm1385_vm10, %v3411_v35 }
 0x266   : > { %1738 = vrot.lane.b32.xlu1 %v4356_v23, %s6025_s28  ;;  %1745 = vrot.lane.b32.xlu0 %v4349_v47, %s6030_s22 }
 0x267   : > { %1472 = vmatmul.mubr.bf16.vlgmr.msra.gmra.mrb[0].mxu1 %v3405_v53 }
 0x268   : > { %1500 = vmatpush1.bf16.msra.mxu0 %v3885_v36  ;;  %1539 = vmatpush1.bf16.msra.mxu1 %v3856_v19  ;;  %v4569_v18 = vpop.permute.xlu1 %1600  ;;  %v4571_v38 = vpop.permute.xlu0 %1613  ;;  %v785_v19 = vsel %vm758_vm1, %v623_v27, %v3986_v31  ;;  %v683_v31 = vsel %vm682_vm11, %v3931_v63, %v3929_v62  ;;  %v696_v62 = vsel %vm694_vm12, %v3937_v2, %v3943_v5 }
 0x269   : > { %1501 = vmatprep.subr.bf16.mxu0 %v789_v26  ;;  %1540 = vmatprep.subr.bf16.mxu1 %v6033_v56  ;;  %v809_v63 = vsel %vm758_vm1, %v4040_v50, %v683_v31  ;;  %v825_v53 = vsel %vm758_vm1, %v696_v62, %v708_v45  ;;  %v732_v50 = vsel %vm730_vm15, %v3961_v14, %v3967_v20  ;;  %v6042_v26 = vld [vmem:[#allocation7_spill] sm:$0xff]  ;;  %v6046_v31 = vld [vmem:[#allocation13_spill] sm:$0xff] }
 0x26a   : > { %1747 = vrot.lane.b32.xlu1 %v4358_v52, %s6030_s22  ;;  %1756 = vrot.lane.b32.xlu0 %v4349_v47, %s6032_s23  ;;  %v6047_v45 = vld [vmem:[#allocation9_spill] sm:$0xff] }
 0x26b   : > { %3414 = vmatprep.mubr.msk.bf16.mxu1 %vm1385_vm10, %v3411_v35  ;;  %v745_v62 = vsel %vm742_vm5, %v3975_v24, %v6047_v45 }
 0x26c   : > { %1502 = vmatpush1.bf16.msra.mxu0 %v785_v19  ;;  %1541 = vmatpush1.bf16.msra.mxu1 %v3901_v42  ;;  %v4587_v36 = vpop.permute.xlu1 %1615  ;;  %v4589_v37 = vpop.permute.xlu0 %1617  ;;  %v793_v42 = vsel %vm758_vm1, %v625_v41, %v3997_v39  ;;  %v685_v39 = vsel %vm682_vm11, %v3935_v1, %v3933_v0  ;;  %v695_v0 = vsel %vm694_vm12, %v3939_v3, %v3937_v2 }
 0x26d   : > { %1503 = vmatprep.subr.bf16.mxu0 %v4031_v54  ;;  %1542 = vmatprep.subr.bf16.mxu1 %v6033_v56  ;;  %v720_v1 = vsel %vm718_vm14, %v3953_v10, %v3959_v13  ;;  %v709_v2 = vsel %vm706_vm13, %v3951_v9, %v3949_v8  ;;  %v731_v3 = vsel %vm730_vm15, %v3963_v15, %v3961_v14 }
 0x26e   : > { %1758 = vrot.lane.b32.xlu1 %v4358_v52, %s6032_s23  ;;  %1743 = vrot.lane.b32.xlu0 %v4366_v33, %s6030_s22  ;;  %v837_v55 = vsel %vm758_vm1, %v720_v1, %v732_v50  ;;  %v697_v8 = vsel %vm694_vm12, %v3943_v5, %v3941_v4  ;;  %v719_v9 = vsel %vm718_vm14, %v3955_v11, %v3953_v10  ;;  %v6041_v10 = vld [vmem:[#allocation10_spill] sm:$0xff] }
 0x26f   : > { %v744_v14 = vsel %vm742_vm5, %v3969_v21, %v3975_v24  ;;  %v833_v15 = vsel %vm758_vm1, %v719_v9, %v731_v3  ;;  %v829_v4 = vsel %vm758_vm1, %v697_v8, %v709_v2  ;;  %v733_v5 = vsel %vm730_vm15, %v3967_v20, %v3965_v16  ;;  %v6043_v20 = vld [vmem:[#allocation8_spill] sm:$0xff]  ;;  %v6049_v50 = vld [vmem:[#allocation18_spill] sm:$0xff]  ;;  %v6054_v9 = vld [vmem:[#allocation21_spill] sm:$0xff] }
 0x270   : > { %1504 = vmatpush1.bf16.msra.mxu0 %v4011_v49  ;;  %1543 = vmatpush1.bf16.msra.mxu1 %v793_v42  ;;  %v4609_v54 = vpop.permute.xlu1 %1624  ;;  %v4611_v12 = vpop.permute.xlu0 %1626  ;;  %v707_v49 = vsel %vm706_vm13, %v3947_v7, %v3945_v6  ;;  %v817_v7 = vsel %vm758_vm1, %v4052_v34, %v685_v39  ;;  %v756_v34 = vsel %vm754_vm8, %v3977_v25, %v3983_v28  ;;  %v6045_v42 = vld [vmem:[#allocation14_spill] sm:$0xff]  ;;  %v6051_v2 = vld [vmem:[#allocation16_spill] sm:$0xff] }
 0x271   : > { %1505 = vmatprep.subr.bf16.mxu0 %v813_v44  ;;  %1544 = vmatprep.subr.bf16.mxu1 %v6033_v56  ;;  %v821_v6 = vsel %vm758_vm1, %v695_v0, %v707_v49  ;;  %v755_v11 = vsel %vm754_vm8, %v6041_v10, %v3977_v25  ;;  %v849_v17 = vsel %vm758_vm1, %v744_v14, %v756_v34  ;;  %v6050_v0 = vld [vmem:[#allocation17_spill] sm:$0xff]  ;;  %v6056_v10 = vld [vmem:[#allocation20_spill] sm:$0xff] }
 0x272   : > { %1754 = vrot.lane.b32.xlu1 %v4366_v33, %s6032_s23  ;;  %2118 = vrot.lane.b32.xlu0 %v4511_v51, %s6037_s12  ;;  %v721_v16 = vsel %vm718_vm14, %v3959_v13, %v6042_v26  ;;  %v743_v25 = vsel %vm742_vm5, %v6043_v20, %v3969_v21  ;;  %v6044_v13 = vld [vmem:[#allocation11_spill] sm:$0xff]  ;;  %v949_v44 = vsel %vm947_vm7, %v6046_v31, %v6045_v42  ;;  %v6057_v26 = vld [vmem:[#allocation26_spill] sm:$0xff] }
 0x273   : > { %v845_v27 = vsel %vm758_vm1, %v743_v25, %v755_v11  ;;  %v841_v19 = vsel %vm758_vm1, %v721_v16, %v733_v5  ;;  %v757_v21 = vsel %vm754_vm8, %v3983_v28, %v6044_v13  ;;  %v1609_v28 = vsel %vm586_vm0, %v4541_v30, %v4553_v43  ;;  %v6058_v16 = vld [vmem:[#allocation25_spill] sm:$0xff]  ;;  %v6059_v25 = vld [vmem:[#allocation23_spill] sm:$0xff] }
 0x274   : > { %1506 = vmatpush1.bf16.msra.mxu0 %v809_v63  ;;  %1545 = vmatpush1.bf16.msra.mxu1 %v4028_v48  ;;  %v4635_v59 = vpop.permute.xlu1 %1628  ;;  %v4637_v61 = vpop.permute.xlu0 %1611  ;;  %v6048_v63 = vld [vmem:[#allocation12_spill] sm:$0xff]  ;;  %v853_v49 = vsel %vm758_vm1, %v745_v62, %v757_v21  ;;  %v952_v1 = vsel %vm947_vm7, %v6050_v0, %v6049_v50  ;;  %v951_v3 = vsel %vm947_vm7, %v6051_v2, %v6050_v0  ;;  %v6061_v21 = vld [vmem:[#allocation29_spill] sm:$0xff]  ;;  %v6063_v62 = vld [vmem:[#allocation30_spill] sm:$0xff] }
 0x275   : > { %1507 = vmatprep.subr.bf16.mxu0 %v825_v53  ;;  %1546 = vmatprep.subr.bf16.mxu1 %v6033_v56  ;;  %v948_v39 = vsel %vm947_vm7, %v6048_v63, %v6046_v31  ;;  %v954_v11 = vsel %vm947_vm7, %v6056_v10, %v6054_v9  ;;  %v958_v20 = vsel %vm947_vm7, %v6058_v16, %v6057_v26 }
 0x276   : > { %2120 = vrot.lane.b32.xlu1 %v4519_v57, %s6037_s12  ;;  %2122 = vrot.lane.b32.xlu0 %v4521_v32, %s6037_s12  ;;  %v1608_v63 = vsel %vm586_vm0, %v4569_v18, %v4541_v30  ;;  %v3410_v0 = vcombine.low %v4536_v46, %v4536_v46  ;;  %v1621_v10 = vsel %vm5981_vm3, %v4587_v36, %v4589_v37 }
 0x278   : > { %1508 = vmatpush1.bf16.msra.mxu0 %v821_v6  ;;  %1547 = vmatpush1.bf16.msra.mxu1 %v817_v7  ;;  %v4664_v48 = vpop.permute.xlu1 %1622  ;;  %v4666_v22 = vpop.permute.xlu0 %1646  ;;  %v1875_v6 = vsel %vm758_vm1, %v4349_v47, %v1609_v28  ;;  %v4756_v7 = vsel %vm586_vm0, %v4553_v43, %v4555_v29  ;;  %v6053_v43 = vld [vmem:[#allocation22_spill] sm:$0xff]  ;;  %v961_v28 = vsel %vm947_vm7, %v6061_v21, %v6063_v62 }
 0x279   : > { %1509 = vmatprep.subr.bf16.mxu0 %v837_v55  ;;  %1548 = vmatprep.subr.bf16.mxu1 %v6033_v56  ;;  %v6052_v55 = vld [vmem:[#allocation15_spill] sm:$0xff]  ;;  %v955_v14 = vsel %vm947_vm7, %v6054_v9, %v6053_v43 }
 0x27a   : > { %2129 = vrot.lane.b32.xlu1 %v4511_v51, %s6038_s14  ;;  %2131 = vrot.lane.b32.xlu0 %v4519_v57, %s6038_s14  ;;  %v950_v47 = vsel %vm947_vm7, %v6045_v42, %v6052_v55  ;;  %v6062_v42 = vld [vmem:[#allocation28_spill] sm:$0xff]  ;;  %v1873_v55 = vsel %vm758_vm1, %v4366_v33, %v1608_v63 }
 0x27b   : > { %v960_v31 = vsel %vm947_vm7, %v6062_v42, %v6061_v21 }
 0x27c   : > { %1510 = vmatpush1.bf16.msra.mxu0 %v833_v15  ;;  %1549 = vmatpush1.bf16.msra.mxu1 %v829_v4  ;;  %v4694_v35 = vpop.permute.xlu1 %1648  ;;  %v4696_v58 = vpop.permute.xlu0 %1650  ;;  %v1877_v15 = vsel %vm758_vm1, %v4358_v52, %v4756_v7  ;;  %v6055_v4 = vld [vmem:[#allocation19_spill] sm:$0xff] }
 0x27d   : > { %1511 = vmatprep.subr.bf16.mxu0 %v849_v17  ;;  %1550 = vmatprep.subr.bf16.mxu1 %v6033_v56  ;;  %v953_v5 = vsel %vm947_vm7, %v6049_v50, %v6055_v4  ;;  %v1489_v50 = vsel %vm758_vm1, %v960_v31, 0  ;;  %v1632_v4 = vsel %vm610_vm2, %v4611_v12, %v4635_v59  ;;  %v1654_v31 = vsel %vm5983_vm4, %v4694_v35, %v4696_v58 }
 0x27e   : > { %2133 = vrot.lane.b32.xlu1 %v4521_v32, %s6038_s14  ;;  %2116 = vrot.lane.b32.xlu0 %v4531_v60, %s6037_s12 }
 0x280   : > { %1512 = vmatpush1.bf16.msra.mxu0 %v845_v27  ;;  %1551 = vmatpush1.bf16.msra.mxu1 %v841_v19  ;;  %v4721_v40 = vpop.permute.xlu1 %1863  ;;  %v4723_v41 = vpop.permute.xlu0 %1865  ;;  %v956_v27 = vsel %vm947_vm7, %v6053_v43, %v6059_v25  ;;  %v6060_v19 = vld [vmem:[#allocation24_spill] sm:$0xff] }
 0x281   : > { %1513 = vmatprep.subr.bf16.mxu0 %v949_v44  ;;  %1552 = vmatprep.subr.bf16.mxu1 %v6033_v56  ;;  %v957_v13 = vsel %vm947_vm7, %v6060_v19, %v6058_v16  ;;  %v3541_v43 = vld [vmem:[%s4153_s24 + $0x8] ss:$0 sps:$4 sm:$0xff]  }
 0x282   : > { %2127 = vrot.lane.b32.xlu1 %v4531_v60, %s6038_s14  ;;  %1749 = vrot.lane.b32.xlu0 %v4356_v23, %s6030_s22 }
 0x284   : > { %1514 = vmatpush1.bf16.msra.mxu0 %v948_v39  ;;  %1553 = vmatpush1.bf16.msra.mxu1 %v853_v49  ;;  %v4743_v53 = vpop.permute.xlu1 %1867  ;;  %v4745_v24 = vpop.permute.xlu0 %1644  ;;  %v6064_v39 = vld [vmem:[#allocation27_spill] sm:$0xff] }
 0x285   : > { %1515 = vmatprep.subr.bf16.mxu0 %v952_v1  ;;  %1554 = vmatprep.subr.bf16.mxu1 %v6033_v56  ;;  %v959_v49 = vsel %vm947_vm7, %v6057_v26, %v6064_v39  ;;  %v6065_v1 = vld [vmem:[#allocation31_spill] sm:$0xff]  ;;  %v4891_v26 = vsel %vm5983_vm4, %v4745_v24, %v4666_v22 }
 0x286   : > { %1760 = vrot.lane.b32.xlu1 %v4356_v23, %s6032_s23  ;;  %1914 = vrot.lane.b32.xlu0 %v1875_v6, %s6034_s29  ;;  %v962_v30 = vsel %vm947_vm7, %v6063_v62, %v6065_v1 }
 0x287   : > { %v1495_v46 = vsel %vm758_vm1, %v962_v30, 0 }
 0x288   : > { %1516 = vmatpush1.bf16.msra.mxu0 %v951_v3  ;;  %1555 = vmatpush1.bf16.msra.mxu1 %v950_v47  ;;  %v4767_v34 = vpop.permute.xlu1 %1861  ;;  %v4769_v8 = vpop.permute.xlu0 %1657  ;;  %v1631_v3 = vsel %vm610_vm2, %v4609_v54, %v4611_v12  ;;  %v1620_v47 = vsel %vm5981_vm3, %v4571_v38, %v4587_v36  ;;  %v1787_v12 = vsel %vm758_vm1, %v1621_v10, %v1632_v4 }
 0x289   : > { %1517 = vmatprep.subr.bf16.mxu0 %v955_v14  ;;  %1556 = vmatprep.subr.bf16.mxu1 %v6033_v56  ;;  %v1783_v14 = vsel %vm758_vm1, %v1620_v47, %v1631_v3 }
 0x28a   : > { %2151 = vrot.lane.b32.xlu0 %v4511_v51, %s6039_s15  ;;  %1916 = vrot.lane.b32.xlu1 %v1877_v15, %s6034_s29  ;;  %v1619_v15 = vsel %vm5981_vm3, %v4637_v61, %v4571_v38  ;;  %v1880_v61 = vsel %vm758_vm1, %v4356_v23, %v4555_v29  ;;  %v1653_v23 = vsel %vm5983_vm4, %v4666_v22, %v4694_v35  ;;  %vm6066_vm3 = vcmask 875520  }
 0x28c   : > { %1518 = vmatpush1.bf16.msra.mxu0 %v954_v11  ;;  %1557 = vmatpush1.bf16.msra.mxu1 %v953_v5  ;;  %v4787_v17 = vpop.permute.xlu1 %1659  ;;  %v4789_v52 = vpop.permute.xlu0 %1661 }
 0x28d   : > { %1519 = vmatprep.subr.bf16.mxu0 %v958_v20  ;;  %1558 = vmatprep.subr.bf16.mxu1 %v6033_v56  ;;  %v1664_v24 = vsel %vm6066_vm3, %v4769_v8, %v4787_v17 }
 0x28e   : > { %2155 = vrot.lane.b32.xlu0 %v4521_v32, %s6039_s15  ;;  %2153 = vrot.lane.b32.xlu1 %v4519_v57, %s6039_s15 }
 0x290   : > { %1520 = vmatpush1.bf16.msra.mxu0 %v957_v13  ;;  %1559 = vmatpush1.bf16.msra.mxu1 %v956_v27  ;;  %v4808_v44 = vpop.permute.xlu1 %1668  ;;  %v4810_v45 = vpop.permute.xlu0 %1670 }
 0x291   : > { %3412 = vmatprep.subr.msk.bf16.mxu0 %vm758_vm1, %v961_v28  ;;  %1560 = vmatprep.subr.bf16.mxu1 %v6033_v56  ;;  %v1675_v16 = vsel %vm658_vm6, %v4808_v44, %v4810_v45 }
 0x292   : > { %2370 = vrot.lane.b32.xlu0 %v4519_v57, %s6004_s21  ;;  %2368 = vrot.lane.b32.xlu1 %v4511_v51, %s6004_s21  ;;  %v4911_v42 = vsel %vm758_vm1, %v1664_v24, %v1675_v16 }
 0x294   : > { %1522 = vmatpush1.bf16.msra.mxu0 %v1489_v50  ;;  %1561 = vmatpush1.bf16.msra.mxu1 %v959_v49  ;;  %v4833_v18 = vpop.permute.xlu1 %1672  ;;  %v4835_v2 = vpop.permute.xlu0 %1655 }
 0x295   : > { %1999 = vmatprep.subr.bf16.mxu0 %v1875_v6  ;;  %1562 = vmatprep.subr.bf16.mxu1 %v6033_v56  ;;  %v1630_v6 = vsel %vm610_vm2, %v4664_v48, %v4609_v54  ;;  %v1775_v48 = vsel %vm758_vm1, %v3541_v43, %v4756_v7  ;;  %v1663_v28 = vsel %vm6066_vm3, %v4835_v2, %v4769_v8 }
 0x296   : > { %1912 = vrot.lane.b32.xlu0 %v1873_v55, %s6034_s29  ;;  %2372 = vrot.lane.b32.xlu1 %v4521_v32, %s6004_s21  ;;  %v1779_v54 = vsel %vm758_vm1, %v1619_v15, %v1630_v6  ;;  %v1676_v35 = vsel %vm658_vm6, %v4810_v45, %v4833_v18 }
 0x297   : > { %1530 = vmatmul.mubr.bf16.vlgmr.msra.gmra.mrb[4].mxu0 %v3410_v0 }
 0x298   : > { %1563 = vmatpush1.bf16.msra.mxu1 %v1495_v46  ;;  %2000 = vmatpush1.bf16.msra.mxu0 %v1873_v55  ;;  %v1667_v33 = vpop.permute.xlu1 %1666  ;;  %v1678_v9 = vpop.permute.xlu0 %1677 }
 0x299   : > { %2001 = vmatprep.subr.bf16.mxu0 %v1783_v14  ;;  %2040 = vmatprep.subr.bf16.mxu1 %v6033_v56  ;;  %v1674_v19 = vsel %vm658_vm6, %v1667_v33, %v4808_v44 }
 0x29a   : > { %2366 = vrot.lane.b32.xlu0 %v4531_v60, %s6004_s21  ;;  %2149 = vrot.lane.b32.xlu1 %v4531_v60, %s6039_s15  ;;  %v4930_v63 = vsel %vm758_vm1, %v1663_v28, %v1674_v19  ;;  %v5013_v19 = vld [vmem:[%s5924_s5 + $0x10] sm:$0xff] }
 0x29b   : > { %1571 = vmatmul.mubr.bf16.vlgmr.msra.gmra.mrb[4].mxu1 %v3410_v0 }
 0x29c   : > { %2002 = vmatpush1.bf16.msra.mxu0 %v1779_v54  ;;  %2041 = vmatpush1.bf16.msra.mxu1 %v1775_v48  ;;  %v1680_v5 = vpop.permute.xlu1 %1679  ;;  %v1682_v38 = vpop.permute.xlu0 %1681 }
 0x29d   : > { %2042 = vmatprep.subr.bf16.mxu1 %v6033_v56 }
 0x29e   : > { %1918 = vrot.lane.b32.xlu1 %v1880_v61, %s6034_s29  ;;  %1922 = vrot.lane.b32.xlu0 %v1783_v14, %s6034_s29  ;;  %v1883_v14 = vsel %vm758_vm1, %v4589_v37, %v4635_v59 }
 0x2a0   : > { %2043 = vmatpush1.bf16.msra.mxu1 %v1787_v12  ;;  %v4879_v7 = vpop.permute.xlu1 %1683  ;;  %v1636_v11 = vpop.permute.xlu0 %1635 }
 0x2a1   : > { %2044 = vmatprep.subr.bf16.mxu1 %v6033_v56 }
 0x2a2   : > { %1924 = vrot.lane.b32.xlu1 %v1787_v12, %s6034_s29  ;;  %2162 = vrot.lane.b32.xlu0 %v4511_v51, %s6001_s16 }
 0x2a4   : > { %v1638_v29 = vpop.permute.xlu1 %1637  ;;  %v1634_v36 = vpop.permute.xlu0 %1633 }
 0x2a5   : > { %v1642_v20 = vsel %vm5982_vm9, %v1636_v11, %v1638_v29  ;;  %v1641_v25 = vsel %vm5982_vm9, %v1634_v36, %v1636_v11 }
 0x2a6   : > { %2164 = vrot.lane.b32.xlu1 %v4519_v57, %s6001_s16  ;;  %2166 = vrot.lane.b32.xlu0 %v4521_v32, %s6001_s16  ;;  %v1795_v27 = vsel %vm758_vm1, %v1642_v20, %v1653_v23  ;;  %v1791_v22 = vsel %vm758_vm1, %v1641_v25, %v4891_v26 }
 0x2a7   : > { %2003 = vmatprep.subr.bf16.mxu0 %v1795_v27  ;;  %v1892_v27 = vsel %vm758_vm1, %v4743_v53, %v4696_v58 }
 0x2a8   : > { %v1640_v13 = vpop.permute.xlu1 %1639  ;;  %v1691_v21 = vpop.permute.xlu0 %1690  ;;  %2004 = vmatpush1.bf16.msra.mxu0 %v1791_v22 }
 0x2a9   : > { %v1643_v62 = vsel %vm5982_vm9, %v1638_v29, %v1640_v13  ;;  %2005 = vmatprep.subr.bf16.mxu0 %v4911_v42  ;;  %vm6067_vm9 = vmmov %vm6066_vm3  ;;  %vm6068_vm3 = vcmask 859136  }
 0x2aa   : > { %2173 = vrot.lane.b32.xlu1 %v4511_v51, %s6002_s18  ;;  %2175 = vrot.lane.b32.xlu0 %v4519_v57, %s6002_s18  ;;  %v1799_v44 = vsel %vm758_vm1, %v1643_v62, %v1654_v31  ;;  %v1665_v8 = vsel %vm6067_vm9, %v4787_v17, %v4789_v52  ;;  %v4938_v50 = vsel %vm6068_vm3, %v1678_v9, %v1680_v5  ;;  %vm6069_vm4 = vmmov %vm6068_vm3  ;;  %vm6071_vm9 = vcmask 891904  }
 0x2ab   : > { %2045 = vmatpush1.bf16.msra.mxu1 %v1799_v44  ;;  %v4941_v0 = vsel %vm6069_vm4, %v1680_v5, %v1682_v38  ;;  %v1811_v30 = vsel %vm758_vm1, %v1665_v8, %v1676_v35  ;;  %vm6070_vm4 = vmmov %vm6068_vm3  ;;  %v1870_v43 = vsel %vm6071_vm9, %v4721_v40, %v4723_v41  ;;  %v1895_v44 = vsel %vm758_vm1, %v4789_v52, %v4833_v18 }
 0x2ac   : > { %v1693_v39 = vpop.permute.xlu1 %1692  ;;  %v1689_v49 = vpop.permute.xlu0 %1688  ;;  %2006 = vmatpush1.bf16.msra.mxu0 %v4930_v63  ;;  %2046 = vmatprep.subr.bf16.mxu1 %v6033_v56  ;;  %v4956_v46 = vsel %vm6070_vm4, %v1682_v38, %v4879_v7  ;;  %v1887_v15 = vsel %vm758_vm1, %v1870_v43, %v1653_v23  ;;  %vm6072_vm3 = vmmov %vm6071_vm9  ;;  %vm6074_vm9 = vcmask 1031168  }
 0x2ad   : > { %v1697_v45 = vsel %vm682_vm11, %v1691_v21, %v1693_v39  ;;  %v1696_v1 = vsel %vm682_vm11, %v1689_v49, %v1691_v21  ;;  %vm6073_vm4 = vmmov %vm6072_vm3 }
 0x2ae   : > { %2177 = vrot.lane.b32.xlu1 %v4521_v32, %s6002_s18  ;;  %1920 = vrot.lane.b32.xlu0 %v1779_v54, %s6034_s29  ;;  %v1819_v17 = vsel %vm758_vm1, %v4941_v0, %v1697_v45  ;;  %v1815_v2 = vsel %vm758_vm1, %v4938_v50, %v1696_v1  ;;  %v1871_v54 = vsel %vm6072_vm3, %v4723_v41, %v4743_v53  ;;  %vm6075_vm3 = vmmov %vm6074_vm9 }
 0x2af   : > { %2007 = vmatprep.subr.bf16.mxu0 %v1819_v17  ;;  %2047 = vmatpush1.bf16.msra.mxu1 %v1811_v30  ;;  %v1869_v48 = vsel %vm6073_vm4, %v4767_v34, %v4721_v40  ;;  %v1889_v59 = vsel %vm758_vm1, %v1871_v54, %v1654_v31  ;;  %v3424_v31 = vcombine.high %v5013_v19, %v5013_v19  ;;  %vm6076_vm4 = vcmask 883712  }
 0x2b0   : > { %v1695_v3 = vpop.permute.xlu1 %1694  ;;  %v1702_v55 = vpop.permute.xlu0 %1701  ;;  %2008 = vmatpush1.bf16.msra.mxu0 %v1815_v2  ;;  %2048 = vmatprep.subr.bf16.mxu1 %v6033_v56  ;;  %v1885_v61 = vsel %vm758_vm1, %v1869_v48, %v4891_v26 }
 0x2b1   : > { %v1698_v47 = vsel %vm682_vm11, %v1693_v39, %v1695_v3  ;;  %3426 = vmatprep.mubr.msk.bf16.mxu0 %vm1385_vm10, %v3424_v31  ;;  %3427 = vmatprep.mubr.msk.bf16.mxu1 %vm1385_vm10, %v3424_v31 }
 0x2b2   : > { %2160 = vrot.lane.b32.xlu1 %v4531_v60, %s6001_s16  ;;  %2171 = vrot.lane.b32.xlu0 %v4531_v60, %s6002_s18  ;;  %v1823_v6 = vsel %vm758_vm1, %v4956_v46, %v1698_v47 }
 0x2b3   : > { %2049 = vmatpush1.bf16.msra.mxu1 %v1823_v6 }
 0x2b4   : > { %v1704_v33 = vpop.permute.xlu1 %1703  ;;  %v1713_v9 = vpop.permute.xlu0 %1712  ;;  %2050 = vmatprep.subr.bf16.mxu1 %v6033_v56 }
 0x2b5   : > { %v1708_v38 = vsel %vm694_vm12, %v1702_v55, %v1704_v33 }
 0x2b6   : > { %1926 = vrot.lane.b32.xlu1 %v1883_v14, %s6034_s29  ;;  %1930 = vrot.lane.b32.xlu0 %v1887_v15, %s6034_s29 }
 0x2b8   : > { %v1715_v4 = vpop.permute.xlu1 %1714  ;;  %v1700_v5 = vpop.permute.xlu0 %1699 }
 0x2b9   : > { %v1719_v37 = vsel %vm706_vm13, %v1713_v9, %v1715_v4  ;;  %v1707_v10 = vsel %vm694_vm12, %v1700_v5, %v1702_v55 }
 0x2ba   : > { %1932 = vrot.lane.b32.xlu1 %v1889_v59, %s6034_s29  ;;  %1928 = vrot.lane.b32.xlu0 %v1885_v61, %s6034_s29  ;;  %v1831_v40 = vsel %vm758_vm1, %v1708_v38, %v1719_v37 }
 0x2bb   : > { %2009 = vmatprep.subr.bf16.mxu0 %v1831_v40 }
 0x2bc   : > { %v1711_v41 = vpop.permute.xlu1 %1710  ;;  %v1706_v34 = vpop.permute.xlu0 %1705 }
 0x2bd   : > { %v1718_v12 = vsel %vm706_vm13, %v1711_v41, %v1713_v9  ;;  %v1709_v36 = vsel %vm694_vm12, %v1704_v33, %v1706_v34  ;;  %v2590_v34 = vld [vmem:[%s4716_s1] sm:$0xff] }
 0x2be   : > { %2182 = vrot.lane.b32.xlu1 %v4531_v60, %s6003_s20  ;;  %2184 = vrot.lane.b32.xlu0 %v4511_v51, %s6003_s20  ;;  %v1827_v11 = vsel %vm758_vm1, %v1707_v10, %v1718_v12 }
 0x2bf   : > { %2010 = vmatpush1.bf16.msra.mxu0 %v1827_v11 }
 0x2c0   : > { %v1717_v23 = vpop.permute.xlu1 %1716  ;;  %v1724_v29 = vpop.permute.xlu0 %1723 }
 0x2c1   : > { %v1720_v26 = vsel %vm706_vm13, %v1715_v4, %v1717_v23  ;;  %v5124_v23 = vcombine.high %v2590_v34, %v2590_v34 }
 0x2c2   : > { %2186 = vrot.lane.b32.xlu1 %v4519_v57, %s6003_s20  ;;  %2188 = vrot.lane.b32.xlu0 %v4521_v32, %s6003_s20  ;;  %v1835_v16 = vsel %vm758_vm1, %v1709_v36, %v1720_v26 }
 0x2c3   : > { %2051 = vmatpush1.bf16.msra.mxu1 %v1835_v16 }
 0x2c4   : > { %v1726_v20 = vpop.permute.xlu1 %1725  ;;  %v1735_v25 = vpop.permute.xlu0 %1734  ;;  %2052 = vmatprep.subr.bf16.mxu1 %v6033_v56 }
 0x2c5   : > { %v1730_v13 = vsel %vm718_vm14, %v1724_v29, %v1726_v20 }
 0x2c6   : > { %1934 = vrot.lane.b32.xlu1 %v1892_v27, %s6034_s29  ;;  %1938 = vrot.lane.b32.xlu0 %v4911_v42, %s6034_s29 }
 0x2c8   : > { %v1737_v22 = vpop.permute.xlu1 %1736  ;;  %v1722_v24 = vpop.permute.xlu0 %1721 }
 0x2c9   : > { %v1741_v21 = vsel %vm730_vm15, %v1735_v25, %v1737_v22  ;;  %v1729_v62 = vsel %vm718_vm14, %v1722_v24, %v1724_v29  ;;  %v2591_v29 = vld [vmem:[%s4716_s1 + $0x8] sm:$0xff] }
 0x2ca   : > { %1940 = vrot.lane.b32.xlu1 %v1811_v30, %s6034_s29  ;;  %1936 = vrot.lane.b32.xlu0 %v4930_v63, %s6034_s29  ;;  %v1843_v58 = vsel %vm758_vm1, %v1730_v13, %v1741_v21  ;;  %v5135_v16 = vcombine.low %v2591_v29, %v2591_v29 }
 0x2cb   : > { %2011 = vmatprep.subr.bf16.mxu0 %v1843_v58 }
 0x2cc   : > { %v1733_v53 = vpop.permute.xlu1 %1732  ;;  %v5024_v42 = vpop.permute.xlu0 %2107 }
 0x2cd   : > { %v1740_v28 = vsel %vm730_vm15, %v1733_v53, %v1735_v25 }
 0x2ce   : > { %1942 = vrot.lane.b32.xlu1 %v1895_v44, %s6034_s29  ;;  %1944 = vrot.lane.b32.xlu0 %v4938_v50, %s6034_s29  ;;  %v1839_v35 = vsel %vm758_vm1, %v1729_v62, %v1740_v28 }
 0x2cf   : > { %2012 = vmatpush1.bf16.msra.mxu0 %v1839_v35 }
 0x2d0   : > { %v5036_v63 = vpop.permute.xlu1 %2109  ;;  %v5038_v8 = vpop.permute.xlu0 %2111 }
 0x2d2   : > { %1948 = vrot.lane.b32.xlu0 %v4956_v46, %s6034_s29  ;;  %1946 = vrot.lane.b32.xlu1 %v4941_v0, %s6034_s29 }
 0x2d4   : > { %v5044_v39 = vpop.permute.xlu1 %2105  ;;  %v1728_v52 = vpop.permute.xlu0 %1727 }
 0x2d5   : > { %v1731_v50 = vsel %vm718_vm14, %v1726_v20, %v1728_v52  ;;  %v5137_v20 = vcombine.high %v2591_v29, %v2591_v29 }
 0x2d6   : > { %2140 = vrot.lane.b32.xlu0 %v4511_v51, %s6040_s0  ;;  %1950 = vrot.lane.b32.xlu1 %v4879_v7, %s6034_s29 }
 0x2d8   : > { %v1739_v18 = vpop.permute.xlu1 %1738  ;;  %v1746_v49 = vpop.permute.xlu0 %1745 }
 0x2d9   : > { %v1742_v45 = vsel %vm730_vm15, %v1737_v22, %v1739_v18  ;;  %v5147_v22 = vcombine.low %v2590_v34, %v2590_v34 }
 0x2da   : > { %2138 = vrot.lane.b32.xlu0 %v4531_v60, %s6040_s0  ;;  %2142 = vrot.lane.b32.xlu1 %v4519_v57, %s6040_s0  ;;  %v1847_v0 = vsel %vm758_vm1, %v1731_v50, %v1742_v45 }
 0x2db   : > { %2053 = vmatpush1.bf16.msra.mxu1 %v1847_v0 }
 0x2dc   : > { %v1748_v1 = vpop.permute.xlu1 %1747  ;;  %v1757_v17 = vpop.permute.xlu0 %1756  ;;  %2054 = vmatprep.subr.bf16.mxu1 %v6033_v56 }
 0x2dd   : > { %v1752_v2 = vsel %vm742_vm5, %v1746_v49, %v1748_v1 }
 0x2de   : > { %2195 = vrot.lane.b32.xlu0 %v4511_v51, %s6008_s19  ;;  %2144 = vrot.lane.b32.xlu1 %v4521_v32, %s6040_s0 }
 0x2e0   : > { %v1759_v7 = vpop.permute.xlu1 %1758  ;;  %v1744_v30 = vpop.permute.xlu0 %1743 }
 0x2e1   : > { %v1763_v3 = vsel %vm754_vm8, %v1757_v17, %v1759_v7  ;;  %v1751_v43 = vsel %vm742_vm5, %v1744_v30, %v1746_v49 }
 0x2e2   : > { %2193 = vrot.lane.b32.xlu0 %v4531_v60, %s6008_s19  ;;  %2197 = vrot.lane.b32.xlu1 %v4519_v57, %s6008_s19  ;;  %v1855_v55 = vsel %vm758_vm1, %v1752_v2, %v1763_v3 }
 0x2e3   : > { %2013 = vmatprep.subr.bf16.mxu0 %v1855_v55 }
 0x2e4   : > { %v1755_v46 = vpop.permute.xlu1 %1754  ;;  %v5069_v47 = vpop.permute.xlu0 %2118 }
 0x2e5   : > { %v1762_v6 = vsel %vm754_vm8, %v1755_v46, %v1757_v17  ;;  %v5212_v46 = vsel %vm586_vm0, %v5024_v42, %v5036_v63 }
 0x2e6   : > { %2206 = vrot.lane.b32.xlu0 %v4511_v51, %s6012_s25  ;;  %2199 = vrot.lane.b32.xlu1 %v4521_v32, %s6008_s19  ;;  %v1851_v33 = vsel %vm758_vm1, %v1751_v43, %v1762_v6 }
 0x2e7   : > { %2014 = vmatpush1.bf16.msra.mxu0 %v1851_v33 }
 0x2e8   : > { %v5078_v9 = vpop.permute.xlu1 %2120  ;;  %v5080_v14 = vpop.permute.xlu0 %2122 }
 0x2ea   : > { %2217 = vrot.lane.b32.xlu0 %v4511_v51, %s6015_s26  ;;  %2208 = vrot.lane.b32.xlu1 %v4519_v57, %s6012_s25 }
 0x2ec   : > { %v5086_v15 = vpop.permute.xlu1 %2129  ;;  %v5088_v54 = vpop.permute.xlu0 %2131 }
 0x2ee   : > { %2204 = vrot.lane.b32.xlu0 %v4531_v60, %s6012_s25  ;;  %2219 = vrot.lane.b32.xlu1 %v4519_v57, %s6015_s26 }
 0x2f0   : > { %v5094_v48 = vpop.permute.xlu1 %2133  ;;  %v5096_v4 = vpop.permute.xlu0 %2116 }
 0x2f2   : > { %2215 = vrot.lane.b32.xlu1 %v4531_v60, %s6015_s26  ;;  %2210 = vrot.lane.b32.xlu0 %v4521_v32, %s6012_s25 }
 0x2f4   : > { %v5102_v5 = vpop.permute.xlu1 %2127  ;;  %v1750_v38 = vpop.permute.xlu0 %1749 }
 0x2f5   : > { %v1753_v61 = vsel %vm742_vm5, %v1748_v1, %v1750_v38  ;;  %v2380_v38 = vsel %vm758_vm1, %v4511_v51, %v5212_v46 }
 0x2f6   : > { %2221 = vrot.lane.b32.xlu1 %v4521_v32, %s6015_s26  ;;  %2228 = vrot.lane.b32.xlu0 %v4511_v51, %s6020_s27 }
 0x2f8   : > { %v1761_v37 = vpop.permute.xlu1 %1760  ;;  %v1915_v59 = vpop.permute.xlu0 %1914 }
 0x2f9   : > { %v1764_v40 = vsel %vm754_vm8, %v1759_v7, %v1761_v37 }
 0x2fa   : > { %2230 = vrot.lane.b32.xlu1 %v4519_v57, %s6020_s27  ;;  %2239 = vrot.lane.b32.xlu0 %v4511_v51, %s6025_s28  ;;  %v1859_v41 = vsel %vm758_vm1, %v1753_v61, %v1764_v40 }
 0x2fb   : > { %2055 = vmatpush1.bf16.msra.mxu1 %v1859_v41 }
 0x2fc   : > { %v1917_v10 = vpop.permute.xlu1 %1916  ;;  %v5116_v12 = vpop.permute.xlu0 %2151  ;;  %2056 = vmatprep.subr.bf16.mxu1 %v6033_v56 }
 0x2fd   : > { %v1953_v11 = vsel %vm947_vm7, %v1915_v59, %v1917_v10 }
 0x2fe   : > { %2241 = vrot.lane.b32.xlu1 %v4519_v57, %s6025_s28  ;;  %2226 = vrot.lane.b32.xlu0 %v4531_v60, %s6020_s27 }
 0x2ff   : > { %2015 = vmatprep.subr.bf16.mxu0 %v1953_v11 }
 0x300   : > { %v5127_v36 = vpop.permute.xlu1 %2153  ;;  %v5129_v26 = vpop.permute.xlu0 %2155 }
 0x302   : > { %2237 = vrot.lane.b32.xlu1 %v4531_v60, %s6025_s28  ;;  %2612 = vrot.lane.b32.xlu0 %v5124_v23, %s6036_s2 }
 0x304   : > { %v5139_v25 = vpop.permute.xlu1 %2368  ;;  %v5141_v27 = vpop.permute.xlu0 %2370 }
 0x306   : > { %2614 = vrot.lane.b32.xlu1 %v5135_v16, %s6036_s2  ;;  %2616 = vrot.lane.b32.xlu0 %v5137_v20, %s6036_s2 }
 0x308   : > { %v5149_v24 = vpop.permute.xlu1 %2372  ;;  %v1913_v13 = vpop.permute.xlu0 %1912 }
 0x309   : > { %v1952_v21 = vsel %vm947_vm7, %v1913_v13, %v1915_v59  ;;  %v5227_v59 = vsel %vm586_vm0, %v5036_v63, %v5038_v8 }
 0x30a   : > { %2610 = vrot.lane.b32.xlu1 %v5147_v22, %s6036_s2  ;;  %2232 = vrot.lane.b32.xlu0 %v4521_v32, %s6020_s27 }
 0x30b   : > { %2016 = vmatpush1.bf16.msra.mxu0 %v1952_v21 }
 0x30c   : > { %v5156_v31 = vpop.permute.xlu1 %2149  ;;  %v5158_v58 = vpop.permute.xlu0 %2366 }
 0x30e   : > { %2243 = vrot.lane.b32.xlu1 %v4521_v32, %s6025_s28  ;;  %2250 = vrot.lane.b32.xlu0 %v4511_v51, %s6030_s22 }
 0x310   : > { %v1919_v53 = vpop.permute.xlu1 %1918  ;;  %v1923_v62 = vpop.permute.xlu0 %1922 }
 0x311   : > { %v1954_v28 = vsel %vm947_vm7, %v1917_v10, %v1919_v53 }
 0x312   : > { %2252 = vrot.lane.b32.xlu1 %v4519_v57, %s6030_s22  ;;  %2261 = vrot.lane.b32.xlu0 %v4511_v51, %s6032_s23  ;;  %v2382_v51 = vsel %vm758_vm1, %v4519_v57, %v5227_v59 }
 0x313   : > { %2057 = vmatpush1.bf16.msra.mxu1 %v1954_v28 }
 0x314   : > { %v1925_v44 = vpop.permute.xlu1 %1924  ;;  %v5169_v35 = vpop.permute.xlu0 %2162  ;;  %2058 = vmatprep.subr.bf16.mxu1 %v6033_v56 }
 0x315   : > { %v1956_v52 = vsel %vm947_vm7, %v1923_v62, %v1925_v44 }
 0x316   : > { %2263 = vrot.lane.b32.xlu1 %v4519_v57, %s6032_s23  ;;  %2248 = vrot.lane.b32.xlu0 %v4531_v60, %s6030_s22  ;;  %v2113_v57 = vsel %vm586_vm0, %v5044_v39, %v5024_v42 }
 0x317   : > { %2017 = vmatprep.subr.bf16.mxu0 %v1956_v52  ;;  %v2378_v53 = vsel %vm758_vm1, %v4531_v60, %v2113_v57  ;;  %v2136_v52 = vsel %vm610_vm2, %v5086_v15, %v5088_v54 }
 0x318   : > { %v5177_v18 = vpop.permute.xlu1 %2164  ;;  %v5179_v49 = vpop.permute.xlu0 %2166 }
 0x31a   : > { %2259 = vrot.lane.b32.xlu1 %v4531_v60, %s6032_s23  ;;  %2623 = vrot.lane.b32.xlu0 %v5124_v23, %s6037_s12  ;;  %v2125_v60 = vsel %vm6074_vm9, %v5069_v47, %v5078_v9  ;;  %vm6077_vm9 = vcmask 1014784  }
 0x31c   : > { %v5185_v50 = vpop.permute.xlu1 %2173  ;;  %v5187_v45 = vpop.permute.xlu0 %2175 }
 0x31e   : > { %2625 = vrot.lane.b32.xlu1 %v5135_v16, %s6037_s12  ;;  %2627 = vrot.lane.b32.xlu0 %v5137_v20, %s6037_s12 }
 0x320   : > { %v5193_v0 = vpop.permute.xlu1 %2177  ;;  %v1921_v1 = vpop.permute.xlu0 %1920 }
 0x321   : > { %v1955_v17 = vsel %vm947_vm7, %v1921_v1, %v1923_v62 }
 0x322   : > { %2634 = vrot.lane.b32.xlu1 %v5124_v23, %s6038_s14  ;;  %2636 = vrot.lane.b32.xlu0 %v5135_v16, %s6038_s14 }
 0x323   : > { %2018 = vmatpush1.bf16.msra.mxu0 %v1955_v17 }
 0x324   : > { %v5200_v7 = vpop.permute.xlu1 %2160  ;;  %v5202_v30 = vpop.permute.xlu0 %2171 }
 0x326   : > { %2638 = vrot.lane.b32.xlu1 %v5137_v20, %s6038_s14  ;;  %2621 = vrot.lane.b32.xlu0 %v5147_v22, %s6037_s12  ;;  %s3388_s12 = sshll.u32 %s6120_s10, 2 }
 0x328   : > { %v1927_v2 = vpop.permute.xlu1 %1926  ;;  %v1931_v3 = vpop.permute.xlu0 %1930 }
 0x329   : > { %v1957_v55 = vsel %vm947_vm7, %v1925_v44, %v1927_v2  ;;  %v2083_v44 = vld [vmem:[%s4312_s11] sm:$0xff] }
 0x32a   : > { %2632 = vrot.lane.b32.xlu1 %v5147_v22, %s6038_s14  ;;  %2254 = vrot.lane.b32.xlu0 %v4521_v32, %s6030_s22  ;;  %v3429_v2 = vcombine.high %v2083_v44, %v2083_v44  ;;  %s551_s14 = sadd.s32 %s3388_s12, %s6130_s30 }
 0x32b   : > { %2059 = vmatpush1.bf16.msra.mxu1 %v1957_v55  ;;  %v2385_v55 = vsel %vm758_vm1, %v4521_v32, %v5038_v8  ;;  %v2126_v8 = vsel %vm6075_vm3, %v5078_v9, %v5080_v14  ;;  %v3550_v9 = vld [vmem:[%s4312_s11 + $0x8] ss:$0 sps:$4 sm:$0xff]  }
 0x32c   : > { %v1933_v43 = vpop.permute.xlu1 %1932  ;;  %v1929_v6 = vpop.permute.xlu0 %1928  ;;  %2060 = vmatprep.subr.bf16.mxu1 %v6033_v56 }
 0x32d   : > { %v1958_v33 = vsel %vm947_vm7, %v1929_v6, %v1931_v3  ;;  %v1959_v37 = vsel %vm947_vm7, %v1931_v3, %v1933_v43 }
 0x32e   : > { %2265 = vrot.lane.b32.xlu1 %v4521_v32, %s6032_s23  ;;  %2419 = vrot.lane.b32.xlu0 %v2380_v38, %s6034_s29  ;;  %v3428_v32 = vcombine.low %v2083_v44, %v2083_v44 }
 0x32f   : > { %2019 = vmatprep.subr.bf16.mxu0 %v1959_v37  ;;  %v3423_v37 = vcombine.low %v5013_v19, %v5013_v19 }
 0x330   : > { %2020 = vmatpush1.bf16.msra.mxu0 %v1958_v33  ;;  %v5232_v61 = vpop.permute.xlu1 %2182  ;;  %v5234_v40 = vpop.permute.xlu0 %2184  ;;  %v2137_v33 = vsel %vm610_vm2, %v5088_v54, %v5094_v48  ;;  %v2272_v19 = vsel %vm758_vm1, %v3428_v32, %v2113_v57  ;;  %v2124_v57 = vsel %vm6075_vm3, %v5096_v4, %v5069_v47  ;;  %vm6080_vm3 = vcmask 875520  }
 0x332   : > { %2421 = vrot.lane.b32.xlu1 %v2382_v51, %s6034_s29  ;;  %2656 = vrot.lane.b32.xlu0 %v5124_v23, %s6039_s15 }
 0x334   : > { %v5242_v63 = vpop.permute.xlu1 %2186  ;;  %v5244_v41 = vpop.permute.xlu0 %2188 }
 0x336   : > { %2658 = vrot.lane.b32.xlu1 %v5135_v16, %s6039_s15  ;;  %2660 = vrot.lane.b32.xlu0 %v5137_v20, %s6039_s15 }
 0x338   : > { %v1935_v34 = vpop.permute.xlu1 %1934  ;;  %v1939_v10 = vpop.permute.xlu0 %1938 }
 0x339   : > { %v1960_v11 = vsel %vm947_vm7, %v1933_v43, %v1935_v34  ;;  %v2288_v43 = vsel %vm758_vm1, %v2125_v60, %v2136_v52  ;;  %v2276_v34 = vsel %vm758_vm1, %v3429_v2, %v5212_v46  ;;  %v2135_v46 = vsel %vm610_vm2, %v5102_v5, %v5086_v15 }
 0x33a   : > { %2873 = vrot.lane.b32.xlu1 %v5124_v23, %s6004_s21  ;;  %2875 = vrot.lane.b32.xlu0 %v5135_v16, %s6004_s21  ;;  %v2284_v5 = vsel %vm758_vm1, %v2124_v57, %v2135_v46 }
 0x33b   : > { %2061 = vmatpush1.bf16.msra.mxu1 %v1960_v11  ;;  %v2292_v11 = vsel %vm758_vm1, %v2126_v8, %v2137_v33 }
 0x33c   : > { %v1941_v29 = vpop.permute.xlu1 %1940  ;;  %v1937_v13 = vpop.permute.xlu0 %1936  ;;  %2062 = vmatprep.subr.bf16.mxu1 %v6033_v56 }
 0x33d   : > { %v1961_v21 = vsel %vm947_vm7, %v1937_v13, %v1939_v10  ;;  %v1962_v62 = vsel %vm947_vm7, %v1939_v10, %v1941_v29 }
 0x33e   : > { %2877 = vrot.lane.b32.xlu1 %v5137_v20, %s6004_s21  ;;  %2417 = vrot.lane.b32.xlu0 %v2378_v53, %s6034_s29  ;;  %v5314_v53 = vsel %vm6076_vm4, %v5116_v12, %v5127_v36  ;;  %vm6078_vm4 = vmmov %vm6077_vm9 }
 0x33f   : > { %2021 = vmatprep.subr.bf16.mxu0 %v1962_v62 }
 0x340   : > { %2022 = vmatpush1.bf16.msra.mxu0 %v1961_v21  ;;  %v1943_v42 = vpop.permute.xlu1 %1942  ;;  %v1945_v39 = vpop.permute.xlu0 %1944 }
 0x341   : > { %v1963_v28 = vsel %vm947_vm7, %v1941_v29, %v1943_v42  ;;  %v2280_v42 = vsel %vm758_vm1, %v3550_v9, %v5227_v59  ;;  %v2169_v59 = vsel %vm6080_vm3, %v5169_v35, %v5177_v18 }
 0x342   : > { %2654 = vrot.lane.b32.xlu1 %v5147_v22, %s6039_s15  ;;  %2871 = vrot.lane.b32.xlu0 %v5147_v22, %s6004_s21  ;;  %s3456_s21 = smul.u32 3, %s6130_s30  ;;  %s3389_s15 = sshll.u32 %s551_s14, 3 }
 0x343   : > { %2063 = vmatpush1.bf16.msra.mxu1 %v1963_v28 }
 0x344   : > { %v1947_v1 = vpop.permute.xlu1 %1946  ;;  %v1949_v17 = vpop.permute.xlu0 %1948  ;;  %2064 = vmatprep.subr.bf16.mxu1 %v6033_v56 }
 0x345   : > { %v1964_v3 = vsel %vm947_vm7, %v1945_v39, %v1947_v1  ;;  %v1965_v6 = vsel %vm947_vm7, %v1947_v1, %v1949_v17  ;;  %v2180_v39 = vsel %vm658_vm6, %v5185_v50, %v5187_v45 }
 0x346   : > { %2423 = vrot.lane.b32.xlu1 %v2385_v55, %s6034_s29  ;;  %2427 = vrot.lane.b32.xlu0 %v2288_v43, %s6034_s29  ;;  %v1991_v38 = vsel %vm758_vm1, %v1964_v3, 0  ;;  %v5346_v60 = vsel %vm758_vm1, %v2169_v59, %v2180_v39 }
 0x347   : > { %3425 = vmatprep.subr.msk.bf16.mxu0 %vm758_vm1, %v1965_v6 }
 0x348   : > { %2024 = vmatpush1.bf16.msra.mxu0 %v1991_v38  ;;  %v1951_v51 = vpop.permute.xlu1 %1950  ;;  %v2141_v54 = vpop.permute.xlu0 %2140 }
 0x349   : > { %v1966_v10 = vsel %vm947_vm7, %v1949_v17, %v1951_v51  ;;  %2504 = vmatprep.subr.bf16.mxu0 %v2276_v34 }
 0x34a   : > { %v1997_v29 = vsel %vm758_vm1, %v1966_v10, 0  ;;  %2429 = vrot.lane.b32.xlu1 %v2292_v11, %s6034_s29  ;;  %2667 = vrot.lane.b32.xlu0 %v5124_v23, %s6001_s16 }
 0x34b   : > { %2032 = vmatmul.mubr.bf16.vlgmr.msra.gmra.mrb[8].mxu0 %v3423_v37  ;;  %2065 = vmatpush1.bf16.msra.mxu1 %v1997_v29 }
 0x34c   : > { %2505 = vmatpush1.bf16.msra.mxu0 %v2272_v19  ;;  %v2143_v13 = vpop.permute.xlu1 %2142  ;;  %v2139_v21 = vpop.permute.xlu0 %2138  ;;  %2545 = vmatprep.subr.bf16.mxu1 %v6033_v56 }
 0x34d   : > { %v2147_v62 = vsel %vm6077_vm9, %v2141_v54, %v2143_v13  ;;  %2506 = vmatprep.subr.bf16.mxu0 %v2288_v43  ;;  %v2146_v47 = vsel %vm6078_vm4, %v2139_v21, %v2141_v54  ;;  %vm6079_vm9 = vcmask 883712   ;;  %vm6081_vm4 = vmmov %vm6080_vm3  ;;  %vm6083_vm3 = vcmask 859136  }
 0x34e   : > { %2669 = vrot.lane.b32.xlu1 %v5135_v16, %s6001_s16  ;;  %2671 = vrot.lane.b32.xlu0 %v5137_v20, %s6001_s16  ;;  %v2300_v15 = vsel %vm758_vm1, %v2147_v62, %v5314_v53  ;;  %v2157_v44 = vsel %vm6079_vm9, %v5156_v31, %v5116_v12  ;;  %v2168_v1 = vsel %vm6081_vm4, %v5200_v7, %v5169_v35  ;;  %vm6082_vm9 = vcmask 1014784  }
 0x34f   : > { %2073 = vmatmul.mubr.bf16.vlgmr.msra.gmra.mrb[8].mxu1 %v3423_v37  ;;  %v2296_v52 = vsel %vm758_vm1, %v2146_v47, %v2157_v44  ;;  %v2179_v12 = vsel %vm658_vm6, %v5202_v30, %v5185_v50  ;;  %v5358_v3 = vsel %vm6083_vm3, %v5234_v40, %v5242_v63  ;;  %vm6084_vm4 = vcmask 883712  }
 0x350   : > { %2507 = vmatpush1.bf16.msra.mxu0 %v2284_v5  ;;  %2546 = vmatpush1.bf16.msra.mxu1 %v2280_v42  ;;  %v2145_v4 = vpop.permute.xlu1 %2144  ;;  %v2196_v28 = vpop.permute.xlu0 %2195  ;;  %v2159_v35 = vsel %vm6084_vm4, %v5127_v36, %v5129_v26  ;;  %v5372_v7 = vsel %vm758_vm1, %v2168_v1, %v2179_v12  ;;  %v2181_v43 = vsel %vm658_vm6, %v5187_v45, %v5193_v0  ;;  %vm6086_vm3 = vcmask 875520  }
 0x351   : > { %2508 = vmatprep.subr.bf16.mxu0 %v2300_v15  ;;  %2547 = vmatprep.subr.bf16.mxu1 %v6033_v56  ;;  %v2148_v31 = vsel %vm6082_vm9, %v2143_v13, %v2145_v4  ;;  %vm6085_vm9 = vcmask 891904   ;;  %v2170_v37 = vsel %vm6086_vm3, %v5177_v18, %v5179_v49  ;;  %vm6087_vm4 = vcmask 859136  }
 0x352   : > { %2678 = vrot.lane.b32.xlu1 %v5124_v23, %s6002_s18  ;;  %2680 = vrot.lane.b32.xlu0 %v5135_v16, %s6002_s18  ;;  %v2304_v30 = vsel %vm758_vm1, %v2148_v31, %v2159_v35  ;;  %v2375_v38 = vsel %vm6085_vm9, %v5139_v25, %v5141_v27  ;;  %v5390_v45 = vsel %vm6087_vm4, %v5232_v61, %v5234_v40  ;;  %vm6088_vm3 = vmmov %vm6085_vm9 }
 0x353   : > { %v2316_v8 = vsel %vm758_vm1, %v2170_v37, %v2181_v43  ;;  %v2388_v61 = vsel %vm758_vm1, %v5080_v14, %v5094_v48  ;;  %v2392_v40 = vsel %vm758_vm1, %v2375_v38, %v5314_v53  ;;  %v2376_v34 = vsel %vm6085_vm9, %v5141_v27, %v5149_v24 }
 0x354   : > { %2509 = vmatpush1.bf16.msra.mxu0 %v2296_v52  ;;  %2548 = vmatpush1.bf16.msra.mxu1 %v2292_v11  ;;  %v2198_v17 = vpop.permute.xlu1 %2197  ;;  %v2194_v2 = vpop.permute.xlu0 %2193  ;;  %v2374_v10 = vsel %vm6088_vm3, %v5158_v58, %v5139_v25  ;;  %v2192_v11 = vsel %vm6087_vm4, %v5242_v63, %v5244_v41  ;;  %v2394_v9 = vsel %vm758_vm1, %v2376_v34, %v2159_v35  ;;  %vm6093_vm4 = vcmask 883712  }
 0x355   : > { %v2202_v55 = vsel %vm682_vm11, %v2196_v28, %v2198_v17  ;;  %2510 = vmatprep.subr.bf16.mxu0 %v5346_v60  ;;  %2549 = vmatprep.subr.bf16.mxu1 %v6033_v56  ;;  %v2201_v6 = vsel %vm682_vm11, %v2194_v2, %v2196_v28  ;;  %v2390_v25 = vsel %vm758_vm1, %v2374_v10, %v2157_v44  ;;  %v5450_v28 = vld [vmem:[%s5924_s5 + $0x18] sm:$0xff] }
 0x356   : > { %2682 = vrot.lane.b32.xlu1 %v5137_v20, %s6002_s18  ;;  %2425 = vrot.lane.b32.xlu0 %v2284_v5, %s6034_s29  ;;  %v2324_v50 = vsel %vm758_vm1, %v5358_v3, %v2202_v55  ;;  %v2320_v32 = vsel %vm758_vm1, %v5390_v45, %v2201_v6  ;;  %v2397_v4 = vsel %vm758_vm1, %v5149_v24, %v5129_v26 }
 0x357   : > { %v3437_v52 = vcombine.high %v5450_v28, %v5450_v28  ;;  %v2400_v2 = vsel %vm758_vm1, %v5179_v49, %v5193_v0 }
 0x358   : > { %2511 = vmatpush1.bf16.msra.mxu0 %v5372_v7  ;;  %2550 = vmatpush1.bf16.msra.mxu1 %v2304_v30  ;;  %v2200_v36 = vpop.permute.xlu1 %2199  ;;  %v2207_v33 = vpop.permute.xlu0 %2206 }
 0x359   : > { %2512 = vmatprep.subr.bf16.mxu0 %v2324_v50  ;;  %2551 = vmatprep.subr.bf16.mxu1 %v6033_v56  ;;  %v2203_v51 = vsel %vm682_vm11, %v2198_v17, %v2200_v36 }
 0x35a   : > { %2665 = vrot.lane.b32.xlu1 %v5147_v22, %s6001_s16  ;;  %2676 = vrot.lane.b32.xlu0 %v5147_v22, %s6002_s18  ;;  %v2328_v14 = vsel %vm758_vm1, %v2192_v11, %v2203_v51 }
 0x35b   : > { %3439 = vmatprep.mubr.msk.bf16.mxu0 %vm1385_vm10, %v3437_v52  ;;  %3440 = vmatprep.mubr.msk.bf16.mxu1 %vm1385_vm10, %v3437_v52 }
 0x35c   : > { %2513 = vmatpush1.bf16.msra.mxu0 %v2320_v32  ;;  %2552 = vmatpush1.bf16.msra.mxu1 %v2316_v8  ;;  %v2209_v18 = vpop.permute.xlu1 %2208  ;;  %v2218_v54 = vpop.permute.xlu0 %2217 }
 0x35d   : > { %2553 = vmatprep.subr.bf16.mxu1 %v6033_v56  ;;  %v2213_v19 = vsel %vm694_vm12, %v2207_v33, %v2209_v18 }
 0x35e   : > { %2431 = vrot.lane.b32.xlu1 %v2388_v61, %s6034_s29  ;;  %2435 = vrot.lane.b32.xlu0 %v2392_v40, %s6034_s29 }
 0x360   : > { %2554 = vmatpush1.bf16.msra.mxu1 %v2328_v14  ;;  %v2220_v48 = vpop.permute.xlu1 %2219  ;;  %v2205_v29 = vpop.permute.xlu0 %2204 }
 0x361   : > { %v2224_v27 = vsel %vm706_vm13, %v2218_v54, %v2220_v48  ;;  %2555 = vmatprep.subr.bf16.mxu1 %v6033_v56  ;;  %v2212_v13 = vsel %vm694_vm12, %v2205_v29, %v2207_v33 }
 0x362   : > { %2437 = vrot.lane.b32.xlu1 %v2394_v9, %s6034_s29  ;;  %2433 = vrot.lane.b32.xlu0 %v2390_v25, %s6034_s29  ;;  %v2336_v58 = vsel %vm758_vm1, %v2213_v19, %v2224_v27 }
 0x363   : > { %2514 = vmatprep.subr.bf16.mxu0 %v2336_v58 }
 0x364   : > { %v2216_v63 = vpop.permute.xlu1 %2215  ;;  %v2211_v46 = vpop.permute.xlu0 %2210 }
 0x365   : > { %v2223_v21 = vsel %vm706_vm13, %v2216_v63, %v2218_v54  ;;  %v2214_v15 = vsel %vm694_vm12, %v2209_v18, %v2211_v46 }
 0x366   : > { %2687 = vrot.lane.b32.xlu1 %v5147_v22, %s6003_s20  ;;  %2689 = vrot.lane.b32.xlu0 %v5124_v23, %s6003_s20  ;;  %v2332_v53 = vsel %vm758_vm1, %v2212_v13, %v2223_v21 }
 0x367   : > { %2515 = vmatpush1.bf16.msra.mxu0 %v2332_v53 }
 0x368   : > { %v2222_v62 = vpop.permute.xlu1 %2221  ;;  %v2229_v57 = vpop.permute.xlu0 %2228 }
 0x369   : > { %v2225_v5 = vsel %vm706_vm13, %v2220_v48, %v2222_v62 }
 0x36a   : > { %2691 = vrot.lane.b32.xlu1 %v5135_v16, %s6003_s20  ;;  %2693 = vrot.lane.b32.xlu0 %v5137_v20, %s6003_s20  ;;  %v2340_v42 = vsel %vm758_vm1, %v2214_v15, %v2225_v5 }
 0x36b   : > { %2556 = vmatpush1.bf16.msra.mxu1 %v2340_v42 }
 0x36c   : > { %v2231_v39 = vpop.permute.xlu1 %2230  ;;  %v2240_v47 = vpop.permute.xlu0 %2239  ;;  %2557 = vmatprep.subr.bf16.mxu1 %v6033_v56 }
 0x36d   : > { %v2235_v1 = vsel %vm718_vm14, %v2229_v57, %v2231_v39 }
 0x36e   : > { %2439 = vrot.lane.b32.xlu1 %v2397_v4, %s6034_s29  ;;  %2443 = vrot.lane.b32.xlu0 %v5346_v60, %s6034_s29 }
 0x370   : > { %v2242_v44 = vpop.permute.xlu1 %2241  ;;  %v2227_v59 = vpop.permute.xlu0 %2226 }
 0x371   : > { %v2246_v12 = vsel %vm730_vm15, %v2240_v47, %v2242_v44  ;;  %v2234_v31 = vsel %vm718_vm14, %v2227_v59, %v2229_v57 }
 0x372   : > { %2445 = vrot.lane.b32.xlu1 %v2316_v8, %s6034_s29  ;;  %2441 = vrot.lane.b32.xlu0 %v5372_v7, %s6034_s29  ;;  %v2348_v26 = vsel %vm758_vm1, %v2235_v1, %v2246_v12 }
 0x373   : > { %2516 = vmatprep.subr.bf16.mxu0 %v2348_v26 }
 0x374   : > { %v2238_v24 = vpop.permute.xlu1 %2237  ;;  %v5461_v60 = vpop.permute.xlu0 %2612 }
 0x375   : > { %v2245_v17 = vsel %vm730_vm15, %v2238_v24, %v2240_v47 }
 0x376   : > { %2447 = vrot.lane.b32.xlu1 %v2400_v2, %s6034_s29  ;;  %2449 = vrot.lane.b32.xlu0 %v5390_v45, %s6034_s29  ;;  %v2344_v55 = vsel %vm758_vm1, %v2234_v31, %v2245_v17 }
 0x377   : > { %2517 = vmatpush1.bf16.msra.mxu0 %v2344_v55 }
 0x378   : > { %v5473_v35 = vpop.permute.xlu1 %2614  ;;  %v5475_v50 = vpop.permute.xlu0 %2616 }
 0x379   : > { %v2619_v1 = vsel %vm586_vm0, %v5461_v60, %v5473_v35  ;;  %v5605_v17 = vsel %vm586_vm0, %v5473_v35, %v5475_v50 }
 0x37a   : > { %2451 = vrot.lane.b32.xlu1 %v5358_v3, %s6034_s29  ;;  %2453 = vrot.lane.b32.xlu0 %v2192_v11, %s6034_s29  ;;  %v5599_v24 = vsel %vm758_vm1, %v5124_v23, %v2619_v1  ;;  %v2887_v35 = vsel %vm758_vm1, %v5135_v16, %v5605_v17 }
 0x37c   : > { %v5480_v7 = vpop.permute.xlu1 %2610  ;;  %v2233_v49 = vpop.permute.xlu0 %2232 }
 0x37d   : > { %v2236_v43 = vsel %vm718_vm14, %v2231_v39, %v2233_v49  ;;  %v2618_v2 = vsel %vm586_vm0, %v5480_v7, %v5461_v60  ;;  %vm6089_vm0 = vcmask 1031168  }
 0x37e   : > { %2645 = vrot.lane.b32.xlu0 %v5124_v23, %s6040_s0  ;;  %2455 = vrot.lane.b32.xlu1 %v5244_v41, %s6034_s29  ;;  %v5620_v49 = vsel %vm758_vm1, %v5147_v22, %v2618_v2  ;;  %vm6090_vm9 = vmmov %vm6089_vm0 }
 0x37f   : > { %vm6091_vm3 = vmmov %vm6089_vm0 }
 0x380   : > { %v2244_v0 = vpop.permute.xlu1 %2243  ;;  %v2251_v30 = vpop.permute.xlu0 %2250 }
 0x381   : > { %v2247_v6 = vsel %vm730_vm15, %v2242_v44, %v2244_v0 }
 0x382   : > { %2643 = vrot.lane.b32.xlu0 %v5147_v22, %s6040_s0  ;;  %2647 = vrot.lane.b32.xlu1 %v5135_v16, %s6040_s0  ;;  %v2352_v3 = vsel %vm758_vm1, %v2236_v43, %v2247_v6 }
 0x383   : > { %2558 = vmatpush1.bf16.msra.mxu1 %v2352_v3 }
 0x384   : > { %v2253_v36 = vpop.permute.xlu1 %2252  ;;  %v2262_v33 = vpop.permute.xlu0 %2261  ;;  %2559 = vmatprep.subr.bf16.mxu1 %v6033_v56 }
 0x385   : > { %v2257_v37 = vsel %vm742_vm5, %v2251_v30, %v2253_v36 }
 0x386   : > { %2700 = vrot.lane.b32.xlu0 %v5124_v23, %s6008_s19  ;;  %2649 = vrot.lane.b32.xlu1 %v5137_v20, %s6040_s0 }
 0x388   : > { %v2264_v41 = vpop.permute.xlu1 %2263  ;;  %v2249_v38 = vpop.permute.xlu0 %2248 }
 0x389   : > { %v2268_v45 = vsel %vm754_vm8, %v2262_v33, %v2264_v41  ;;  %v2256_v18 = vsel %vm742_vm5, %v2249_v38, %v2251_v30  ;;  %v2890_v30 = vsel %vm758_vm1, %v5137_v20, %v5475_v50 }
 0x38a   : > { %2702 = vrot.lane.b32.xlu1 %v5135_v16, %s6008_s19  ;;  %2698 = vrot.lane.b32.xlu0 %v5147_v22, %s6008_s19  ;;  %v2360_v32 = vsel %vm758_vm1, %v2257_v37, %v2268_v45 }
 0x38b   : > { %2518 = vmatprep.subr.bf16.mxu0 %v2360_v32 }
 0x38c   : > { %v2260_v8 = vpop.permute.xlu1 %2259  ;;  %v5505_v51 = vpop.permute.xlu0 %2623 }
 0x38d   : > { %v2267_v54 = vsel %vm754_vm8, %v2260_v8, %v2262_v33 }
 0x38e   : > { %2704 = vrot.lane.b32.xlu1 %v5137_v20, %s6008_s19  ;;  %2711 = vrot.lane.b32.xlu0 %v5124_v23, %s6012_s25  ;;  %v2356_v61 = vsel %vm758_vm1, %v2256_v18, %v2267_v54 }
 0x38f   : > { %2519 = vmatpush1.bf16.msra.mxu0 %v2356_v61 }
 0x390   : > { %v5514_v40 = vpop.permute.xlu1 %2625  ;;  %v5516_v34 = vpop.permute.xlu0 %2627 }
 0x391   : > { %v2630_v7 = vsel %vm6089_vm0, %v5505_v51, %v5514_v40 }
 0x392   : > { %2713 = vrot.lane.b32.xlu1 %v5135_v16, %s6012_s25  ;;  %2722 = vrot.lane.b32.xlu0 %v5124_v23, %s6015_s26 }
 0x394   : > { %v5522_v10 = vpop.permute.xlu1 %2634  ;;  %v5524_v11 = vpop.permute.xlu0 %2636 }
 0x395   : > { %v2641_v60 = vsel %vm610_vm2, %v5522_v10, %v5524_v11 }
 0x396   : > { %2724 = vrot.lane.b32.xlu1 %v5135_v16, %s6015_s26  ;;  %2709 = vrot.lane.b32.xlu0 %v5147_v22, %s6012_s25 }
 0x398   : > { %v5530_v14 = vpop.permute.xlu1 %2638  ;;  %v5532_v48 = vpop.permute.xlu0 %2621 }
 0x399   : > { %v2642_v43 = vsel %vm610_vm2, %v5524_v11, %v5530_v14  ;;  %v2629_v50 = vsel %vm6091_vm3, %v5532_v48, %v5505_v51  ;;  %v2893_v51 = vsel %vm758_vm1, %v5516_v34, %v5530_v14 }
 0x39a   : > { %2720 = vrot.lane.b32.xlu1 %v5147_v22, %s6015_s26  ;;  %2715 = vrot.lane.b32.xlu0 %v5137_v20, %s6012_s25  ;;  %s3457_s25 = smul.u32 12, %s6120_s10 }
 0x39c   : > { %v5538_v29 = vpop.permute.xlu1 %2632  ;;  %v2255_v19 = vpop.permute.xlu0 %2254 }
 0x39d   : > { %v2258_v25 = vsel %vm742_vm5, %v2253_v36, %v2255_v19  ;;  %v2640_v6 = vsel %vm610_vm2, %v5538_v29, %v5522_v10  ;;  %vm6092_vm2 = vcmask 891904  }
 0x39e   : > { %2726 = vrot.lane.b32.xlu1 %v5137_v20, %s6015_s26  ;;  %2733 = vrot.lane.b32.xlu0 %v5124_v23, %s6020_s27  ;;  %v5660_v38 = vsel %vm758_vm1, %v2629_v50, %v2640_v6  ;;  %vm6094_vm0 = vmmov %vm6092_vm2  ;;  %s543_s26 = sadd.s32 %s3457_s25, %s3456_s21 }
 0x39f   : > { %vm6096_vm3 = vmmov %vm6094_vm0 }
 0x3a0   : > { %v2266_v27 = vpop.permute.xlu1 %2265  ;;  %v2420_v9 = vpop.permute.xlu0 %2419 }
 0x3a1   : > { %v2269_v58 = vsel %vm754_vm8, %v2264_v41, %v2266_v27 }
 0x3a2   : > { %2735 = vrot.lane.b32.xlu1 %v5135_v16, %s6020_s27  ;;  %2744 = vrot.lane.b32.xlu0 %v5124_v23, %s6025_s28  ;;  %v2364_v63 = vsel %vm758_vm1, %v2258_v25, %v2269_v58 }
 0x3a3   : > { %2560 = vmatpush1.bf16.msra.mxu1 %v2364_v63 }
 0x3a4   : > { %v2422_v46 = vpop.permute.xlu1 %2421  ;;  %v5551_v13 = vpop.permute.xlu0 %2656  ;;  %2561 = vmatprep.subr.bf16.mxu1 %v6033_v56 }
 0x3a5   : > { %v2458_v21 = vsel %vm947_vm7, %v2420_v9, %v2422_v46 }
 0x3a6   : > { %2746 = vrot.lane.b32.xlu1 %v5135_v16, %s6025_s28  ;;  %2731 = vrot.lane.b32.xlu0 %v5147_v22, %s6020_s27 }
 0x3a7   : > { %2520 = vmatprep.subr.bf16.mxu0 %v2458_v21 }
 0x3a8   : > { %v5559_v53 = vpop.permute.xlu1 %2658  ;;  %v5561_v62 = vpop.permute.xlu0 %2660 }
 0x3a9   : > { %v5672_v45 = vsel %vm6093_vm4, %v5551_v13, %v5559_v53 }
 0x3aa   : > { %2742 = vrot.lane.b32.xlu1 %v5147_v22, %s6025_s28  ;;  %2737 = vrot.lane.b32.xlu0 %v5137_v20, %s6020_s27 }
 0x3ac   : > { %v5567_v57 = vpop.permute.xlu1 %2873  ;;  %v5569_v15 = vpop.permute.xlu0 %2875 }
 0x3ad   : > { %v2880_v37 = vsel %vm6092_vm2, %v5567_v57, %v5569_v15  ;;  %vm6097_vm2 = vmmov %vm6093_vm4 }
 0x3ae   : > { %2748 = vrot.lane.b32.xlu1 %v5137_v20, %s6025_s28  ;;  %2755 = vrot.lane.b32.xlu0 %v5124_v23, %s6030_s22  ;;  %v2897_v18 = vsel %vm758_vm1, %v2880_v37, %v5672_v45 }
 0x3b0   : > { %v5575_v5 = vpop.permute.xlu1 %2877  ;;  %v2418_v42 = vpop.permute.xlu0 %2417 }
 0x3b1   : > { %v2457_v39 = vsel %vm947_vm7, %v2418_v42, %v2420_v9  ;;  %v2881_v54 = vsel %vm6094_vm0, %v5569_v15, %v5575_v5  ;;  %v2902_v58 = vsel %vm758_vm1, %v5575_v5, %v5561_v62 }
 0x3b2   : > { %2757 = vrot.lane.b32.xlu1 %v5135_v16, %s6030_s22  ;;  %2766 = vrot.lane.b32.xlu0 %v5124_v23, %s6032_s23 }
 0x3b3   : > { %2521 = vmatpush1.bf16.msra.mxu0 %v2457_v39 }
 0x3b4   : > { %v2655_v47 = vpop.permute.xlu1 %2654  ;;  %v2872_v4 = vpop.permute.xlu0 %2871 }
 0x3b6   : > { %2768 = vrot.lane.b32.xlu1 %v5135_v16, %s6032_s23  ;;  %2753 = vrot.lane.b32.xlu0 %v5147_v22, %s6030_s22  ;;  %v5638_v16 = vsel %vm758_vm1, %v2630_v7, %v2641_v60 }
 0x3b8   : > { %v2424_v44 = vpop.permute.xlu1 %2423  ;;  %v2428_v59 = vpop.permute.xlu0 %2427 }
 0x3b9   : > { %v2459_v52 = vsel %vm947_vm7, %v2422_v46, %v2424_v44 }
 0x3ba   : > { %2764 = vrot.lane.b32.xlu1 %v5147_v22, %s6032_s23  ;;  %2759 = vrot.lane.b32.xlu0 %v5137_v20, %s6030_s22  ;;  %s3387_s22 = sshll.u32 %s543_s26, 3 }
 0x3bb   : > { %2562 = vmatpush1.bf16.msra.mxu1 %v2459_v52  ;;  %s545_s2 = scalar_lea.vmem %s5927_s8, %s3387_s22 }
 0x3bc   : > { %v2430_v12 = vpop.permute.xlu1 %2429  ;;  %v5594_v26 = vpop.permute.xlu0 %2667  ;;  %2563 = vmatprep.subr.bf16.mxu1 %v6033_v56 }
 0x3bd   : > { %v2461_v31 = vsel %vm947_vm7, %v2428_v59, %v2430_v12 }
 0x3be   : > { %2770 = vrot.lane.b32.xlu1 %v5137_v20, %s6032_s23  ;;  %2924 = vrot.lane.b32.xlu0 %v5599_v24, %s6034_s29  ;;  %v2631_v20 = vsel %vm6090_vm9, %v5514_v40, %v5516_v34  ;;  %vm6095_vm9 = vmmov %vm6093_vm4  ;;  %v2879_v40 = vsel %vm6096_vm3, %v2872_v4, %v5567_v57  ;;  %v5693_v34 = vsel %vm6097_vm2, %v5559_v53, %v5561_v62  ;;  %vm6098_vm4 = vcmask 875520   ;;  %v1432_v62 = vpop.f32.mrb[0].mxu0 }
 0x3bf   : > { %2522 = vmatprep.subr.bf16.mxu0 %v2461_v31  ;;  %v5657_v41 = vsel %vm758_vm1, %v2631_v20, %v2642_v43  ;;  %v5684_v61 = vsel %vm6095_vm9, %v2655_v47, %v5551_v13  ;;  %v2899_v48 = vsel %vm758_vm1, %v2881_v54, %v5693_v34  ;;  %vm6099_vm0 = vmmov %vm6098_vm4  ;;  %v1434_v4 = vpop.f32.mrb[1].mxu0 }
 0x3c0   : > { %v5614_v23 = vpop.permute.xlu1 %2669  ;;  %v5616_v55 = vpop.permute.xlu0 %2671  ;;  %v2895_v29 = vsel %vm758_vm1, %v2879_v40, %v5684_v61  ;;  %vm6100_vm9 = vmmov %vm6099_vm0 }
 0x3c1   : > { %v2674_v27 = vsel %vm6098_vm4, %v5594_v26, %v5614_v23  ;;  %v2675_v15 = vsel %vm6100_vm9, %v5614_v23, %v5616_v55  ;;  %v1436_v44 = vpop.f32.mrb[2].mxu0  ;;  %vm6104_vm4 = vcmask 1014784  }
 0x3c2   : > { %2922 = vrot.lane.b32.xlu0 %v5620_v49, %s6034_s29  ;;  %2926 = vrot.lane.b32.xlu1 %v2887_v35, %s6034_s29  ;;  %v1437_v31 = vpop.f32.mrb[3].mxu0 }
 0x3c3   : > { %v1531_v23 = vpop.f32.mrb[4].mxu0 }
 0x3c4   : > { %v2679_v0 = vpop.permute.xlu1 %2678  ;;  %v2681_v22 = vpop.permute.xlu0 %2680  ;;  %v5743_v60 = vadd.f32 %v1531_v23, %v1432_v62 }
 0x3c5   : > { %v2685_v19 = vsel %vm658_vm6, %v2679_v0, %v2681_v22  ;;  %v1533_v7 = vpop.f32.mrb[5].mxu0 }
 0x3c6   : > { %2928 = vrot.lane.b32.xlu1 %v2890_v30, %s6034_s29  ;;  %2932 = vrot.lane.b32.xlu0 %v5638_v16, %s6034_s29  ;;  %v5712_v46 = vsel %vm758_vm1, %v2674_v27, %v2685_v19  ;;  %v5745_v43 = vadd.f32 %v1533_v7, %v1434_v4  ;;  %v1535_v50 = vpop.f32.mrb[6].mxu0 }
 0x3c8   : > { %v2683_v3 = vpop.permute.xlu1 %2682  ;;  %v2426_v36 = vpop.permute.xlu0 %2425 }
 0x3c9   : > { %v2460_v33 = vsel %vm947_vm7, %v2426_v36, %v2428_v59  ;;  %v2686_v21 = vsel %vm658_vm6, %v2681_v22, %v2683_v3  ;;  %v1473_v59 = vpop.f32.mrb[0].mxu1  ;;  %v1536_v36 = vpop.f32.mrb[7].mxu0 }
 0x3ca   : > { %2934 = vrot.lane.b32.xlu1 %v5657_v41, %s6034_s29  ;;  %2930 = vrot.lane.b32.xlu0 %v5660_v38, %s6034_s29  ;;  %v5726_v39 = vsel %vm758_vm1, %v2675_v15, %v2686_v21  ;;  %v1475_v2 = vpop.f32.mrb[1].mxu1  ;;  %v3553_v15 = vld [vmem:[%s4716_s1 + $0x8] ss:$0 sps:$4 sm:$0xff]   ;;  %s553_s1 = scalar_lea.vmem %s6107_s3, %s3389_s15 }
 0x3cb   : > { %2523 = vmatpush1.bf16.msra.mxu0 %v2460_v33  ;;  %v1476_v35 = vpop.f32.mrb[2].mxu1 }
 0x3cc   : > { %v2666_v32 = vpop.permute.xlu1 %2665  ;;  %v2677_v8 = vpop.permute.xlu0 %2676 }
 0x3cd   : > { %v2673_v53 = vsel %vm6099_vm0, %v2666_v32, %v5594_v26  ;;  %v2684_v57 = vsel %vm658_vm6, %v2677_v8, %v2679_v0  ;;  %vm6101_vm6 = vcmask 859136   ;;  %v1477_v0 = vpop.f32.mrb[3].mxu1  ;;  %vm6105_vm0 = vmmov %vm6104_vm4 }
 0x3ce   : > { %2936 = vrot.lane.b32.xlu1 %v2893_v51, %s6034_s29  ;;  %2940 = vrot.lane.b32.xlu0 %v2897_v18, %s6034_s29  ;;  %v5729_v47 = vsel %vm758_vm1, %v2673_v53, %v2684_v57  ;;  %vm6102_vm3 = vmmov %vm6101_vm6  ;;  %v555_v18 = vld [vmem:[%s5925_s6] sm:$0xff] }
 0x3cf   : > { %vm6103_vm2 = vmmov %vm6102_vm3 }
 0x3d0   : > { %v2432_v10 = vpop.permute.xlu1 %2431  ;;  %v2436_v11 = vpop.permute.xlu0 %2435  ;;  %vm6106_vm9 = vmmov %vm6105_vm0 }
 0x3d1   : > { %v2462_v14 = vsel %vm947_vm7, %v2430_v12, %v2432_v10  ;;  %v2905_v12 = vsel %vm758_vm1, %v5616_v55, %v2683_v3  ;;  %v1572_v3 = vpop.f32.mrb[4].mxu1 }
 0x3d2   : > { %2942 = vrot.lane.b32.xlu1 %v2899_v48, %s6034_s29  ;;  %2938 = vrot.lane.b32.xlu0 %v2895_v29, %s6034_s29  ;;  %v5758_v33 = vadd.f32 %v1572_v3, %v1473_v59  ;;  %v1574_v37 = vpop.f32.mrb[5].mxu1 }
 0x3d3   : > { %2564 = vmatpush1.bf16.msra.mxu1 %v2462_v14  ;;  %v1575_v32 = vpop.f32.mrb[6].mxu1 }
 0x3d4   : > { %v2438_v9 = vpop.permute.xlu1 %2437  ;;  %v2434_v25 = vpop.permute.xlu0 %2433  ;;  %2565 = vmatprep.subr.bf16.mxu1 %v6033_v56 }
 0x3d5   : > { %v2463_v63 = vsel %vm947_vm7, %v2434_v25, %v2436_v11  ;;  %v2464_v13 = vsel %vm947_vm7, %v2436_v11, %v2438_v9  ;;  %v1576_v10 = vpop.f32.mrb[7].mxu1 }
 0x3d6   : > { %2944 = vrot.lane.b32.xlu1 %v2902_v58, %s6034_s29  ;;  %2948 = vrot.lane.b32.xlu0 %v5712_v46, %s6034_s29  ;;  %v3436_v58 = vcombine.low %v5450_v28, %v5450_v28 }
 0x3d7   : > { %2524 = vmatprep.subr.bf16.mxu0 %v2464_v13 }
 0x3d8   : > { %2525 = vmatpush1.bf16.msra.mxu0 %v2463_v63  ;;  %v2688_v5 = vpop.permute.xlu1 %2687  ;;  %v2690_v42 = vpop.permute.xlu0 %2689  ;;  %v5778_v63 = vld [vmem:[%s5924_s5 + $0x20] sm:$0xff] }
 0x3d9   : > { %v5738_v26 = vsel %vm6101_vm6, %v2688_v5, %v2690_v42  ;;  %v3450_v57 = vcombine.high %v5778_v63, %v5778_v63 }
 0x3da   : > { %2950 = vrot.lane.b32.xlu1 %v5726_v39, %s6034_s29  ;;  %2946 = vrot.lane.b32.xlu0 %v5729_v47, %s6034_s29 }
 0x3dc   : > { %v2692_v52 = vpop.permute.xlu1 %2691  ;;  %v2694_v1 = vpop.permute.xlu0 %2693 }
 0x3dd   : > { %v5748_v55 = vsel %vm6102_vm3, %v2690_v42, %v2692_v52  ;;  %v5751_v6 = vsel %vm6103_vm2, %v2692_v52, %v2694_v1  ;;  %v2785_v42 = vsel %vm758_vm1, %v3553_v15, %v5605_v17 }
 0x3de   : > { %2952 = vrot.lane.b32.xlu1 %v2905_v12, %s6034_s29  ;;  %2954 = vrot.lane.b32.xlu0 %v5738_v26, %s6034_s29 }
 0x3e0   : > { %v2440_v22 = vpop.permute.xlu1 %2439  ;;  %v2444_v30 = vpop.permute.xlu0 %2443 }
 0x3e1   : > { %v2465_v20 = vsel %vm947_vm7, %v2438_v9, %v2440_v22 }
 0x3e2   : > { %2956 = vrot.lane.b32.xlu1 %v5748_v55, %s6034_s29  ;;  %2958 = vrot.lane.b32.xlu0 %v5751_v6, %s6034_s29 }
 0x3e3   : > { %2566 = vmatpush1.bf16.msra.mxu1 %v2465_v20 }
 0x3e4   : > { %v2446_v8 = vpop.permute.xlu1 %2445  ;;  %v2442_v51 = vpop.permute.xlu0 %2441  ;;  %2567 = vmatprep.subr.bf16.mxu1 %v6033_v56 }
 0x3e5   : > { %v2466_v54 = vsel %vm947_vm7, %v2442_v51, %v2444_v30  ;;  %v2467_v40 = vsel %vm947_vm7, %v2444_v30, %v2446_v8 }
 0x3e6   : > { %2960 = vrot.lane.b32.xlu1 %v2694_v1, %s6034_s29  ;;  %2526 = vmatprep.subr.bf16.mxu0 %v2467_v40 }
 0x3e7   : > { %2527 = vmatpush1.bf16.msra.mxu0 %v2466_v54  ;;  %3095 = vperm.xlu0 %3516, %v555_v18  }
 0x3e8   : > { %v2448_v11 = vpop.permute.xlu1 %2447  ;;  %v2450_v14 = vpop.permute.xlu0 %2449 }
 0x3e9   : > { %v2468_v48 = vsel %vm947_vm7, %v2446_v8, %v2448_v11 }
 0x3ea   : > { %2568 = vmatpush1.bf16.msra.mxu1 %v2468_v48 }
 0x3eb   : > { %2569 = vmatprep.subr.bf16.mxu1 %v6033_v56 }
 0x3ec   : > { %v2452_v29 = vpop.permute.xlu1 %2451  ;;  %v2454_v19 = vpop.permute.xlu0 %2453 }
 0x3ed   : > { %v2469_v27 = vsel %vm947_vm7, %v2450_v14, %v2452_v29  ;;  %v2470_v9 = vsel %vm947_vm7, %v2452_v29, %v2454_v19 }
 0x3ee   : > { %v2496_v25 = vsel %vm758_vm1, %v2469_v27, 0  ;;  %3438 = vmatprep.subr.msk.bf16.mxu0 %vm758_vm1, %v2470_v9 }
 0x3ef   : > { %2529 = vmatpush1.bf16.msra.mxu0 %v2496_v25 }
 0x3f0   : > { %v2456_v13 = vpop.permute.xlu1 %2455  ;;  %v2646_v21 = vpop.permute.xlu0 %2645  ;;  %3009 = vmatprep.subr.bf16.mxu0 %v5599_v24 }
 0x3f1   : > { %v2471_v53 = vsel %vm947_vm7, %v2454_v19, %v2456_v13 }
 0x3f2   : > { %v2502_v62 = vsel %vm758_vm1, %v2471_v53, 0  ;;  %2537 = vmatmul.mubr.bf16.vlgmr.msra.gmra.mrb[12].mxu0 %v3436_v58 }
 0x3f3   : > { %2570 = vmatpush1.bf16.msra.mxu1 %v2502_v62  ;;  %3010 = vmatpush1.bf16.msra.mxu0 %v5620_v49 }
 0x3f4   : > { %v2648_v28 = vpop.permute.xlu1 %2647  ;;  %v2644_v5 = vpop.permute.xlu0 %2643  ;;  %3011 = vmatprep.subr.bf16.mxu0 %v5638_v16  ;;  %3050 = vmatprep.subr.bf16.mxu1 %v6033_v56 }
 0x3f5   : > { %v2652_v24 = vsel %vm6104_vm4, %v2646_v21, %v2648_v28  ;;  %3452 = vmatprep.mubr.msk.bf16.mxu0 %vm1385_vm10, %v3450_v57  ;;  %v2651_v44 = vsel %vm6105_vm0, %v2644_v5, %v2646_v21 }
 0x3f6   : > { %2578 = vmatmul.mubr.bf16.vlgmr.msra.gmra.mrb[12].mxu1 %v3436_v58  ;;  %v2805_v4 = vsel %vm758_vm1, %v2652_v24, %v5672_v45  ;;  %v2801_v59 = vsel %vm758_vm1, %v2651_v44, %v5684_v61 }
 0x3f7   : > { %3012 = vmatpush1.bf16.msra.mxu0 %v5660_v38  ;;  %3051 = vmatpush1.bf16.msra.mxu1 %v2785_v42 }
 0x3f8   : > { %v2650_v49 = vpop.permute.xlu1 %2649  ;;  %v2701_v16 = vpop.permute.xlu0 %2700  ;;  %3013 = vmatprep.subr.bf16.mxu0 %v2805_v4  ;;  %3052 = vmatprep.subr.bf16.mxu1 %v6033_v56 }
 0x3f9   : > { %3453 = vmatprep.mubr.msk.bf16.mxu1 %vm1385_vm10, %v3450_v57  ;;  %v2653_v17 = vsel %vm6106_vm9, %v2648_v28, %v2650_v49 }
 0x3fa   : > { %v2809_v1 = vsel %vm758_vm1, %v2653_v17, %v5693_v34 }
 0x3fb   : > { %3014 = vmatpush1.bf16.msra.mxu0 %v2801_v59  ;;  %3053 = vmatpush1.bf16.msra.mxu1 %v5657_v41 }
 0x3fc   : > { %v2703_v45 = vpop.permute.xlu1 %2702  ;;  %v2699_v52 = vpop.permute.xlu0 %2698  ;;  %3015 = vmatprep.subr.bf16.mxu0 %v5712_v46  ;;  %3054 = vmatprep.subr.bf16.mxu1 %v6033_v56 }
 0x3fd   : > { %v2707_v38 = vsel %vm682_vm11, %v2701_v16, %v2703_v45  ;;  %v2706_v61 = vsel %vm682_vm11, %v2699_v52, %v2701_v16 }
 0x3fe   : > { %v2829_v12 = vsel %vm758_vm1, %v5748_v55, %v2707_v38  ;;  %v2825_v46 = vsel %vm758_vm1, %v5738_v26, %v2706_v61 }
 0x3ff   : > { %3016 = vmatpush1.bf16.msra.mxu0 %v5729_v47  ;;  %3055 = vmatpush1.bf16.msra.mxu1 %v2809_v1 }
 0x400   : > { %v2705_v41 = vpop.permute.xlu1 %2704  ;;  %v2712_v31 = vpop.permute.xlu0 %2711  ;;  %3017 = vmatprep.subr.bf16.mxu0 %v2829_v12  ;;  %3056 = vmatprep.subr.bf16.mxu1 %v6033_v56 }
 0x401   : > { %v2708_v2 = vsel %vm682_vm11, %v2703_v45, %v2705_v41 }
 0x402   : > { %v2833_v47 = vsel %vm758_vm1, %v5751_v6, %v2708_v2 }
 0x403   : > { %3018 = vmatpush1.bf16.msra.mxu0 %v2825_v46  ;;  %3057 = vmatpush1.bf16.msra.mxu1 %v5726_v39 }
 0x404   : > { %v2714_v34 = vpop.permute.xlu1 %2713  ;;  %v2723_v23 = vpop.permute.xlu0 %2722  ;;  %3058 = vmatprep.subr.bf16.mxu1 %v6033_v56 }
 0x405   : > { %v2718_v0 = vsel %vm694_vm12, %v2712_v31, %v2714_v34 }
 0x407   : > { %3059 = vmatpush1.bf16.msra.mxu1 %v2833_v47 }
 0x408   : > { %v2725_v35 = vpop.permute.xlu1 %2724  ;;  %v2710_v7 = vpop.permute.xlu0 %2709  ;;  %3060 = vmatprep.subr.bf16.mxu1 %v6033_v56 }
 0x409   : > { %v2729_v26 = vsel %vm706_vm13, %v2723_v23, %v2725_v35  ;;  %v2717_v55 = vsel %vm694_vm12, %v2710_v7, %v2712_v31 }
 0x40a   : > { %v2841_v22 = vsel %vm758_vm1, %v2718_v0, %v2729_v26 }
 0x40b   : > { %3019 = vmatprep.subr.bf16.mxu0 %v2841_v22 }
 0x40c   : > { %v2721_v39 = vpop.permute.xlu1 %2720  ;;  %v2716_v30 = vpop.permute.xlu0 %2715 }
 0x40d   : > { %v2728_v20 = vsel %vm706_vm13, %v2721_v39, %v2723_v23  ;;  %v2719_v36 = vsel %vm694_vm12, %v2714_v34, %v2716_v30 }
 0x40e   : > { %v2837_v6 = vsel %vm758_vm1, %v2717_v55, %v2728_v20 }
 0x40f   : > { %3020 = vmatpush1.bf16.msra.mxu0 %v2837_v6 }
 0x410   : > { %v2727_v50 = vpop.permute.xlu1 %2726  ;;  %v2734_v3 = vpop.permute.xlu0 %2733 }
 0x411   : > { %v2730_v37 = vsel %vm706_vm13, %v2725_v35, %v2727_v50 }
 0x412   : > { %v2845_v32 = vsel %vm758_vm1, %v2719_v36, %v2730_v37 }
 0x413   : > { %3061 = vmatpush1.bf16.msra.mxu1 %v2845_v32 }
 0x414   : > { %v2736_v8 = vpop.permute.xlu1 %2735  ;;  %v2745_v51 = vpop.permute.xlu0 %2744  ;;  %3062 = vmatprep.subr.bf16.mxu1 %v6033_v56 }
 0x415   : > { %v2740_v40 = vsel %vm718_vm14, %v2734_v3, %v2736_v8 }
 0x418   : > { %v2747_v18 = vpop.permute.xlu1 %2746  ;;  %v2732_v54 = vpop.permute.xlu0 %2731 }
 0x419   : > { %v2751_v10 = vsel %vm730_vm15, %v2745_v51, %v2747_v18  ;;  %v2739_v29 = vsel %vm718_vm14, %v2732_v54, %v2734_v3 }
 0x41a   : > { %v2853_v11 = vsel %vm758_vm1, %v2740_v40, %v2751_v10 }
 0x41b   : > { %3021 = vmatprep.subr.bf16.mxu0 %v2853_v11 }
 0x41c   : > { %v2743_v14 = vpop.permute.xlu1 %2742  ;;  %v2738_v48 = vpop.permute.xlu0 %2737 }
 0x41d   : > { %v2750_v19 = vsel %vm730_vm15, %v2743_v14, %v2745_v51  ;;  %v2741_v57 = vsel %vm718_vm14, %v2736_v8, %v2738_v48 }
 0x41e   : > { %v2849_v27 = vsel %vm758_vm1, %v2739_v29, %v2750_v19  ;;  %v2033_v9 = vpop.f32.mrb[8].mxu0 }
 0x41f   : > { %3022 = vmatpush1.bf16.msra.mxu0 %v2849_v27  ;;  %v5838_v25 = vadd.f32 %v2033_v9, %v5743_v60  ;;  %v2035_v58 = vpop.f32.mrb[9].mxu0 }
 0x420   : > { %v2749_v13 = vpop.permute.xlu1 %2748  ;;  %v2756_v21 = vpop.permute.xlu0 %2755  ;;  %v5841_v53 = vadd.f32 %v2035_v58, %v5745_v43 }
 0x421   : > { %v2752_v62 = vsel %vm730_vm15, %v2747_v18, %v2749_v13  ;;  %v2037_v15 = vpop.f32.mrb[10].mxu0 }
 0x422   : > { %v2857_v28 = vsel %vm758_vm1, %v2741_v57, %v2752_v62  ;;  %v2074_v5 = vpop.f32.mrb[8].mxu1  ;;  %v2038_v24 = vpop.f32.mrb[11].mxu0  ;;  %v3449_v57 = vcombine.low %v5778_v63, %v5778_v63 }
 0x423   : > { %3063 = vmatpush1.bf16.msra.mxu1 %v2857_v28  ;;  %v5847_v42 = vadd.f32 %v2074_v5, %v5758_v33  ;;  %v2076_v60 = vpop.f32.mrb[9].mxu1 }
 0x424   : > { %v2758_v4 = vpop.permute.xlu1 %2757  ;;  %v2767_v44 = vpop.permute.xlu0 %2766  ;;  %3064 = vmatprep.subr.bf16.mxu1 %v6033_v56 }
 0x425   : > { %v2077_v43 = vpop.f32.mrb[10].mxu1  ;;  %v2762_v17 = vsel %vm742_vm5, %v2756_v21, %v2758_v4 }
 0x426   : > { %v2078_v49 = vpop.f32.mrb[11].mxu1 }
 0x428   : > { %v2769_v16 = vpop.permute.xlu1 %2768  ;;  %v2754_v59 = vpop.permute.xlu0 %2753 }
 0x429   : > { %v2773_v45 = vsel %vm754_vm8, %v2767_v44, %v2769_v16  ;;  %v2761_v33 = vsel %vm742_vm5, %v2754_v59, %v2756_v21 }
 0x42a   : > { %v2865_v52 = vsel %vm758_vm1, %v2762_v17, %v2773_v45  ;;  %v3106_v17 = vlaneseq }
 0x42b   : > { %3023 = vmatprep.subr.bf16.mxu0 %v2865_v52 }
 0x42c   : > { %v2765_v38 = vpop.permute.xlu1 %2764  ;;  %v2760_v1 = vpop.permute.xlu0 %2759  ;;  %v3107_v45 = vshrl.u32 %v3106_v17, 7 }
 0x42d   : > { %v2772_v12 = vsel %vm754_vm8, %v2765_v38, %v2767_v44  ;;  %v2763_v46 = vsel %vm742_vm5, %v2758_v4, %v2760_v1  ;;  %vm3139_vm5 = vcmask 15360  }
 0x42e   : > { %v2861_v61 = vsel %vm758_vm1, %v2761_v33, %v2772_v12  ;;  %v3112_v52 = vsub.s32 1, %v3107_v45 }
 0x42f   : > { %3024 = vmatpush1.bf16.msra.mxu0 %v2861_v61  ;;  %v3116_v61 = vsub.s32 2, %v3107_v45 }
 0x430   : > { %v2771_v41 = vpop.permute.xlu1 %2770  ;;  %v2925_v31 = vpop.permute.xlu0 %2924 }
 0x431   : > { %v2774_v2 = vsel %vm754_vm8, %v2769_v16, %v2771_v41 }
 0x432   : > { %v2869_v34 = vsel %vm758_vm1, %v2763_v46, %v2774_v2 }
 0x433   : > { %3065 = vmatpush1.bf16.msra.mxu1 %v2869_v34 }
 0x434   : > { %v2927_v23 = vpop.permute.xlu1 %2926  ;;  %v2923_v47 = vpop.permute.xlu0 %2922  ;;  %3066 = vmatprep.subr.bf16.mxu1 %v6033_v56 }
 0x435   : > { %v2962_v35 = vsel %vm947_vm7, %v2923_v47, %v2925_v31  ;;  %v2963_v7 = vsel %vm947_vm7, %v2925_v31, %v2927_v23 }
 0x436   : > { %3025 = vmatprep.subr.bf16.mxu0 %v2963_v7 }
 0x437   : > { %3026 = vmatpush1.bf16.msra.mxu0 %v2962_v35 }
 0x438   : > { %v2929_v0 = vpop.permute.xlu1 %2928  ;;  %v2933_v26 = vpop.permute.xlu0 %2932 }
 0x439   : > { %v2964_v22 = vsel %vm947_vm7, %v2927_v23, %v2929_v0 }
 0x43a   : > { %3067 = vmatpush1.bf16.msra.mxu1 %v2964_v22 }
 0x43b   : > { %3068 = vmatprep.subr.bf16.mxu1 %v6033_v56 }
 0x43c   : > { %v2935_v39 = vpop.permute.xlu1 %2934  ;;  %v2931_v30 = vpop.permute.xlu0 %2930 }
 0x43d   : > { %v2965_v55 = vsel %vm947_vm7, %v2931_v30, %v2933_v26  ;;  %v2966_v20 = vsel %vm947_vm7, %v2933_v26, %v2935_v39 }
 0x43e   : > { %3027 = vmatprep.subr.bf16.mxu0 %v2966_v20 }
 0x43f   : > { %3028 = vmatpush1.bf16.msra.mxu0 %v2965_v55 }
 0x440   : > { %v2937_v6 = vpop.permute.xlu1 %2936  ;;  %v2941_v50 = vpop.permute.xlu0 %2940 }
 0x441   : > { %v2967_v3 = vsel %vm947_vm7, %v2935_v39, %v2937_v6 }
 0x442   : > { %3069 = vmatpush1.bf16.msra.mxu1 %v2967_v3 }
 0x443   : > { %3070 = vmatprep.subr.bf16.mxu1 %v6033_v56 }
 0x444   : > { %v2943_v36 = vpop.permute.xlu1 %2942  ;;  %v2939_v37 = vpop.permute.xlu0 %2938 }
 0x445   : > { %v2968_v32 = vsel %vm947_vm7, %v2939_v37, %v2941_v50  ;;  %v2969_v8 = vsel %vm947_vm7, %v2941_v50, %v2943_v36 }
 0x446   : > { %3029 = vmatprep.subr.bf16.mxu0 %v2969_v8 }
 0x447   : > { %3030 = vmatpush1.bf16.msra.mxu0 %v2968_v32 }
 0x448   : > { %v2945_v51 = vpop.permute.xlu1 %2944  ;;  %v2949_v18 = vpop.permute.xlu0 %2948 }
 0x449   : > { %v2970_v54 = vsel %vm947_vm7, %v2943_v36, %v2945_v51 }
 0x44a   : > { %3071 = vmatpush1.bf16.msra.mxu1 %v2970_v54 }
 0x44b   : > { %3072 = vmatprep.subr.bf16.mxu1 %v6033_v56 }
 0x44c   : > { %v2951_v40 = vpop.permute.xlu1 %2950  ;;  %v2947_v10 = vpop.permute.xlu0 %2946 }
 0x44d   : > { %v2971_v11 = vsel %vm947_vm7, %v2947_v10, %v2949_v18  ;;  %v2972_v14 = vsel %vm947_vm7, %v2949_v18, %v2951_v40 }
 0x44e   : > { %3031 = vmatprep.subr.bf16.mxu0 %v2972_v14 }
 0x44f   : > { %3032 = vmatpush1.bf16.msra.mxu0 %v2971_v11 }
 0x450   : > { %v2953_v48 = vpop.permute.xlu1 %2952  ;;  %v2955_v29 = vpop.permute.xlu0 %2954 }
 0x451   : > { %v2973_v19 = vsel %vm947_vm7, %v2951_v40, %v2953_v48 }
 0x452   : > { %3073 = vmatpush1.bf16.msra.mxu1 %v2973_v19 }
 0x453   : > { %3074 = vmatprep.subr.bf16.mxu1 %v6033_v56 }
 0x454   : > { %v2957_v27 = vpop.permute.xlu1 %2956  ;;  %v2959_v9 = vpop.permute.xlu0 %2958 }
 0x455   : > { %v2974_v58 = vsel %vm947_vm7, %v2955_v29, %v2957_v27  ;;  %v2975_v13 = vsel %vm947_vm7, %v2957_v27, %v2959_v9 }
 0x456   : > { %v3001_v21 = vsel %vm758_vm1, %v2974_v58, 0  ;;  %3451 = vmatprep.subr.msk.bf16.mxu0 %vm758_vm1, %v2975_v13 }
 0x457   : > { %3034 = vmatpush1.bf16.msra.mxu0 %v3001_v21 }
 0x458   : > { %v2961_v62 = vpop.permute.xlu1 %2960 }
 0x459   : > { %v2976_v15 = vsel %vm947_vm7, %v2959_v9, %v2961_v62 }
 0x45a   : > { %v3007_v56 = vsel %vm758_vm1, %v2976_v15, 0  ;;  %3042 = vmatmul.mubr.bf16.vlgmr.msra.gmra.mrb[16].mxu0 %v3449_v57  ;;  %vm3137_vm1 = vcmask 7168  }
 0x45b   : > { %3075 = vmatpush1.bf16.msra.mxu1 %v3007_v56 }
 0x45e   : > { %3083 = vmatmul.mubr.bf16.vlgmr.msra.gmra.mrb[16].mxu1 %v3449_v57 }
 0x466   : > { %v3096_v38 = vpop.permute.xlu0 %3095 }
 0x4c5   : > { %v2538_v28 = vpop.f32.mrb[12].mxu0 }
 0x4c6   : > { %v2585_v5 = vadd.f32 %v2538_v28, %v5838_v25  ;;  %v2540_v24 = vpop.f32.mrb[13].mxu0  ;;  %v3108_v25 = vsub.s32 0, %v3107_v45 }
 0x4c7   : > { %v2586_v60 = vadd.f32 %v2540_v24, %v5841_v53  ;;  %v2542_v4 = vpop.f32.mrb[14].mxu0  ;;  %v3104_v53 = vld [vmem:[%s5926_s7] sm:$0x7] }
 0x4c8   : > { %v2543_v63 = vpop.f32.mrb[15].mxu0  ;;  %v3109_v12 = vrot.slane %v3104_v53, %v3108_v25  ;;  %v3113_v46 = vrot.slane %v3104_v53, %v3112_v52  ;;  %v3117_v0 = vrot.slane %v3104_v53, %v3116_v61 }
 0x4c9   : > { %v2579_v44 = vpop.f32.mrb[12].mxu1 }
 0x4ca   : > { %v2587_v43 = vadd.f32 %v2579_v44, %v5847_v42  ;;  %v2581_v49 = vpop.f32.mrb[13].mxu1 }
 0x4cb   : > { %v2582_v16 = vpop.f32.mrb[14].mxu1 }
 0x4cc   : > { %v2583_v59 = vpop.f32.mrb[15].mxu1 }
 0x52d   : > { %v3043_v42 = vpop.f32.mrb[16].mxu0 }
 0x52e   : > { %v3090_v1 = vadd.f32 %v3043_v42, %v2585_v5  ;;  %v3045_v33 = vpop.f32.mrb[17].mxu0 }
 0x52f   : > { %v3091_v41 = vadd.f32 %v3045_v33, %v2586_v60  ;;  %v3047_v31 = vpop.f32.mrb[18].mxu0 }
 0x530   : > { %v3098_v2 = vadd.f32 %v3096_v38, %v3090_v1  ;;  %v3048_v34 = vpop.f32.mrb[19].mxu0 }
 0x531   : > { %v3099_v23 = vadd.f32 %v3096_v38, %v3091_v41  ;;  %v3084_v47 = vpop.f32.mrb[16].mxu1 }
 0x532   : > { %3101 = vst [vmem:[%s545_s2] sm:$0xff] %v3098_v2  ;;  %v3092_v35 = vadd.f32 %v3084_v47, %v2587_v43  ;;  %v3086_v7 = vpop.f32.mrb[17].mxu1  ;;  %v3121_v26 = vmul.f32 %v3109_v12, %v3098_v2 }
 0x533   : > { %3102 = vst [vmem:[%s545_s2 + $0x8] sm:$0xff] %v3099_v23  ;;  %v3087_v22 = vpop.f32.mrb[18].mxu1  ;;  %v3122_v39 = vmul.f32 %v3113_v46, %v3099_v23 }
 0x534   : > { %v3100_v30 = vadd.f32 %v3096_v38, %v3092_v35  ;;  %v3088_v55 = vpop.f32.mrb[19].mxu1  ;;  %v3129_v20 = vmul.f32 %v3121_v26, %v3098_v2 }
 0x535   : > { %v3124_v6 = vadd.f32 %v3122_v39, %v3121_v26  ;;  %v3130_v50 = vmul.f32 %v3122_v39, %v3099_v23 }
 0x536   : > { %3103 = vst [vmem:[%s545_s2 + $0x10] sm:$0xff] %v3100_v30  ;;  %v3123_v3 = vmul.f32 %v3117_v0, %v3100_v30 }
 0x537   : > { %v3132_v36 = vadd.f32 %v3130_v50, %v3129_v20 }
 0x538   : > { %v3125_v37 = vadd.f32 %v3124_v6, %v3123_v3  ;;  %v3131_v32 = vmul.f32 %v3123_v3, %v3100_v30 }
 0x53a   : > { %3126 = vadd.xlane.f32.xlu1 %v3125_v37  ;;  %v3133_v8 = vadd.f32 %v3132_v36, %v3131_v32 }
 0x53c   : > { %3134 = vadd.xlane.f32.xlu0 %v3133_v8 }
 0x5c7   : > { %v3127_v51 = vpop.xlane.xlu1 %3126 }
 0x5c9   : > { %v3135_v18 = vpop.xlane.xlu0 %3134 }
 0x5ca   : > { %v3138_v54 = vsel %vm3137_vm1, %v3127_v51, %v3135_v18 }
 0x5cb   : > { %3140 = vst.msk [vmem:[%s553_s1] sm:$0xff] %vm3139_vm5, %v3138_v54 }
 0x5cc PF: > { %s6108_s9 = sld [smem:[#allocation4_spill]]  ;;  %s6109_s30 = sld [smem:[#allocation2_spill]] }
 0x5cd   : > { %s6110_s10 = sld [smem:[#allocation3_spill]]  ;;  %s6111_s11 = sld [smem:[#allocation5_spill]] }
 0x5ce   : > { %s6112_s12 = sld [smem:[#allocation6_spill]] }
 0x5d2   : > { %s20_s13 = sadd.s32 1, %s6108_s9  }
 0x5d3   : > { %p17_p12 = scmp.ge.s32.totalorder %s20_s13, 10  }
 0x5d5   :  { %19 = sbr.rel (!%p17_p12) target bundleno = 6 (0x6), region = 110 }

// kernel: up_transition_forward.9
= control target key start
LH: loop header
LB: loop body
LE: loop exit
PB: predicated region body
PF: predicated region fallthrough
CT: control target
= control target key end

     0   :  { %s588_s15 = smov 0   ;;  %s590_s16 = smov 0   ;;  %s653_s0 = inlined_call_operand.vmem [shape: f32[2,4,8,384], index: 0, kind: input, shape index: {}]   ;;  %s654_s1 = inlined_call_operand.vmem [shape: f32[2,4,8,384], index: 1, kind: input, shape index: {}]   ;;  %s655_s2 = inlined_call_operand.vmem [shape: f32[8,1], index: 2, kind: input, shape index: {}]   ;;  %s656_s3 = inlined_call_operand.vmem [shape: f32[8,1], index: 3, kind: input, shape index: {}]   ;;  %s657_s4 = inlined_call_operand.vmem [shape: f32[2,4,8,384], index: 4, kind: output, shape index: {}]  }
   0x1   :  { %s592_s17 = smov 0   ;;  %s594_s18 = smov 0  }
   0x2   :  { %s596_s19 = smov 0  }
   0x3 LB: > { %s23_s20 = sadd.s32 1, %s552_s17  ;;  %s26_s21 = sadd.s32 1, %s556_s18  ;;  %s560_s19 = sphi %s596_s19, %s14_s19   ;;  %s556_s18 = sphi %s594_s18, %s661_s18   ;;  %s552_s17 = sphi %s592_s17, %s660_s17   ;;  %s548_s16 = sphi %s590_s16, %s659_s16   ;;  %s544_s15 = sphi %s588_s15, %s658_s15  }
   0x4   : > { %p24_p0 = scmp.ge.s32.totalorder %s23_s20, 4  ;;  %p454_p1 = scmp.ge.s32.totalorder %s560_s19, 1 }
   0x5   : > { %p198_p2 = scmp.lt.s32.totalorder %s560_s19, 9 }
   0x6   : > { %s663_s20 = smov (%p24_p0, %s23_s20), 0  ;;  %s665_s21 = smov (!%p24_p0, %s26_s21), %s556_s18 }
   0x7   : > { %p199_p3 = pnand %p454_p1, %p198_p2  ;;  %p28_p4 = scmp.ge.s32.totalorder %s665_s21, 2 }
   0x8   : > { %v271_v0 = vld [vmem:[%s655_s2] sm:$0xff] (!%p199_p3)  ;;  %v562_v1 = vmov (!%p199_p3), 0   ;;  %p241_p5 = scmp.lt.s32.totalorder (!%p199_p3), %s548_s16, 1  ;;  %p243_p6 = scmp.lt.s32.totalorder (!%p199_p3), %s544_s15, 3 }
   0x9   : > { %s667_s21 = smov (%p28_p4, %s665_s21), 0  ;;  %202 = sbr.rel (%p199_p3) target bundleno = 186 (0xba), region = 36 }
   0xa   : > { %509 = vset.pattern.permute.xlu0 (!%p199_p3), %v562_v1  ;;  %v280_v2 = vld [vmem:[%s656_s3] sm:$0xff] (!%p199_p3) }
   0xb   : > { %274 = vperm.xlu0 (!%p199_p3), %509, %v271_v0  }
   0xf   : > { %283 = vperm.xlu0 (!%p199_p3), %509, %v280_v2  }
  0x10   : > { %s669_s16 = smov (!%p241_p5, %s548_s16), 1  ;;  %s671_s15 = smov (!%p243_p6, %s544_s15), 3 }
  0x11   : > { %s467_s26 = smul.u32 12, %s669_s16 }
  0x12   : > { %s466_s27 = smul.u32 3, %s671_s15 }
  0x14   : > { %s247_s28 = sadd.s32 %s467_s26, %s466_s27 }
  0x15   : > { %s624_s29 = sshll.u32 %s247_s28, 3 }
  0x16   : > { %s249_s6 = scalar_lea.vmem %s653_s0, %s624_s29  ;;  %s258_s9 = scalar_lea.vmem %s654_s1, %s624_s29 }
  0x17   : > { %v268_v4 = vld [vmem:[%s249_s6] sm:$0xff]  ;;  %v269_v5 = vld [vmem:[%s249_s6 + $0x8] sm:$0xff]  ;;  %v270_v6 = vld [vmem:[%s249_s6 + $0x10] sm:$0xff]  ;;  %s267_s12 = scalar_lea.vmem %s657_s4, %s624_s29 }
  0x18   : > { %v307_v23 = vld [vmem:[%s258_s9] sm:$0xff]  ;;  %v308_v26 = vld [vmem:[%s258_s9 + $0x8] sm:$0xff]  ;;  %v309_v29 = vld [vmem:[%s258_s9 + $0x10] sm:$0xff] }
  0x8a   : > { %v275_v3 = vpop.permute.xlu0 %274 }
  0x8b   : > { %v277_v7 = vmul.f32 %v275_v3, %v268_v4  ;;  %v278_v8 = vmul.f32 %v275_v3, %v269_v5  ;;  %v279_v9 = vmul.f32 %v275_v3, %v270_v6 }
  0x8e   : > { %v284_v10 = vpop.permute.xlu0 %283 }
  0x8f   : > { %v286_v11 = vadd.f32 %v284_v10, %v277_v7  ;;  %v287_v12 = vadd.f32 %v284_v10, %v278_v8  ;;  %v288_v13 = vadd.f32 %v284_v10, %v279_v9 }
  0x91   : > { %v292_v14 = vmin.f32 %v286_v11, 0.0  ;;  %v293_v15 = vmin.f32 %v287_v12, 0.0  ;;  %v294_v16 = vmin.f32 %v288_v13, 0.0  ;;  %vm289_vm0 = vcmp.gt.f32.partialorder %v286_v11, 0.0 }
  0x92   : > { %vm290_vm1 = vcmp.gt.f32.partialorder %v287_v12, 0.0  ;;  %vm291_vm2 = vcmp.gt.f32.partialorder %v288_v13, 0.0 }
  0x93   : > { %v295_v17 = vmul.f32 1.442695, %v292_v14  ;;  %v297_v18 = vmul.f32 1.442695, %v293_v15  ;;  %v299_v19 = vmul.f32 1.442695, %v294_v16 }
  0x95   : > { %510 = vpow2.f32 %v295_v17 }
  0x96   : > { %512 = vpow2.f32 %v297_v18 }
  0x97   : > { %514 = vpow2.f32 %v299_v19 }
  0x9f   : > { %v511_v20 = vpop.eup %510 }
  0xa0   : > { %v513_v21 = vpop.eup %512  ;;  %v458_v22 = vadd.f32 -1.0, %v511_v20 }
  0xa1   : > { %v515_v24 = vpop.eup %514  ;;  %v459_v25 = vadd.f32 -1.0, %v513_v21 }
  0xa2   : > { %v460_v27 = vadd.f32 -1.0, %v515_v24  ;;  %v304_v28 = vsel %vm289_vm0, %v286_v11, %v458_v22 }
  0xa3   : > { %v305_v30 = vsel %vm290_vm1, %v287_v12, %v459_v25  ;;  %v310_v31 = vadd.f32 %v307_v23, %v304_v28 }
  0xa4   : > { %v306_v32 = vsel %vm291_vm2, %v288_v13, %v460_v27  ;;  %v311_v33 = vadd.f32 %v308_v26, %v305_v30 }
  0xa5   : > { %v312_v34 = vadd.f32 %v309_v29, %v306_v32  ;;  %v316_v35 = vmin.f32 %v310_v31, 0.0  ;;  %vm313_vm3 = vcmp.gt.f32.partialorder %v310_v31, 0.0 }
  0xa6   : > { %v317_v36 = vmin.f32 %v311_v33, 0.0  ;;  %vm314_vm4 = vcmp.gt.f32.partialorder %v311_v33, 0.0 }
  0xa7   : > { %v318_v37 = vmin.f32 %v312_v34, 0.0  ;;  %v319_v38 = vmul.f32 1.442695, %v316_v35  ;;  %vm315_vm5 = vcmp.gt.f32.partialorder %v312_v34, 0.0 }
  0xa8   : > { %v321_v39 = vmul.f32 1.442695, %v317_v36 }
  0xa9   : > { %516 = vpow2.f32 %v319_v38  ;;  %v323_v40 = vmul.f32 1.442695, %v318_v37 }
  0xaa   : > { %518 = vpow2.f32 %v321_v39 }
  0xab   : > { %520 = vpow2.f32 %v323_v40 }
  0xb3   : > { %v517_v41 = vpop.eup %516 }
  0xb4   : > { %v519_v42 = vpop.eup %518  ;;  %v461_v43 = vadd.f32 -1.0, %v517_v41 }
  0xb5   : > { %v521_v44 = vpop.eup %520  ;;  %v462_v45 = vadd.f32 -1.0, %v519_v42 }
  0xb6   : > { %v463_v46 = vadd.f32 -1.0, %v521_v44  ;;  %v328_v47 = vsel %vm313_vm3, %v310_v31, %v461_v43 }
  0xb7   : > { %v329_v48 = vsel %vm314_vm4, %v311_v33, %v462_v45  ;;  %331 = vst [vmem:[%s267_s12] sm:$0xff] %v328_v47 }
  0xb8   : > { %v330_v49 = vsel %vm315_vm5, %v312_v34, %v463_v46  ;;  %332 = vst [vmem:[%s267_s12 + $0x8] sm:$0xff] %v329_v48 }
  0xb9   : > { %333 = vst [vmem:[%s267_s12 + $0x10] sm:$0xff] %v330_v49 }
  0xba PF: > { %s14_s19 = sadd.s32 1, %s560_s19   ;;  %s658_s15 = smov %s552_s17 }
  0xbb   : > { %p11_p7 = scmp.ge.s32.totalorder %s14_s19, 10   ;;  %s659_s16 = smov %s556_s18 }
  0xbc   : > { %s660_s17 = smov %s663_s20  ;;  %s661_s18 = smov %s667_s21 }
  0xbd   :  { %13 = sbr.rel (!%p11_p7) target bundleno = 3 (0x3), region = 69 }

</bundles_post_ra>
